<compile_context>
chip_gen: v6e
topology: v6e:2x2x1
jax: 0.10.0
libtpu: 0.0.40
codegen_flags: <defaults>
</compile_context>

<pallas_src>
import functools
import math

import jax
import jax.numpy as jnp
from jax import lax
from jax.experimental import pallas as pl
from jax.experimental.pallas import tpu as pltpu


# ---------------------------------------------------------------------------
# Generation-aware VMEM limit & tile selection
# ---------------------------------------------------------------------------
def _vmem_limit_bytes():
    try:
        cap = int(pltpu.get_tpu_info().vmem_capacity_bytes)
    except Exception:            # fall back if the query is unavailable
        cap = 128 * 1024 * 1024
    # ~64 MiB on v5e/v6e (128 MiB physical), ~48 MiB on v7x (64 MiB physical)
    return min(64 * 1024 * 1024, (cap * 3) // 4)


_VMEM_LIMIT = _vmem_limit_bytes()


def _cp(dimension_semantics):
    return pltpu.CompilerParams(
        dimension_semantics=dimension_semantics,
        vmem_limit_bytes=_VMEM_LIMIT,
    )


def _pick(dim, prefs):
    for p in prefs:
        if dim % p == 0:
            return p
    return dim


def _mm_tiles(M, N, K, itemsize, n_acc=1):
    """Tile sizes for the matmul-family kernels, derived from a VMEM budget."""
    budget = int(_VMEM_LIMIT * 0.7)
    tn = _pick(N, (512, 256, 128))
    tk = _pick(K, (512, 256, 128))
    cands = [t for t in (1024, 512, 256, 128, 64, 32, 16, 8) if M % t == 0] or [M]

    def need(tm):
        # double-buffered A / weight / output tiles + f32 accumulators
        return (2 * (tm * tk + n_acc * tk * tn + n_acc * tm * tn) * itemsize
                + n_acc * tm * tn * 4 + 4 * tm)

    fits = [t for t in cands if need(t) <= budget] or [cands[-1]]
    # keep >= 2 parallel output blocks when possible (v7x dual TensorCores)
    good = [t for t in fits if (M // t) * (N // tn) >= 2]
    tm = good[0] if good else fits[0]
    return tm, tn, tk


def _rows_tile(M, C, itemsize):
    budget = int(_VMEM_LIMIT * 0.5)
    cands = [t for t in (512, 256, 128, 64, 32, 16, 8) if M % t == 0] or [M]
    fits = [t for t in cands if 2 * t * C * itemsize + 4 * t <= budget] or [cands[-1]]
    good = [t for t in fits if M // t >= 2]
    return good[0] if good else fits[0]


def _flash_q_tile(T, C, n_head, head_dim, itemsize):
    budget = int(_VMEM_LIMIT * 0.6)
    cands = [t for t in (256, 128, 64, 32, 16, 8) if T % t == 0] or [T]

    def need(t):
        return 2 * 4 * t * C * itemsize + n_head * t * (head_dim + 2) * 4

    fits = [t for t in cands if need(t) <= budget] or [cands[-1]]
    return fits[0]


# ---------------------------------------------------------------------------
# Per-row inverse-RMS scale (the norm itself is fused into consumer matmuls)
# ---------------------------------------------------------------------------
def _rms_scale_kernel(x_ref, s_ref, *, eps):
    x = x_ref[...].astype(jnp.float32)
    s_ref[...] = lax.rsqrt(jnp.mean(x * x, axis=-1, keepdims=True) + eps)


def rms_scale(x2d, eps):
    M, C = x2d.shape
    tm = _rows_tile(M, C, x2d.dtype.itemsize)
    return pl.pallas_call(
        functools.partial(_rms_scale_kernel, eps=eps),
        out_shape=jax.ShapeDtypeStruct((M, 1), jnp.float32),
        grid=(M // tm,),
        in_specs=[pl.BlockSpec((tm, C), lambda i: (i, 0))],
        out_specs=pl.BlockSpec((tm, 1), lambda i: (i, 0)),
        compiler_params=_cp(("parallel",)),
    )(x2d)


# ---------------------------------------------------------------------------
# Matmul with fused RMSNorm on the A operand (c_attn)
# ---------------------------------------------------------------------------
def _mm_norm_kernel(x_ref, s_ref, g_ref, w_ref, o_ref, acc_ref):
    a = (x_ref[...].astype(jnp.float32) * s_ref[...]
         * g_ref[...].astype(jnp.float32)).astype(x_ref.dtype)
    prod = jnp.dot(a, w_ref[...], preferred_element_type=jnp.float32)
    k = pl.program_id(2)

    @pl.when(k == 0)
    def _():
        acc_ref[...] = prod

    @pl.when(k > 0)
    def _():
        acc_ref[...] += prod

    @pl.when(k == pl.num_programs(2) - 1)
    def _():
        o_ref[...] = acc_ref[...].astype(o_ref.dtype)


def matmul_norm(x, s, g, w):
    M, K = x.shape
    _, N = w.shape
    tm, tn, tk = _mm_tiles(M, N, K, x.dtype.itemsize)
    grid = (M // tm, N // tn, K // tk)
    return pl.pallas_call(
        _mm_norm_kernel,
        out_shape=jax.ShapeDtypeStruct((M, N), x.dtype),
        grid=grid,
        in_specs=[pl.BlockSpec((tm, tk), lambda i, j, k: (i, k)),
                  pl.BlockSpec((tm, 1), lambda i, j, k: (i, 0)),
                  pl.BlockSpec((1, tk), lambda i, j, k: (0, k)),
                  pl.BlockSpec((tk, tn), lambda i, j, k: (k, j))],
        out_specs=pl.BlockSpec((tm, tn), lambda i, j, k: (i, j)),
        scratch_shapes=[pltpu.VMEM((tm, tn), jnp.float32)],
        compiler_params=_cp(("parallel", "parallel", "arbitrary")),
    )(x, s, g.reshape(1, K), w)


# ---------------------------------------------------------------------------
# Matmul with fused residual add in the epilogue (c_proj, w2)
# ---------------------------------------------------------------------------
def _mm_res_kernel(a_ref, w_ref, r_ref, o_ref, acc_ref):
    prod = jnp.dot(a_ref[...], w_ref[...], preferred_element_type=jnp.float32)
    k = pl.program_id(2)

    @pl.when(k == 0)
    def _():
        acc_ref[...] = prod

    @pl.when(k > 0)
    def _():
        acc_ref[...] += prod

    @pl.when(k == pl.num_programs(2) - 1)
    def _():
        o_ref[...] = (acc_ref[...]
                      + r_ref[...].astype(jnp.float32)).astype(o_ref.dtype)


def matmul_res(a, w, residual):
    M, K = a.shape
    _, N = w.shape
    tm, tn, tk = _mm_tiles(M, N, K, a.dtype.itemsize)
    grid = (M // tm, N // tn, K // tk)
    o_spec = pl.BlockSpec((tm, tn), lambda i, j, k: (i, j))
    return pl.pallas_call(
        _mm_res_kernel,
        out_shape=jax.ShapeDtypeStruct((M, N), a.dtype),
        grid=grid,
        in_specs=[pl.BlockSpec((tm, tk), lambda i, j, k: (i, k)),
                  pl.BlockSpec((tk, tn), lambda i, j, k: (k, j)),
                  o_spec],
        out_specs=o_spec,
        scratch_shapes=[pltpu.VMEM((tm, tn), jnp.float32)],
        compiler_params=_cp(("parallel", "parallel", "arbitrary")),
    )(a, w, residual)


# ---------------------------------------------------------------------------
# Fused RMSNorm + SwiGLU: silu(norm(x) @ w1) * (norm(x) @ w3)
# ---------------------------------------------------------------------------
def _swiglu_norm_kernel(x_ref, s_ref, g_ref, w1_ref, w3_ref, o_ref,
                        acc1_ref, acc3_ref):
    a = (x_ref[...].astype(jnp.float32) * s_ref[...]
         * g_ref[...].astype(jnp.float32)).astype(x_ref.dtype)
    p1 = jnp.dot(a, w1_ref[...], preferred_element_type=jnp.float32)
    p3 = jnp.dot(a, w3_ref[...], preferred_element_type=jnp.float32)
    k = pl.program_id(2)

    @pl.when(k == 0)
    def _():
        acc1_ref[...] = p1
        acc3_ref[...] = p3

    @pl.when(k > 0)
    def _():
        acc1_ref[...] += p1
        acc3_ref[...] += p3

    @pl.when(k == pl.num_programs(2) - 1)
    def _():
        g1 = acc1_ref[...]
        sig = pl.reciprocal(1.0 + jnp.exp(-g1), approx=True)   # EUP path
        o_ref[...] = (g1 * sig * acc3_ref[...]).astype(o_ref.dtype)


def swiglu_norm(x, s, g, w1, w3):
    # TODO(synk): hidden dim (85 here) is not a multiple of 128 -> lane-sparse
    # stores; padding hidden to 128 at the model level would make this denser.
    M, K = x.shape
    _, N = w1.shape
    tm, tn, tk = _mm_tiles(M, N, K, x.dtype.itemsize, n_acc=2)
    grid = (M // tm, N // tn, K // tk)
    x_spec = pl.BlockSpec((tm, tk), lambda i, j, k: (i, k))
    w_spec = pl.BlockSpec((tk, tn), lambda i, j, k: (k, j))
    return pl.pallas_call(
        _swiglu_norm_kernel,
        out_shape=jax.ShapeDtypeStruct((M, N), x.dtype),
        grid=grid,
        in_specs=[x_spec,
                  pl.BlockSpec((tm, 1), lambda i, j, k: (i, 0)),
                  pl.BlockSpec((1, tk), lambda i, j, k: (0, k)),
                  w_spec, w_spec],
        out_specs=pl.BlockSpec((tm, tn), lambda i, j, k: (i, j)),
        scratch_shapes=[pltpu.VMEM((tm, tn), jnp.float32),
                        pltpu.VMEM((tm, tn), jnp.float32)],
        compiler_params=_cp(("parallel", "parallel", "arbitrary")),
    )(x, s, g.reshape(1, K), w1, w3)


# ---------------------------------------------------------------------------
# Causal flash attention reading straight from the packed qkv buffer.
#   qkv5 : (B, T, 3, H, Dh)  (a free view of the (B*T, 3C) c_attn output)
#   out  : (B, T, C)         (heads written to their final column slots)
# ---------------------------------------------------------------------------
def _flash_kernel(q_ref, k_ref, v_ref, o_ref, m_sc, l_sc, acc_sc, *,
                  scale, n_head, head_dim, tq):
    i = pl.program_id(1)   # q block
    j = pl.program_id(2)   # kv block (innermost)

    @pl.when(j == 0)
    def _():
        m_sc[...] = jnp.full_like(m_sc, -jnp.inf)
        l_sc[...] = jnp.zeros_like(l_sc)
        acc_sc[...] = jnp.zeros_like(acc_sc)

    def scores(h):
        # keep native dtype on the MXU (no up-cast); f32 accumulation
        return lax.dot_general(
            q_ref[:, h, :], k_ref[:, h, :],
            dimension_numbers=(((1,), (1,)), ((), ())),
            preferred_element_type=jnp.float32) * scale

    def update(h, s):
        m_prev = m_sc[h]
        m_new = jnp.maximum(m_prev, s.max(axis=-1, keepdims=True))
        alpha = jnp.exp(m_prev - m_new)
        p = jnp.exp(s - m_new)
        l_sc[h] = alpha * l_sc[h] + p.sum(axis=-1, keepdims=True)
        acc_sc[h] = alpha * acc_sc[h] + jnp.dot(
            p.astype(v_ref.dtype), v_ref[:, h, :],
            preferred_element_type=jnp.float32)
        m_sc[h] = m_new

    # Fully-visible past blocks: no mask needed.
    @pl.when(j < i)
    def _():
        for h in range(n_head):
            update(h, scores(h))

    # Diagonal block: apply the causal mask, then finalize (last contributing
    # block for this q tile since tq == tk; kv index_map is clamped so j > i
    # steps re-use this block and do no work).
    @pl.when(j == i)
    def _():
        row = lax.broadcasted_iota(jnp.int32, (tq, tq), 0)
        col = lax.broadcasted_iota(jnp.int32, (tq, tq), 1)
        mask = col <= row
        for h in range(n_head):
            update(h, jnp.where(mask, scores(h), -jnp.inf))
            inv = pl.reciprocal(l_sc[h], approx=True)
            o_ref[:, h * head_dim:(h + 1) * head_dim] = (
                acc_sc[h] * inv).astype(o_ref.dtype)


def flash_attention(qkv5):
    """qkv5: (B, T, 3, H, Dh) packed c_attn output. Returns (B, T, C)."""
    B, T, _, H, Dh = qkv5.shape
    C = H * Dh
    scale = 1.0 / math.sqrt(Dh)
    tq = _flash_q_tile(T, C, H, Dh, qkv5.dtype.itemsize)
    grid = (B, T // tq, T // tq)

    q_spec = pl.BlockSpec((None, tq, None, H, Dh),
                          lambda b, i, j: (b, i, 0, 0, 0))
    # Clamp to min(i, j): causally-future kv blocks repeat the diagonal block
    # index, so Pallas skips their DMA entirely.
    k_spec = pl.BlockSpec((None, tq, None, H, Dh),
                          lambda b, i, j: (b, jnp.minimum(i, j), 1, 0, 0))
    v_spec = pl.BlockSpec((None, tq, None, H, Dh),
                          lambda b, i, j: (b, jnp.minimum(i, j), 2, 0, 0))
    o_spec = pl.BlockSpec((None, tq, C), lambda b, i, j: (b, i, 0))

    return pl.pallas_call(
        functools.partial(_flash_kernel, scale=scale, n_head=H,
                          head_dim=Dh, tq=tq),
        out_shape=jax.ShapeDtypeStruct((B, T, C), qkv5.dtype),
        grid=grid,
        in_specs=[q_spec, k_spec, v_spec],
        out_specs=o_spec,
        scratch_shapes=[pltpu.VMEM((H, tq, 1), jnp.float32),
                        pltpu.VMEM((H, tq, 1), jnp.float32),
                        pltpu.VMEM((H, tq, Dh), jnp.float32)],
        compiler_params=_cp(("parallel", "parallel", "arbitrary")),
    )(qkv5, qkv5, qkv5)


# ---------------------------------------------------------------------------
# Block forward
# ---------------------------------------------------------------------------
def block_forward(x, params, *, n_head, eps):
    # TODO(synk): dropout (training mode) not implemented; eval semantics (identity).
    B, T, C = x.shape
    Dh = C // n_head
    x2d = x.reshape(B * T, C)

    # --- attention branch: x = x + c_proj(attn(c_attn(rmsnorm(x)))) ---
    s1 = rms_scale(x2d, eps)                                   # (B*T, 1) f32
    qkv = matmul_norm(x2d, s1, params["ln1_w"], params["w_attn"])  # (B*T, 3C)
    qkv5 = qkv.reshape(B, T, 3, n_head, Dh)                    # free view
    y = flash_attention(qkv5)                                  # (B, T, C)
    x2d = matmul_res(y.reshape(B * T, C), params["w_proj"], x2d)

    # --- feed-forward branch: x = x + w2(silu(w1(h)) * w3(h)), h = rmsnorm(x) ---
    s2 = rms_scale(x2d, eps)
    ff = swiglu_norm(x2d, s2, params["ln2_w"], params["w1"], params["w3"])
    x2d = matmul_res(ff, params["w2"], x2d)

    return x2d.reshape(B, T, C)


# ---------------------------------------------------------------------------
# Pure-JAX reference mirroring the PyTorch forward
# ---------------------------------------------------------------------------
def _block_ref(x, params, *, n_head, eps):
    B, T, C = x.shape
    Dh = C // n_head

    def rms(h, w):
        hf = h.astype(jnp.float32)
        inv = lax.rsqrt(jnp.mean(hf * hf, axis=-1, keepdims=True) + eps)
        return (hf * inv * w.astype(jnp.float32)).astype(h.dtype)

    h = rms(x, params["ln1_w"])
    qkv = h @ params["w_attn"]
    q, k, v = jnp.split(qkv, 3, axis=-1)
    q = q.reshape(B, T, n_head, Dh).transpose(0, 2, 1, 3)
    k = k.reshape(B, T, n_head, Dh).transpose(0, 2, 1, 3)
    v = v.reshape(B, T, n_head, Dh).transpose(0, 2, 1, 3)

    s = (q @ jnp.swapaxes(k, -1, -2)) * (1.0 / math.sqrt(Dh))
    mask = jnp.tril(jnp.ones((T, T), dtype=bool))
    s = jnp.where(mask[None, None], s, -jnp.inf)
    a = jax.nn.softmax(s, axis=-1)
    y = (a @ v).transpose(0, 2, 1, 3).reshape(B, T, C)
    x = x + y @ params["w_proj"]

    h2 = rms(x, params["ln2_w"])
    ff = (jax.nn.silu(h2 @ params["w1"]) * (h2 @ params["w3"])) @ params["w2"]
    return x + ff


if __name__ == "__main__":
    B, T, C, n_head = 2, 8, 32, 4
    hidden = int(2 * (4 * C) / 3)                 # = 85, matches FeedForward
    eps = float(jnp.finfo(jnp.float32).eps)       # nn.RMSNorm(eps=None) default

    key = jax.random.PRNGKey(0)
    ks = jax.random.split(key, 8)
    params = {
        "ln1_w": 1.0 + 0.1 * jax.random.normal(ks[0], (C,), jnp.float32),
        "ln2_w": 1.0 + 0.1 * jax.random.normal(ks[1], (C,), jnp.float32),
        "w_attn": jax.random.normal(ks[2], (C, 3 * C), jnp.float32) / math.sqrt(C),
        "w_proj": jax.random.normal(ks[3], (C, C), jnp.float32) / math.sqrt(C),
        "w1": jax.random.normal(ks[4], (C, hidden), jnp.float32) / math.sqrt(C),
        "w3": jax.random.normal(ks[5], (C, hidden), jnp.float32) / math.sqrt(C),
        "w2": jax.random.normal(ks[6], (hidden, C), jnp.float32) / math.sqrt(hidden),
    }
    x = jax.random.normal(ks[7], (B, T, C), jnp.float32)

    fwd = jax.jit(functools.partial(block_forward, n_head=n_head, eps=eps))
    out = fwd(x, params)
    jax.block_until_ready(out)

    with jax.default_matmul_precision("highest"):
        ref = _block_ref(x, params, n_head=n_head, eps=eps)

    err = float(jnp.max(jnp.abs(out - ref)))
    assert err < 2e-2, f"max abs error {err}"
    print("KERNEL_OK")
</pallas_src>

<mosaic_0001>
module attributes {stable_mosaic.version = 11 : i64} {
  func.func @_mm_norm_kernel(%arg0: i32, %arg1: i32, %arg2: i32, %arg3: memref<8x32xf32, #tpu.memory_space<vmem>>, %arg4: memref<8x1xf32, #tpu.memory_space<vmem>>, %arg5: memref<1x32xf32, #tpu.memory_space<vmem>>, %arg6: memref<32x96xf32, #tpu.memory_space<vmem>>, %arg7: memref<8x96xf32, #tpu.memory_space<vmem>>, %arg8: memref<8x96xf32, #tpu.memory_space<vmem>>) attributes {dimension_semantics = [#tpu.dimension_semantics<parallel>, #tpu.dimension_semantics<parallel>, #tpu.dimension_semantics<arbitrary>], iteration_bounds = array<i64: 2, 1, 1>, scalar_prefetch = 0 : i64, scratch_operands = 1 : i64, tpu.core_type = #tpu.core_type<tc>, window_params = [{transform_indices = @transform_0, window_bounds = array<i64: 8, 32>}, {transform_indices = @transform_1, window_bounds = array<i64: 8, 1>}, {transform_indices = @transform_2, window_bounds = array<i64: 1, 32>}, {transform_indices = @transform_3, window_bounds = array<i64: 32, 96>}, {transform_indices = @transform_4, window_bounds = array<i64: 8, 96>}]} {
    %c0 = arith.constant 0 : index
    %c0_0 = arith.constant 0 : index
    %0 = vector.load %arg3[%c0, %c0_0] : memref<8x32xf32, #tpu.memory_space<vmem>>, vector<8x32xf32>
    %c0_1 = arith.constant 0 : index
    %c0_2 = arith.constant 0 : index
    %1 = vector.load %arg4[%c0_1, %c0_2] : memref<8x1xf32, #tpu.memory_space<vmem>>, vector<8x1xf32>
    %2 = vector.broadcast %1 : vector<8x1xf32> to vector<8x32xf32>
    %3 = arith.mulf %0, %2 : vector<8x32xf32>
    %c0_3 = arith.constant 0 : index
    %c0_4 = arith.constant 0 : index
    %4 = vector.load %arg5[%c0_3, %c0_4] : memref<1x32xf32, #tpu.memory_space<vmem>>, vector<1x32xf32>
    %5 = vector.broadcast %4 : vector<1x32xf32> to vector<8x32xf32>
    %6 = arith.mulf %3, %5 : vector<8x32xf32>
    %c0_5 = arith.constant 0 : index
    %c0_6 = arith.constant 0 : index
    %7 = vector.load %arg6[%c0_5, %c0_6] : memref<32x96xf32, #tpu.memory_space<vmem>>, vector<32x96xf32>
    %cst = arith.constant dense<0.000000e+00> : vector<8x96xf32>
    %8 = tpu.matmul %6, %7, %cst {dimension_numbers = #tpu.dot_dimension_numbers<[1], [0], [0], [1], [0, 0, 1, 1], [], []>} : vector<8x32xf32>, vector<32x96xf32>, vector<8x96xf32> -> vector<8x96xf32>
    %c0_i32 = arith.constant 0 : i32
    %9 = arith.cmpi eq, %arg2, %c0_i32 : i32
    %10 = arith.extui %9 : i1 to i32
    %c0_i32_7 = arith.constant 0 : i32
    %11 = arith.cmpi ne, %10, %c0_i32_7 : i32
    scf.if %11 {
      %c0_12 = arith.constant 0 : index
      %c0_13 = arith.constant 0 : index
      %18 = vector.load %arg8[%c0_12, %c0_13] : memref<8x96xf32, #tpu.memory_space<vmem>>, vector<8x96xf32>
      tpu.vector_store %arg8[%c0_12, %c0_13], %8 {strides = array<i32>} : memref<8x96xf32, #tpu.memory_space<vmem>>, vector<8x96xf32>,
    } else {
    }
    %c0_i32_8 = arith.constant 0 : i32
    %12 = arith.cmpi sgt, %arg2, %c0_i32_8 : i32
    %13 = arith.extui %12 : i1 to i32
    %c0_i32_9 = arith.constant 0 : i32
    %14 = arith.cmpi ne, %13, %c0_i32_9 : i32
    scf.if %14 {
      %c0_12 = arith.constant 0 : index
      %c0_13 = arith.constant 0 : index
      %18 = vector.load %arg8[%c0_12, %c0_13] : memref<8x96xf32, #tpu.memory_space<vmem>>, vector<8x96xf32>
      %19 = arith.addf %18, %8 : vector<8x96xf32>
      %c0_14 = arith.constant 0 : index
      %c0_15 = arith.constant 0 : index
      %20 = vector.load %arg8[%c0_14, %c0_15] : memref<8x96xf32, #tpu.memory_space<vmem>>, vector<8x96xf32>
      tpu.vector_store %arg8[%c0_14, %c0_15], %19 {strides = array<i32>} : memref<8x96xf32, #tpu.memory_space<vmem>>, vector<8x96xf32>,
    } else {
    }
    %c0_i32_10 = arith.constant 0 : i32
    %15 = arith.cmpi eq, %arg2, %c0_i32_10 : i32
    %16 = arith.extui %15 : i1 to i32
    %c0_i32_11 = arith.constant 0 : i32
    %17 = arith.cmpi ne, %16, %c0_i32_11 : i32
    scf.if %17 {
      %c0_12 = arith.constant 0 : index
      %c0_13 = arith.constant 0 : index
      %18 = vector.load %arg8[%c0_12, %c0_13] : memref<8x96xf32, #tpu.memory_space<vmem>>, vector<8x96xf32>
      %c0_14 = arith.constant 0 : index
      %c0_15 = arith.constant 0 : index
      %19 = vector.load %arg7[%c0_14, %c0_15] : memref<8x96xf32, #tpu.memory_space<vmem>>, vector<8x96xf32>
      tpu.vector_store %arg7[%c0_14, %c0_15], %18 {strides = array<i32>} : memref<8x96xf32, #tpu.memory_space<vmem>>, vector<8x96xf32>,
    } else {
    }
    return
  }
  func.func @transform_0(%arg0: i32, %arg1: i32, %arg2: i32) -> (i32, i32) {
    %c0_i32 = arith.constant 0 : i32
    return %arg0, %arg2 : i32, i32
  }
  func.func @transform_1(%arg0: i32, %arg1: i32, %arg2: i32) -> (i32, i32) {
    %c0_i32 = arith.constant 0 : i32
    %c0_i32_0 = arith.constant 0 : i32
    return %arg0, %c0_i32 : i32, i32
  }
  func.func @transform_2(%arg0: i32, %arg1: i32, %arg2: i32) -> (i32, i32) {
    %c0_i32 = arith.constant 0 : i32
    %c0_i32_0 = arith.constant 0 : i32
    return %c0_i32, %arg2 : i32, i32
  }
  func.func @transform_3(%arg0: i32, %arg1: i32, %arg2: i32) -> (i32, i32) {
    %c0_i32 = arith.constant 0 : i32
    return %arg2, %arg1 : i32, i32
  }
  func.func @transform_4(%arg0: i32, %arg1: i32, %arg2: i32) -> (i32, i32) {
    %c0_i32 = arith.constant 0 : i32
    return %arg0, %arg1 : i32, i32
  }
}

module attributes {stable_mosaic.version = 11 : i64} {
  func.func @_rms_scale_kernel(%arg0: i32, %arg1: memref<8x32xf32, #tpu.memory_space<vmem>>, %arg2: memref<8x1xf32, #tpu.memory_space<vmem>>) attributes {dimension_semantics = [#tpu.dimension_semantics<parallel>], iteration_bounds = array<i64: 2>, scalar_prefetch = 0 : i64, scratch_operands = 0 : i64, tpu.core_type = #tpu.core_type<tc>, window_params = [{transform_indices = @transform_0, window_bounds = array<i64: 8, 32>}, {transform_indices = @transform_1, window_bounds = array<i64: 8, 1>}]} {
    %c0 = arith.constant 0 : index
    %c0_0 = arith.constant 0 : index
    %0 = vector.load %arg1[%c0, %c0_0] : memref<8x32xf32, #tpu.memory_space<vmem>>, vector<8x32xf32>
    %1 = arith.mulf %0, %0 : vector<8x32xf32>
    %cst = arith.constant dense<0.000000e+00> : vector<8xf32>
    %2 = vector.multi_reduction <add>, %1, %cst [1] : vector<8x32xf32> to vector<8xf32>
    %3 = vector.shape_cast %2 : vector<8xf32> to vector<8x1xf32>
    %cst_1 = arith.constant 3.200000e+01 : f32
    %4 = vector.broadcast %cst_1 : f32 to vector<8x1xf32>
    %5 = arith.divf %3, %4 : vector<8x1xf32>
    %cst_2 = arith.constant 1.1920929E-7 : f32
    %6 = vector.broadcast %cst_2 : f32 to vector<8x1xf32>
    %7 = arith.addf %5, %6 : vector<8x1xf32>
    %8 = math.rsqrt %7 : vector<8x1xf32>
    %c0_3 = arith.constant 0 : index
    %c0_4 = arith.constant 0 : index
    %9 = vector.load %arg2[%c0_3, %c0_4] : memref<8x1xf32, #tpu.memory_space<vmem>>, vector<8x1xf32>
    tpu.vector_store %arg2[%c0_3, %c0_4], %8 {strides = array<i32>} : memref<8x1xf32, #tpu.memory_space<vmem>>, vector<8x1xf32>,
    return
  }
  func.func @transform_0(%arg0: i32) -> (i32, i32) {
    %c0_i32 = arith.constant 0 : i32
    %c0_i32_0 = arith.constant 0 : i32
    return %arg0, %c0_i32 : i32, i32
  }
  func.func @transform_1(%arg0: i32) -> (i32, i32) {
    %c0_i32 = arith.constant 0 : i32
    %c0_i32_0 = arith.constant 0 : i32
    return %arg0, %c0_i32 : i32, i32
  }
}

module attributes {stable_mosaic.version = 11 : i64} {
  func.func @_flash_kernel(%arg0: i32, %arg1: i32, %arg2: i32, %arg3: memref<1x8x1x4x8xf32, #tpu.memory_space<vmem>>, %arg4: memref<1x8x1x4x8xf32, #tpu.memory_space<vmem>>, %arg5: memref<1x8x1x4x8xf32, #tpu.memory_space<vmem>>, %arg6: memref<1x8x32xf32, #tpu.memory_space<vmem>>, %arg7: memref<4x8x1xf32, #tpu.memory_space<vmem>>, %arg8: memref<4x8x1xf32, #tpu.memory_space<vmem>>, %arg9: memref<4x8x8xf32, #tpu.memory_space<vmem>>) attributes {dimension_semantics = [#tpu.dimension_semantics<parallel>, #tpu.dimension_semantics<parallel>, #tpu.dimension_semantics<arbitrary>], iteration_bounds = array<i64: 2, 1, 1>, scalar_prefetch = 0 : i64, scratch_operands = 3 : i64, tpu.core_type = #tpu.core_type<tc>, window_params = [{transform_indices = @transform_0, window_bounds = array<i64: 1, 8, 1, 4, 8>}, {transform_indices = @transform_1, window_bounds = array<i64: 1, 8, 1, 4, 8>}, {transform_indices = @transform_2, window_bounds = array<i64: 1, 8, 1, 4, 8>}, {transform_indices = @transform_3, window_bounds = array<i64: 1, 8, 32>}]} {
    %c0_i32 = arith.constant 0 : i32
    %0 = arith.cmpi eq, %arg2, %c0_i32 : i32
    %1 = arith.extui %0 : i1 to i32
    %c0_i32_0 = arith.constant 0 : i32
    %2 = arith.cmpi ne, %1, %c0_i32_0 : i32
    scf.if %2 {
      %cst = arith.constant 0xFF800000 : f32
      %9 = vector.broadcast %cst : f32 to vector<4x8x1xf32>
      %c0 = arith.constant 0 : index
      %c0_3 = arith.constant 0 : index
      %c0_4 = arith.constant 0 : index
      %10 = vector.load %arg7[%c0, %c0_3, %c0_4] : memref<4x8x1xf32, #tpu.memory_space<vmem>>, vector<4x8x1xf32>
      tpu.vector_store %arg7[%c0, %c0_3, %c0_4], %9 {strides = array<i32>} : memref<4x8x1xf32, #tpu.memory_space<vmem>>, vector<4x8x1xf32>,
      %cst_5 = arith.constant 0.000000e+00 : f32
      %11 = vector.broadcast %cst_5 : f32 to vector<4x8x1xf32>
      %c0_6 = arith.constant 0 : index
      %c0_7 = arith.constant 0 : index
      %c0_8 = arith.constant 0 : index
      %12 = vector.load %arg8[%c0_6, %c0_7, %c0_8] : memref<4x8x1xf32, #tpu.memory_space<vmem>>, vector<4x8x1xf32>
      tpu.vector_store %arg8[%c0_6, %c0_7, %c0_8], %11 {strides = array<i32>} : memref<4x8x1xf32, #tpu.memory_space<vmem>>, vector<4x8x1xf32>,
      %cst_9 = arith.constant 0.000000e+00 : f32
      %13 = vector.broadcast %cst_9 : f32 to vector<4x8x8xf32>
      %c0_10 = arith.constant 0 : index
      %c0_11 = arith.constant 0 : index
      %c0_12 = arith.constant 0 : index
      %14 = vector.load %arg9[%c0_10, %c0_11, %c0_12] : memref<4x8x8xf32, #tpu.memory_space<vmem>>, vector<4x8x8xf32>
      tpu.vector_store %arg9[%c0_10, %c0_11, %c0_12], %13 {strides = array<i32>} : memref<4x8x8xf32, #tpu.memory_space<vmem>>, vector<4x8x8xf32>,
    } else {
    }
    %3 = arith.cmpi slt, %arg2, %arg1 : i32
    %4 = arith.extui %3 : i1 to i32
    %c0_i32_1 = arith.constant 0 : i32
    %5 = arith.cmpi ne, %4, %c0_i32_1 : i32
    scf.if %5 {
      %c0 = arith.constant 0 : index
      %c0_3 = arith.constant 0 : index
      %c0_4 = arith.constant 0 : index
      %c0_5 = arith.constant 0 : index
      %c0_6 = arith.constant 0 : index
      %9 = vector.load %arg3[%c0, %c0_3, %c0_4, %c0_5, %c0_6] : memref<1x8x1x4x8xf32, #tpu.memory_space<vmem>>, vector<1x8x1x1x8xf32>
      %10 = vector.shape_cast %9 : vector<1x8x1x1x8xf32> to vector<8x8xf32>
      %c0_7 = arith.constant 0 : index
      %c0_8 = arith.constant 0 : index
      %c0_9 = arith.constant 0 : index
      %c0_10 = arith.constant 0 : index
      %c0_11 = arith.constant 0 : index
      %11 = vector.load %arg4[%c0_7, %c0_8, %c0_9, %c0_10, %c0_11] : memref<1x8x1x4x8xf32, #tpu.memory_space<vmem>>, vector<1x8x1x1x8xf32>
      %12 = vector.shape_cast %11 : vector<1x8x1x1x8xf32> to vector<8x8xf32>
      %cst = arith.constant dense<0.000000e+00> : vector<8x8xf32>
      %13 = tpu.matmul %10, %12, %cst {dimension_numbers = #tpu.dot_dimension_numbers<[1], [1], [0], [0], [0, 0, 1, 0], [], []>} : vector<8x8xf32>, vector<8x8xf32>, vector<8x8xf32> -> vector<8x8xf32>
      %cst_12 = arith.constant 0.353553385 : f32
      %14 = vector.broadcast %cst_12 : f32 to vector<8x8xf32>
      %15 = arith.mulf %13, %14 : vector<8x8xf32>
      %c0_13 = arith.constant 0 : index
      %c0_14 = arith.constant 0 : index
      %c0_15 = arith.constant 0 : index
      %16 = vector.load %arg7[%c0_13, %c0_14, %c0_15] : memref<4x8x1xf32, #tpu.memory_space<vmem>>, vector<1x8x1xf32>
      %17 = vector.shape_cast %16 : vector<1x8x1xf32> to vector<8x1xf32>
      %cst_16 = arith.constant dense<0xFF800000> : vector<8xf32>
      %18 = vector.multi_reduction <maximumf>, %15, %cst_16 [1] : vector<8x8xf32> to vector<8xf32>
      %19 = vector.shape_cast %18 : vector<8xf32> to vector<8x1xf32>
      %20 = arith.maximumf %17, %19 : vector<8x1xf32>
      %21 = arith.subf %17, %20 : vector<8x1xf32>
      %22 = math.exp %21 : vector<8x1xf32>
      %23 = vector.broadcast %20 : vector<8x1xf32> to vector<8x8xf32>
      %24 = arith.subf %15, %23 : vector<8x8xf32>
      %25 = math.exp %24 : vector<8x8xf32>
      %c0_17 = arith.constant 0 : index
      %c0_18 = arith.constant 0 : index
      %c0_19 = arith.constant 0 : index
      %26 = vector.load %arg8[%c0_17, %c0_18, %c0_19] : memref<4x8x1xf32, #tpu.memory_space<vmem>>, vector<1x8x1xf32>
      %27 = vector.shape_cast %26 : vector<1x8x1xf32> to vector<8x1xf32>
      %28 = arith.mulf %22, %27 : vector<8x1xf32>
      %cst_20 = arith.constant dense<0.000000e+00> : vector<8xf32>
      %29 = vector.multi_reduction <add>, %25, %cst_20 [1] : vector<8x8xf32> to vector<8xf32>
      %30 = vector.shape_cast %29 : vector<8xf32> to vector<8x1xf32>
      %31 = arith.addf %28, %30 : vector<8x1xf32>
      %c0_21 = arith.constant 0 : index
      %c0_22 = arith.constant 0 : index
      %c0_23 = arith.constant 0 : index
      %32 = vector.load %arg8[%c0_21, %c0_22, %c0_23] : memref<4x8x1xf32, #tpu.memory_space<vmem>>, vector<1x8x1xf32>
      %33 = vector.shape_cast %32 : vector<1x8x1xf32> to vector<8x1xf32>
      %34 = vector.shape_cast %31 : vector<8x1xf32> to vector<1x8x1xf32>
      tpu.vector_store %arg8[%c0_21, %c0_22, %c0_23], %34 {strides = array<i32>} : memref<4x8x1xf32, #tpu.memory_space<vmem>>, vector<1x8x1xf32>,
      %c0_24 = arith.constant 0 : index
      %c0_25 = arith.constant 0 : index
      %c0_26 = arith.constant 0 : index
      %35 = vector.load %arg9[%c0_24, %c0_25, %c0_26] : memref<4x8x8xf32, #tpu.memory_space<vmem>>, vector<1x8x8xf32>
      %36 = vector.shape_cast %35 : vector<1x8x8xf32> to vector<8x8xf32>
      %37 = vector.broadcast %22 : vector<8x1xf32> to vector<8x8xf32>
      %38 = arith.mulf %37, %36 : vector<8x8xf32>
      %c0_27 = arith.constant 0 : index
      %c0_28 = arith.constant 0 : index
      %c0_29 = arith.constant 0 : index
      %c0_30 = arith.constant 0 : index
      %c0_31 = arith.constant 0 : index
      %39 = vector.load %arg5[%c0_27, %c0_28, %c0_29, %c0_30, %c0_31] : memref<1x8x1x4x8xf32, #tpu.memory_space<vmem>>, vector<1x8x1x1x8xf32>
      %40 = vector.shape_cast %39 : vector<1x8x1x1x8xf32> to vector<8x8xf32>
      %cst_32 = arith.constant dense<0.000000e+00> : vector<8x8xf32>
      %41 = tpu.matmul %25, %40, %cst_32 {dimension_numbers = #tpu.dot_dimension_numbers<[1], [0], [0], [1], [0, 0, 1, 1], [], []>} : vector<8x8xf32>, vector<8x8xf32>, vector<8x8xf32> -> vector<8x8xf32>
      %42 = arith.addf %38, %41 : vector<8x8xf32>
      %c0_33 = arith.constant 0 : index
      %c0_34 = arith.constant 0 : index
      %c0_35 = arith.constant 0 : index
      %43 = vector.load %arg9[%c0_33, %c0_34, %c0_35] : memref<4x8x8xf32, #tpu.memory_space<vmem>>, vector<1x8x8xf32>
      %44 = vector.shape_cast %43 : vector<1x8x8xf32> to vector<8x8xf32>
      %45 = vector.shape_cast %42 : vector<8x8xf32> to vector<1x8x8xf32>
      tpu.vector_store %arg9[%c0_33, %c0_34, %c0_35], %45 {strides = array<i32>} : memref<4x8x8xf32, #tpu.memory_space<vmem>>, vector<1x8x8xf32>,
      %c0_36 = arith.constant 0 : index
      %c0_37 = arith.constant 0 : index
      %c0_38 = arith.constant 0 : index
      %46 = vector.load %arg7[%c0_36, %c0_37, %c0_38] : memref<4x8x1xf32, #tpu.memory_space<vmem>>, vector<1x8x1xf32>
      %47 = vector.shape_cast %46 : vector<1x8x1xf32> to vector<8x1xf32>
      %48 = vector.shape_cast %20 : vector<8x1xf32> to vector<1x8x1xf32>
      tpu.vector_store %arg7[%c0_36, %c0_37, %c0_38], %48 {strides = array<i32>} : memref<4x8x1xf32, #tpu.memory_space<vmem>>, vector<1x8x1xf32>,
      %c0_39 = arith.constant 0 : index
      %c0_40 = arith.constant 0 : index
      %c0_41 = arith.constant 0 : index
      %c1 = arith.constant 1 : index
      %c0_42 = arith.constant 0 : index
      %49 = vector.load %arg3[%c0_39, %c0_40, %c0_41, %c1, %c0_42] : memref<1x8x1x4x8xf32, #tpu.memory_space<vmem>>, vector<1x8x1x1x8xf32>
      %50 = vector.shape_cast %49 : vector<1x8x1x1x8xf32> to vector<8x8xf32>
      %c0_43 = arith.constant 0 : index
      %c0_44 = arith.constant 0 : index
      %c0_45 = arith.constant 0 : index
      %c1_46 = arith.constant 1 : index
      %c0_47 = arith.constant 0 : index
      %51 = vector.load %arg4[%c0_43, %c0_44, %c0_45, %c1_46, %c0_47] : memref<1x8x1x4x8xf32, #tpu.memory_space<vmem>>, vector<1x8x1x1x8xf32>
      %52 = vector.shape_cast %51 : vector<1x8x1x1x8xf32> to vector<8x8xf32>
      %cst_48 = arith.constant dense<0.000000e+00> : vector<8x8xf32>
      %53 = tpu.matmul %50, %52, %cst_48 {dimension_numbers = #tpu.dot_dimension_numbers<[1], [1], [0], [0], [0, 0, 1, 0], [], []>} : vector<8x8xf32>, vector<8x8xf32>, vector<8x8xf32> -> vector<8x8xf32>
      %cst_49 = arith.constant 0.353553385 : f32
      %54 = vector.broadcast %cst_49 : f32 to vector<8x8xf32>
      %55 = arith.mulf %53, %54 : vector<8x8xf32>
      %c1_50 = arith.constant 1 : index
      %c0_51 = arith.constant 0 : index
      %c0_52 = arith.constant 0 : index
      %56 = vector.load %arg7[%c1_50, %c0_51, %c0_52] : memref<4x8x1xf32, #tpu.memory_space<vmem>>, vector<1x8x1xf32>
      %57 = vector.shape_cast %56 : vector<1x8x1xf32> to vector<8x1xf32>
      %cst_53 = arith.constant dense<0xFF800000> : vector<8xf32>
      %58 = vector.multi_reduction <maximumf>, %55, %cst_53 [1] : vector<8x8xf32> to vector<8xf32>
      %59 = vector.shape_cast %58 : vector<8xf32> to vector<8x1xf32>
      %60 = arith.maximumf %57, %59 : vector<8x1xf32>
      %61 = arith.subf %57, %60 : vector<8x1xf32>
      %62 = math.exp %61 : vector<8x1xf32>
      %63 = vector.broadcast %60 : vector<8x1xf32> to vector<8x8xf32>
      %64 = arith.subf %55, %63 : vector<8x8xf32>
      %65 = math.exp %64 : vector<8x8xf32>
      %c1_54 = arith.constant 1 : index
      %c0_55 = arith.constant 0 : index
      %c0_56 = arith.constant 0 : index
      %66 = vector.load %arg8[%c1_54, %c0_55, %c0_56] : memref<4x8x1xf32, #tpu.memory_space<vmem>>, vector<1x8x1xf32>
      %67 = vector.shape_cast %66 : vector<1x8x1xf32> to vector<8x1xf32>
      %68 = arith.mulf %62, %67 : vector<8x1xf32>
      %cst_57 = arith.constant dense<0.000000e+00> : vector<8xf32>
      %69 = vector.multi_reduction <add>, %65, %cst_57 [1] : vector<8x8xf32> to vector<8xf32>
      %70 = vector.shape_cast %69 : vector<8xf32> to vector<8x1xf32>
      %71 = arith.addf %68, %70 : vector<8x1xf32>
      %c1_58 = arith.constant 1 : index
      %c0_59 = arith.constant 0 : index
      %c0_60 = arith.constant 0 : index
      %72 = vector.load %arg8[%c1_58, %c0_59, %c0_60] : memref<4x8x1xf32, #tpu.memory_space<vmem>>, vector<1x8x1xf32>
      %73 = vector.shape_cast %72 : vector<1x8x1xf32> to vector<8x1xf32>
      %74 = vector.shape_cast %71 : vector<8x1xf32> to vector<1x8x1xf32>
      tpu.vector_store %arg8[%c1_58, %c0_59, %c0_60], %74 {strides = array<i32>} : memref<4x8x1xf32, #tpu.memory_space<vmem>>, vector<1x8x1xf32>,
      %c1_61 = arith.constant 1 : index
      %c0_62 = arith.constant 0 : index
      %c0_63 = arith.constant 0 : index
      %75 = vector.load %arg9[%c1_61, %c0_62, %c0_63] : memref<4x8x8xf32, #tpu.memory_space<vmem>>, vector<1x8x8xf32>
      %76 = vector.shape_cast %75 : vector<1x8x8xf32> to vector<8x8xf32>
      %77 = vector.broadcast %62 : vector<8x1xf32> to vector<8x8xf32>
      %78 = arith.mulf %77, %76 : vector<8x8xf32>
      %c0_64 = arith.constant 0 : index
      %c0_65 = arith.constant 0 : index
      %c0_66 = arith.constant 0 : index
      %c1_67 = arith.constant 1 : index
      %c0_68 = arith.constant 0 : index
      %79 = vector.load %arg5[%c0_64, %c0_65, %c0_66, %c1_67, %c0_68] : memref<1x8x1x4x8xf32, #tpu.memory_space<vmem>>, vector<1x8x1x1x8xf32>
      %80 = vector.shape_cast %79 : vector<1x8x1x1x8xf32> to vector<8x8xf32>
      %cst_69 = arith.constant dense<0.000000e+00> : vector<8x8xf32>
      %81 = tpu.matmul %65, %80, %cst_69 {dimension_numbers = #tpu.dot_dimension_numbers<[1], [0], [0], [1], [0, 0, 1, 1], [], []>} : vector<8x8xf32>, vector<8x8xf32>, vector<8x8xf32> -> vector<8x8xf32>
      %82 = arith.addf %78, %81 : vector<8x8xf32>
      %c1_70 = arith.constant 1 : index
      %c0_71 = arith.constant 0 : index
      %c0_72 = arith.constant 0 : index
      %83 = vector.load %arg9[%c1_70, %c0_71, %c0_72] : memref<4x8x8xf32, #tpu.memory_space<vmem>>, vector<1x8x8xf32>
      %84 = vector.shape_cast %83 : vector<1x8x8xf32> to vector<8x8xf32>
      %85 = vector.shape_cast %82 : vector<8x8xf32> to vector<1x8x8xf32>
      tpu.vector_store %arg9[%c1_70, %c0_71, %c0_72], %85 {strides = array<i32>} : memref<4x8x8xf32, #tpu.memory_space<vmem>>, vector<1x8x8xf32>,
      %c1_73 = arith.constant 1 : index
      %c0_74 = arith.constant 0 : index
      %c0_75 = arith.constant 0 : index
      %86 = vector.load %arg7[%c1_73, %c0_74, %c0_75] : memref<4x8x1xf32, #tpu.memory_space<vmem>>, vector<1x8x1xf32>
      %87 = vector.shape_cast %86 : vector<1x8x1xf32> to vector<8x1xf32>
      %88 = vector.shape_cast %60 : vector<8x1xf32> to vector<1x8x1xf32>
      tpu.vector_store %arg7[%c1_73, %c0_74, %c0_75], %88 {strides = array<i32>} : memref<4x8x1xf32, #tpu.memory_space<vmem>>, vector<1x8x1xf32>,
      %c0_76 = arith.constant 0 : index
      %c0_77 = arith.constant 0 : index
      %c0_78 = arith.constant 0 : index
      %c2 = arith.constant 2 : index
      %c0_79 = arith.constant 0 : index
      %89 = vector.load %arg3[%c0_76, %c0_77, %c0_78, %c2, %c0_79] : memref<1x8x1x4x8xf32, #tpu.memory_space<vmem>>, vector<1x8x1x1x8xf32>
      %90 = vector.shape_cast %89 : vector<1x8x1x1x8xf32> to vector<8x8xf32>
      %c0_80 = arith.constant 0 : index
      %c0_81 = arith.constant 0 : index
      %c0_82 = arith.constant 0 : index
      %c2_83 = arith.constant 2 : index
      %c0_84 = arith.constant 0 : index
      %91 = vector.load %arg4[%c0_80, %c0_81, %c0_82, %c2_83, %c0_84] : memref<1x8x1x4x8xf32, #tpu.memory_space<vmem>>, vector<1x8x1x1x8xf32>
      %92 = vector.shape_cast %91 : vector<1x8x1x1x8xf32> to vector<8x8xf32>
      %cst_85 = arith.constant dense<0.000000e+00> : vector<8x8xf32>
      %93 = tpu.matmul %90, %92, %cst_85 {dimension_numbers = #tpu.dot_dimension_numbers<[1], [1], [0], [0], [0, 0, 1, 0], [], []>} : vector<8x8xf32>, vector<8x8xf32>, vector<8x8xf32> -> vector<8x8xf32>
      %cst_86 = arith.constant 0.353553385 : f32
      %94 = vector.broadcast %cst_86 : f32 to vector<8x8xf32>
      %95 = arith.mulf %93, %94 : vector<8x8xf32>
      %c2_87 = arith.constant 2 : index
      %c0_88 = arith.constant 0 : index
      %c0_89 = arith.constant 0 : index
      %96 = vector.load %arg7[%c2_87, %c0_88, %c0_89] : memref<4x8x1xf32, #tpu.memory_space<vmem>>, vector<1x8x1xf32>
      %97 = vector.shape_cast %96 : vector<1x8x1xf32> to vector<8x1xf32>
      %cst_90 = arith.constant dense<0xFF800000> : vector<8xf32>
      %98 = vector.multi_reduction <maximumf>, %95, %cst_90 [1] : vector<8x8xf32> to vector<8xf32>
      %99 = vector.shape_cast %98 : vector<8xf32> to vector<8x1xf32>
      %100 = arith.maximumf %97, %99 : vector<8x1xf32>
      %101 = arith.subf %97, %100 : vector<8x1xf32>
      %102 = math.exp %101 : vector<8x1xf32>
      %103 = vector.broadcast %100 : vector<8x1xf32> to vector<8x8xf32>
      %104 = arith.subf %95, %103 : vector<8x8xf32>
      %105 = math.exp %104 : vector<8x8xf32>
      %c2_91 = arith.constant 2 : index
      %c0_92 = arith.constant 0 : index
      %c0_93 = arith.constant 0 : index
      %106 = vector.load %arg8[%c2_91, %c0_92, %c0_93] : memref<4x8x1xf32, #tpu.memory_space<vmem>>, vector<1x8x1xf32>
      %107 = vector.shape_cast %106 : vector<1x8x1xf32> to vector<8x1xf32>
      %108 = arith.mulf %102, %107 : vector<8x1xf32>
      %cst_94 = arith.constant dense<0.000000e+00> : vector<8xf32>
      %109 = vector.multi_reduction <add>, %105, %cst_94 [1] : vector<8x8xf32> to vector<8xf32>
      %110 = vector.shape_cast %109 : vector<8xf32> to vector<8x1xf32>
      %111 = arith.addf %108, %110 : vector<8x1xf32>
      %c2_95 = arith.constant 2 : index
      %c0_96 = arith.constant 0 : index
      %c0_97 = arith.constant 0 : index
      %112 = vector.load %arg8[%c2_95, %c0_96, %c0_97] : memref<4x8x1xf32, #tpu.memory_space<vmem>>, vector<1x8x1xf32>
      %113 = vector.shape_cast %112 : vector<1x8x1xf32> to vector<8x1xf32>
      %114 = vector.shape_cast %111 : vector<8x1xf32> to vector<1x8x1xf32>
      tpu.vector_store %arg8[%c2_95, %c0_96, %c0_97], %114 {strides = array<i32>} : memref<4x8x1xf32, #tpu.memory_space<vmem>>, vector<1x8x1xf32>,
      %c2_98 = arith.constant 2 : index
      %c0_99 = arith.constant 0 : index
      %c0_100 = arith.constant 0 : index
      %115 = vector.load %arg9[%c2_98, %c0_99, %c0_100] : memref<4x8x8xf32, #tpu.memory_space<vmem>>, vector<1x8x8xf32>
      %116 = vector.shape_cast %115 : vector<1x8x8xf32> to vector<8x8xf32>
      %117 = vector.broadcast %102 : vector<8x1xf32> to vector<8x8xf32>
      %118 = arith.mulf %117, %116 : vector<8x8xf32>
      %c0_101 = arith.constant 0 : index
      %c0_102 = arith.constant 0 : index
      %c0_103 = arith.constant 0 : index
      %c2_104 = arith.constant 2 : index
      %c0_105 = arith.constant 0 : index
      %119 = vector.load %arg5[%c0_101, %c0_102, %c0_103, %c2_104, %c0_105] : memref<1x8x1x4x8xf32, #tpu.memory_space<vmem>>, vector<1x8x1x1x8xf32>
      %120 = vector.shape_cast %119 : vector<1x8x1x1x8xf32> to vector<8x8xf32>
      %cst_106 = arith.constant dense<0.000000e+00> : vector<8x8xf32>
      %121 = tpu.matmul %105, %120, %cst_106 {dimension_numbers = #tpu.dot_dimension_numbers<[1], [0], [0], [1], [0, 0, 1, 1], [], []>} : vector<8x8xf32>, vector<8x8xf32>, vector<8x8xf32> -> vector<8x8xf32>
      %122 = arith.addf %118, %121 : vector<8x8xf32>
      %c2_107 = arith.constant 2 : index
      %c0_108 = arith.constant 0 : index
      %c0_109 = arith.constant 0 : index
      %123 = vector.load %arg9[%c2_107, %c0_108, %c0_109] : memref<4x8x8xf32, #tpu.memory_space<vmem>>, vector<1x8x8xf32>
      %124 = vector.shape_cast %123 : vector<1x8x8xf32> to vector<8x8xf32>
      %125 = vector.shape_cast %122 : vector<8x8xf32> to vector<1x8x8xf32>
      tpu.vector_store %arg9[%c2_107, %c0_108, %c0_109], %125 {strides = array<i32>} : memref<4x8x8xf32, #tpu.memory_space<vmem>>, vector<1x8x8xf32>,
      %c2_110 = arith.constant 2 : index
      %c0_111 = arith.constant 0 : index
      %c0_112 = arith.constant 0 : index
      %126 = vector.load %arg7[%c2_110, %c0_111, %c0_112] : memref<4x8x1xf32, #tpu.memory_space<vmem>>, vector<1x8x1xf32>
      %127 = vector.shape_cast %126 : vector<1x8x1xf32> to vector<8x1xf32>
      %128 = vector.shape_cast %100 : vector<8x1xf32> to vector<1x8x1xf32>
      tpu.vector_store %arg7[%c2_110, %c0_111, %c0_112], %128 {strides = array<i32>} : memref<4x8x1xf32, #tpu.memory_space<vmem>>, vector<1x8x1xf32>,
      %c0_113 = arith.constant 0 : index
      %c0_114 = arith.constant 0 : index
      %c0_115 = arith.constant 0 : index
      %c3 = arith.constant 3 : index
      %c0_116 = arith.constant 0 : index
      %129 = vector.load %arg3[%c0_113, %c0_114, %c0_115, %c3, %c0_116] : memref<1x8x1x4x8xf32, #tpu.memory_space<vmem>>, vector<1x8x1x1x8xf32>
      %130 = vector.shape_cast %129 : vector<1x8x1x1x8xf32> to vector<8x8xf32>
      %c0_117 = arith.constant 0 : index
      %c0_118 = arith.constant 0 : index
      %c0_119 = arith.constant 0 : index
      %c3_120 = arith.constant 3 : index
      %c0_121 = arith.constant 0 : index
      %131 = vector.load %arg4[%c0_117, %c0_118, %c0_119, %c3_120, %c0_121] : memref<1x8x1x4x8xf32, #tpu.memory_space<vmem>>, vector<1x8x1x1x8xf32>
      %132 = vector.shape_cast %131 : vector<1x8x1x1x8xf32> to vector<8x8xf32>
      %cst_122 = arith.constant dense<0.000000e+00> : vector<8x8xf32>
      %133 = tpu.matmul %130, %132, %cst_122 {dimension_numbers = #tpu.dot_dimension_numbers<[1], [1], [0], [0], [0, 0, 1, 0], [], []>} : vector<8x8xf32>, vector<8x8xf32>, vector<8x8xf32> -> vector<8x8xf32>
      %cst_123 = arith.constant 0.353553385 : f32
      %134 = vector.broadcast %cst_123 : f32 to vector<8x8xf32>
      %135 = arith.mulf %133, %134 : vector<8x8xf32>
      %c3_124 = arith.constant 3 : index
      %c0_125 = arith.constant 0 : index
      %c0_126 = arith.constant 0 : index
      %136 = vector.load %arg7[%c3_124, %c0_125, %c0_126] : memref<4x8x1xf32, #tpu.memory_space<vmem>>, vector<1x8x1xf32>
      %137 = vector.shape_cast %136 : vector<1x8x1xf32> to vector<8x1xf32>
      %cst_127 = arith.constant dense<0xFF800000> : vector<8xf32>
      %138 = vector.multi_reduction <maximumf>, %135, %cst_127 [1] : vector<8x8xf32> to vector<8xf32>
      %139 = vector.shape_cast %138 : vector<8xf32> to vector<8x1xf32>
      %140 = arith.maximumf %137, %139 : vector<8x1xf32>
      %141 = arith.subf %137, %140 : vector<8x1xf32>
      %142 = math.exp %141 : vector<8x1xf32>
      %143 = vector.broadcast %140 : vector<8x1xf32> to vector<8x8xf32>
      %144 = arith.subf %135, %143 : vector<8x8xf32>
      %145 = math.exp %144 : vector<8x8xf32>
      %c3_128 = arith.constant 3 : index
      %c0_129 = arith.constant 0 : index
      %c0_130 = arith.constant 0 : index
      %146 = vector.load %arg8[%c3_128, %c0_129, %c0_130] : memref<4x8x1xf32, #tpu.memory_space<vmem>>, vector<1x8x1xf32>
      %147 = vector.shape_cast %146 : vector<1x8x1xf32> to vector<8x1xf32>
      %148 = arith.mulf %142, %147 : vector<8x1xf32>
      %cst_131 = arith.constant dense<0.000000e+00> : vector<8xf32>
      %149 = vector.multi_reduction <add>, %145, %cst_131 [1] : vector<8x8xf32> to vector<8xf32>
      %150 = vector.shape_cast %149 : vector<8xf32> to vector<8x1xf32>
      %151 = arith.addf %148, %150 : vector<8x1xf32>
      %c3_132 = arith.constant 3 : index
      %c0_133 = arith.constant 0 : index
      %c0_134 = arith.constant 0 : index
      %152 = vector.load %arg8[%c3_132, %c0_133, %c0_134] : memref<4x8x1xf32, #tpu.memory_space<vmem>>, vector<1x8x1xf32>
      %153 = vector.shape_cast %152 : vector<1x8x1xf32> to vector<8x1xf32>
      %154 = vector.shape_cast %151 : vector<8x1xf32> to vector<1x8x1xf32>
      tpu.vector_store %arg8[%c3_132, %c0_133, %c0_134], %154 {strides = array<i32>} : memref<4x8x1xf32, #tpu.memory_space<vmem>>, vector<1x8x1xf32>,
      %c3_135 = arith.constant 3 : index
      %c0_136 = arith.constant 0 : index
      %c0_137 = arith.constant 0 : index
      %155 = vector.load %arg9[%c3_135, %c0_136, %c0_137] : memref<4x8x8xf32, #tpu.memory_space<vmem>>, vector<1x8x8xf32>
      %156 = vector.shape_cast %155 : vector<1x8x8xf32> to vector<8x8xf32>
      %157 = vector.broadcast %142 : vector<8x1xf32> to vector<8x8xf32>
      %158 = arith.mulf %157, %156 : vector<8x8xf32>
      %c0_138 = arith.constant 0 : index
      %c0_139 = arith.constant 0 : index
      %c0_140 = arith.constant 0 : index
      %c3_141 = arith.constant 3 : index
      %c0_142 = arith.constant 0 : index
      %159 = vector.load %arg5[%c0_138, %c0_139, %c0_140, %c3_141, %c0_142] : memref<1x8x1x4x8xf32, #tpu.memory_space<vmem>>, vector<1x8x1x1x8xf32>
      %160 = vector.shape_cast %159 : vector<1x8x1x1x8xf32> to vector<8x8xf32>
      %cst_143 = arith.constant dense<0.000000e+00> : vector<8x8xf32>
      %161 = tpu.matmul %145, %160, %cst_143 {dimension_numbers = #tpu.dot_dimension_numbers<[1], [0], [0], [1], [0, 0, 1, 1], [], []>} : vector<8x8xf32>, vector<8x8xf32>, vector<8x8xf32> -> vector<8x8xf32>
      %162 = arith.addf %158, %161 : vector<8x8xf32>
      %c3_144 = arith.constant 3 : index
      %c0_145 = arith.constant 0 : index
      %c0_146 = arith.constant 0 : index
      %163 = vector.load %arg9[%c3_144, %c0_145, %c0_146] : memref<4x8x8xf32, #tpu.memory_space<vmem>>, vector<1x8x8xf32>
      %164 = vector.shape_cast %163 : vector<1x8x8xf32> to vector<8x8xf32>
      %165 = vector.shape_cast %162 : vector<8x8xf32> to vector<1x8x8xf32>
      tpu.vector_store %arg9[%c3_144, %c0_145, %c0_146], %165 {strides = array<i32>} : memref<4x8x8xf32, #tpu.memory_space<vmem>>, vector<1x8x8xf32>,
      %c3_147 = arith.constant 3 : index
      %c0_148 = arith.constant 0 : index
      %c0_149 = arith.constant 0 : index
      %166 = vector.load %arg7[%c3_147, %c0_148, %c0_149] : memref<4x8x1xf32, #tpu.memory_space<vmem>>, vector<1x8x1xf32>
      %167 = vector.shape_cast %166 : vector<1x8x1xf32> to vector<8x1xf32>
      %168 = vector.shape_cast %140 : vector<8x1xf32> to vector<1x8x1xf32>
      tpu.vector_store %arg7[%c3_147, %c0_148, %c0_149], %168 {strides = array<i32>} : memref<4x8x1xf32, #tpu.memory_space<vmem>>, vector<1x8x1xf32>,
    } else {
    }
    %6 = arith.cmpi eq, %arg2, %arg1 : i32
    %7 = arith.extui %6 : i1 to i32
    %c0_i32_2 = arith.constant 0 : i32
    %8 = arith.cmpi ne, %7, %c0_i32_2 : i32
    scf.if %8 {
      %9 = tpu.iota {dimensions = array<i32: 0>} : vector<8x8xi32>
      %10 = tpu.iota {dimensions = array<i32: 1>} : vector<8x8xi32>
      %11 = arith.cmpi sle, %10, %9 : vector<8x8xi32>
      %c0 = arith.constant 0 : index
      %c0_3 = arith.constant 0 : index
      %c0_4 = arith.constant 0 : index
      %c0_5 = arith.constant 0 : index
      %c0_6 = arith.constant 0 : index
      %12 = vector.load %arg3[%c0, %c0_3, %c0_4, %c0_5, %c0_6] : memref<1x8x1x4x8xf32, #tpu.memory_space<vmem>>, vector<1x8x1x1x8xf32>
      %13 = vector.shape_cast %12 : vector<1x8x1x1x8xf32> to vector<8x8xf32>
      %c0_7 = arith.constant 0 : index
      %c0_8 = arith.constant 0 : index
      %c0_9 = arith.constant 0 : index
      %c0_10 = arith.constant 0 : index
      %c0_11 = arith.constant 0 : index
      %14 = vector.load %arg4[%c0_7, %c0_8, %c0_9, %c0_10, %c0_11] : memref<1x8x1x4x8xf32, #tpu.memory_space<vmem>>, vector<1x8x1x1x8xf32>
      %15 = vector.shape_cast %14 : vector<1x8x1x1x8xf32> to vector<8x8xf32>
      %cst = arith.constant dense<0.000000e+00> : vector<8x8xf32>
      %16 = tpu.matmul %13, %15, %cst {dimension_numbers = #tpu.dot_dimension_numbers<[1], [1], [0], [0], [0, 0, 1, 0], [], []>} : vector<8x8xf32>, vector<8x8xf32>, vector<8x8xf32> -> vector<8x8xf32>
      %cst_12 = arith.constant 0.353553385 : f32
      %17 = vector.broadcast %cst_12 : f32 to vector<8x8xf32>
      %18 = arith.mulf %16, %17 : vector<8x8xf32>
      %cst_13 = arith.constant 0xFF800000 : f32
      %19 = vector.broadcast %cst_13 : f32 to vector<8x8xf32>
      %20 = arith.select %11, %18, %19 : vector<8x8xi1>, vector<8x8xf32>
      %c0_14 = arith.constant 0 : index
      %c0_15 = arith.constant 0 : index
      %c0_16 = arith.constant 0 : index
      %21 = vector.load %arg7[%c0_14, %c0_15, %c0_16] : memref<4x8x1xf32, #tpu.memory_space<vmem>>, vector<1x8x1xf32>
      %22 = vector.shape_cast %21 : vector<1x8x1xf32> to vector<8x1xf32>
      %cst_17 = arith.constant dense<0xFF800000> : vector<8xf32>
      %23 = vector.multi_reduction <maximumf>, %20, %cst_17 [1] : vector<8x8xf32> to vector<8xf32>
      %24 = vector.shape_cast %23 : vector<8xf32> to vector<8x1xf32>
      %25 = arith.maximumf %22, %24 : vector<8x1xf32>
      %26 = arith.subf %22, %25 : vector<8x1xf32>
      %27 = math.exp %26 : vector<8x1xf32>
      %28 = vector.broadcast %25 : vector<8x1xf32> to vector<8x8xf32>
      %29 = arith.subf %20, %28 : vector<8x8xf32>
      %30 = math.exp %29 : vector<8x8xf32>
      %c0_18 = arith.constant 0 : index
      %c0_19 = arith.constant 0 : index
      %c0_20 = arith.constant 0 : index
      %31 = vector.load %arg8[%c0_18, %c0_19, %c0_20] : memref<4x8x1xf32, #tpu.memory_space<vmem>>, vector<1x8x1xf32>
      %32 = vector.shape_cast %31 : vector<1x8x1xf32> to vector<8x1xf32>
      %33 = arith.mulf %27, %32 : vector<8x1xf32>
      %cst_21 = arith.constant dense<0.000000e+00> : vector<8xf32>
      %34 = vector.multi_reduction <add>, %30, %cst_21 [1] : vector<8x8xf32> to vector<8xf32>
      %35 = vector.shape_cast %34 : vector<8xf32> to vector<8x1xf32>
      %36 = arith.addf %33, %35 : vector<8x1xf32>
      %c0_22 = arith.constant 0 : index
      %c0_23 = arith.constant 0 : index
      %c0_24 = arith.constant 0 : index
      %37 = vector.load %arg8[%c0_22, %c0_23, %c0_24] : memref<4x8x1xf32, #tpu.memory_space<vmem>>, vector<1x8x1xf32>
      %38 = vector.shape_cast %37 : vector<1x8x1xf32> to vector<8x1xf32>
      %39 = vector.shape_cast %36 : vector<8x1xf32> to vector<1x8x1xf32>
      tpu.vector_store %arg8[%c0_22, %c0_23, %c0_24], %39 {strides = array<i32>} : memref<4x8x1xf32, #tpu.memory_space<vmem>>, vector<1x8x1xf32>,
      %c0_25 = arith.constant 0 : index
      %c0_26 = arith.constant 0 : index
      %c0_27 = arith.constant 0 : index
      %40 = vector.load %arg9[%c0_25, %c0_26, %c0_27] : memref<4x8x8xf32, #tpu.memory_space<vmem>>, vector<1x8x8xf32>
      %41 = vector.shape_cast %40 : vector<1x8x8xf32> to vector<8x8xf32>
      %42 = vector.broadcast %27 : vector<8x1xf32> to vector<8x8xf32>
      %43 = arith.mulf %42, %41 : vector<8x8xf32>
      %c0_28 = arith.constant 0 : index
      %c0_29 = arith.constant 0 : index
      %c0_30 = arith.constant 0 : index
      %c0_31 = arith.constant 0 : index
      %c0_32 = arith.constant 0 : index
      %44 = vector.load %arg5[%c0_28, %c0_29, %c0_30, %c0_31, %c0_32] : memref<1x8x1x4x8xf32, #tpu.memory_space<vmem>>, vector<1x8x1x1x8xf32>
      %45 = vector.shape_cast %44 : vector<1x8x1x1x8xf32> to vector<8x8xf32>
      %cst_33 = arith.constant dense<0.000000e+00> : vector<8x8xf32>
      %46 = tpu.matmul %30, %45, %cst_33 {dimension_numbers = #tpu.dot_dimension_numbers<[1], [0], [0], [1], [0, 0, 1, 1], [], []>} : vector<8x8xf32>, vector<8x8xf32>, vector<8x8xf32> -> vector<8x8xf32>
      %47 = arith.addf %43, %46 : vector<8x8xf32>
      %c0_34 = arith.constant 0 : index
      %c0_35 = arith.constant 0 : index
      %c0_36 = arith.constant 0 : index
      %48 = vector.load %arg9[%c0_34, %c0_35, %c0_36] : memref<4x8x8xf32, #tpu.memory_space<vmem>>, vector<1x8x8xf32>
      %49 = vector.shape_cast %48 : vector<1x8x8xf32> to vector<8x8xf32>
      %50 = vector.shape_cast %47 : vector<8x8xf32> to vector<1x8x8xf32>
      tpu.vector_store %arg9[%c0_34, %c0_35, %c0_36], %50 {strides = array<i32>} : memref<4x8x8xf32, #tpu.memory_space<vmem>>, vector<1x8x8xf32>,
      %c0_37 = arith.constant 0 : index
      %c0_38 = arith.constant 0 : index
      %c0_39 = arith.constant 0 : index
      %51 = vector.load %arg7[%c0_37, %c0_38, %c0_39] : memref<4x8x1xf32, #tpu.memory_space<vmem>>, vector<1x8x1xf32>
      %52 = vector.shape_cast %51 : vector<1x8x1xf32> to vector<8x1xf32>
      %53 = vector.shape_cast %25 : vector<8x1xf32> to vector<1x8x1xf32>
      tpu.vector_store %arg7[%c0_37, %c0_38, %c0_39], %53 {strides = array<i32>} : memref<4x8x1xf32, #tpu.memory_space<vmem>>, vector<1x8x1xf32>,
      %c0_40 = arith.constant 0 : index
      %c0_41 = arith.constant 0 : index
      %c0_42 = arith.constant 0 : index
      %54 = vector.load %arg8[%c0_40, %c0_41, %c0_42] : memref<4x8x1xf32, #tpu.memory_space<vmem>>, vector<1x8x1xf32>
      %55 = vector.shape_cast %54 : vector<1x8x1xf32> to vector<8x1xf32>
      %56 = tpu.reciprocal %55 {approx = true} : vector<8x1xf32> -> vector<8x1xf32>
      %c0_43 = arith.constant 0 : index
      %c0_44 = arith.constant 0 : index
      %c0_45 = arith.constant 0 : index
      %57 = vector.load %arg9[%c0_43, %c0_44, %c0_45] : memref<4x8x8xf32, #tpu.memory_space<vmem>>, vector<1x8x8xf32>
      %58 = vector.shape_cast %57 : vector<1x8x8xf32> to vector<8x8xf32>
      %59 = vector.broadcast %56 : vector<8x1xf32> to vector<8x8xf32>
      %60 = arith.mulf %58, %59 : vector<8x8xf32>
      %c0_46 = arith.constant 0 : index
      %c0_47 = arith.constant 0 : index
      %c0_48 = arith.constant 0 : index
      %61 = vector.load %arg6[%c0_46, %c0_47, %c0_48] : memref<1x8x32xf32, #tpu.memory_space<vmem>>, vector<1x8x8xf32>
      %62 = vector.shape_cast %61 : vector<1x8x8xf32> to vector<8x8xf32>
      %63 = vector.shape_cast %60 : vector<8x8xf32> to vector<1x8x8xf32>
      tpu.vector_store %arg6[%c0_46, %c0_47, %c0_48], %63 {strides = array<i32>} : memref<1x8x32xf32, #tpu.memory_space<vmem>>, vector<1x8x8xf32>,
      %c0_49 = arith.constant 0 : index
      %c0_50 = arith.constant 0 : index
      %c0_51 = arith.constant 0 : index
      %c1 = arith.constant 1 : index
      %c0_52 = arith.constant 0 : index
      %64 = vector.load %arg3[%c0_49, %c0_50, %c0_51, %c1, %c0_52] : memref<1x8x1x4x8xf32, #tpu.memory_space<vmem>>, vector<1x8x1x1x8xf32>
      %65 = vector.shape_cast %64 : vector<1x8x1x1x8xf32> to vector<8x8xf32>
      %c0_53 = arith.constant 0 : index
      %c0_54 = arith.constant 0 : index
      %c0_55 = arith.constant 0 : index
      %c1_56 = arith.constant 1 : index
      %c0_57 = arith.constant 0 : index
      %66 = vector.load %arg4[%c0_53, %c0_54, %c0_55, %c1_56, %c0_57] : memref<1x8x1x4x8xf32, #tpu.memory_space<vmem>>, vector<1x8x1x1x8xf32>
      %67 = vector.shape_cast %66 : vector<1x8x1x1x8xf32> to vector<8x8xf32>
      %cst_58 = arith.constant dense<0.000000e+00> : vector<8x8xf32>
      %68 = tpu.matmul %65, %67, %cst_58 {dimension_numbers = #tpu.dot_dimension_numbers<[1], [1], [0], [0], [0, 0, 1, 0], [], []>} : vector<8x8xf32>, vector<8x8xf32>, vector<8x8xf32> -> vector<8x8xf32>
      %cst_59 = arith.constant 0.353553385 : f32
      %69 = vector.broadcast %cst_59 : f32 to vector<8x8xf32>
      %70 = arith.mulf %68, %69 : vector<8x8xf32>
      %cst_60 = arith.constant 0xFF800000 : f32
      %71 = vector.broadcast %cst_60 : f32 to vector<8x8xf32>
      %72 = arith.select %11, %70, %71 : vector<8x8xi1>, vector<8x8xf32>
      %c1_61 = arith.constant 1 : index
      %c0_62 = arith.constant 0 : index
      %c0_63 = arith.constant 0 : index
      %73 = vector.load %arg7[%c1_61, %c0_62, %c0_63] : memref<4x8x1xf32, #tpu.memory_space<vmem>>, vector<1x8x1xf32>
      %74 = vector.shape_cast %73 : vector<1x8x1xf32> to vector<8x1xf32>
      %cst_64 = arith.constant dense<0xFF800000> : vector<8xf32>
      %75 = vector.multi_reduction <maximumf>, %72, %cst_64 [1] : vector<8x8xf32> to vector<8xf32>
      %76 = vector.shape_cast %75 : vector<8xf32> to vector<8x1xf32>
      %77 = arith.maximumf %74, %76 : vector<8x1xf32>
      %78 = arith.subf %74, %77 : vector<8x1xf32>
      %79 = math.exp %78 : vector<8x1xf32>
      %80 = vector.broadcast %77 : vector<8x1xf32> to vector<8x8xf32>
      %81 = arith.subf %72, %80 : vector<8x8xf32>
      %82 = math.exp %81 : vector<8x8xf32>
      %c1_65 = arith.constant 1 : index
      %c0_66 = arith.constant 0 : index
      %c0_67 = arith.constant 0 : index
      %83 = vector.load %arg8[%c1_65, %c0_66, %c0_67] : memref<4x8x1xf32, #tpu.memory_space<vmem>>, vector<1x8x1xf32>
      %84 = vector.shape_cast %83 : vector<1x8x1xf32> to vector<8x1xf32>
      %85 = arith.mulf %79, %84 : vector<8x1xf32>
      %cst_68 = arith.constant dense<0.000000e+00> : vector<8xf32>
      %86 = vector.multi_reduction <add>, %82, %cst_68 [1] : vector<8x8xf32> to vector<8xf32>
      %87 = vector.shape_cast %86 : vector<8xf32> to vector<8x1xf32>
      %88 = arith.addf %85, %87 : vector<8x1xf32>
      %c1_69 = arith.constant 1 : index
      %c0_70 = arith.constant 0 : index
      %c0_71 = arith.constant 0 : index
      %89 = vector.load %arg8[%c1_69, %c0_70, %c0_71] : memref<4x8x1xf32, #tpu.memory_space<vmem>>, vector<1x8x1xf32>
      %90 = vector.shape_cast %89 : vector<1x8x1xf32> to vector<8x1xf32>
      %91 = vector.shape_cast %88 : vector<8x1xf32> to vector<1x8x1xf32>
      tpu.vector_store %arg8[%c1_69, %c0_70, %c0_71], %91 {strides = array<i32>} : memref<4x8x1xf32, #tpu.memory_space<vmem>>, vector<1x8x1xf32>,
      %c1_72 = arith.constant 1 : index
      %c0_73 = arith.constant 0 : index
      %c0_74 = arith.constant 0 : index
      %92 = vector.load %arg9[%c1_72, %c0_73, %c0_74] : memref<4x8x8xf32, #tpu.memory_space<vmem>>, vector<1x8x8xf32>
      %93 = vector.shape_cast %92 : vector<1x8x8xf32> to vector<8x8xf32>
      %94 = vector.broadcast %79 : vector<8x1xf32> to vector<8x8xf32>
      %95 = arith.mulf %94, %93 : vector<8x8xf32>
      %c0_75 = arith.constant 0 : index
      %c0_76 = arith.constant 0 : index
      %c0_77 = arith.constant 0 : index
      %c1_78 = arith.constant 1 : index
      %c0_79 = arith.constant 0 : index
      %96 = vector.load %arg5[%c0_75, %c0_76, %c0_77, %c1_78, %c0_79] : memref<1x8x1x4x8xf32, #tpu.memory_space<vmem>>, vector<1x8x1x1x8xf32>
      %97 = vector.shape_cast %96 : vector<1x8x1x1x8xf32> to vector<8x8xf32>
      %cst_80 = arith.constant dense<0.000000e+00> : vector<8x8xf32>
      %98 = tpu.matmul %82, %97, %cst_80 {dimension_numbers = #tpu.dot_dimension_numbers<[1], [0], [0], [1], [0, 0, 1, 1], [], []>} : vector<8x8xf32>, vector<8x8xf32>, vector<8x8xf32> -> vector<8x8xf32>
      %99 = arith.addf %95, %98 : vector<8x8xf32>
      %c1_81 = arith.constant 1 : index
      %c0_82 = arith.constant 0 : index
      %c0_83 = arith.constant 0 : index
      %100 = vector.load %arg9[%c1_81, %c0_82, %c0_83] : memref<4x8x8xf32, #tpu.memory_space<vmem>>, vector<1x8x8xf32>
      %101 = vector.shape_cast %100 : vector<1x8x8xf32> to vector<8x8xf32>
      %102 = vector.shape_cast %99 : vector<8x8xf32> to vector<1x8x8xf32>
      tpu.vector_store %arg9[%c1_81, %c0_82, %c0_83], %102 {strides = array<i32>} : memref<4x8x8xf32, #tpu.memory_space<vmem>>, vector<1x8x8xf32>,
      %c1_84 = arith.constant 1 : index
      %c0_85 = arith.constant 0 : index
      %c0_86 = arith.constant 0 : index
      %103 = vector.load %arg7[%c1_84, %c0_85, %c0_86] : memref<4x8x1xf32, #tpu.memory_space<vmem>>, vector<1x8x1xf32>
      %104 = vector.shape_cast %103 : vector<1x8x1xf32> to vector<8x1xf32>
      %105 = vector.shape_cast %77 : vector<8x1xf32> to vector<1x8x1xf32>
      tpu.vector_store %arg7[%c1_84, %c0_85, %c0_86], %105 {strides = array<i32>} : memref<4x8x1xf32, #tpu.memory_space<vmem>>, vector<1x8x1xf32>,
      %c1_87 = arith.constant 1 : index
      %c0_88 = arith.constant 0 : index
      %c0_89 = arith.constant 0 : index
      %106 = vector.load %arg8[%c1_87, %c0_88, %c0_89] : memref<4x8x1xf32, #tpu.memory_space<vmem>>, vector<1x8x1xf32>
      %107 = vector.shape_cast %106 : vector<1x8x1xf32> to vector<8x1xf32>
      %108 = tpu.reciprocal %107 {approx = true} : vector<8x1xf32> -> vector<8x1xf32>
      %c1_90 = arith.constant 1 : index
      %c0_91 = arith.constant 0 : index
      %c0_92 = arith.constant 0 : index
      %109 = vector.load %arg9[%c1_90, %c0_91, %c0_92] : memref<4x8x8xf32, #tpu.memory_space<vmem>>, vector<1x8x8xf32>
      %110 = vector.shape_cast %109 : vector<1x8x8xf32> to vector<8x8xf32>
      %111 = vector.broadcast %108 : vector<8x1xf32> to vector<8x8xf32>
      %112 = arith.mulf %110, %111 : vector<8x8xf32>
      %c0_93 = arith.constant 0 : index
      %c0_94 = arith.constant 0 : index
      %c8 = arith.constant 8 : index
      %113 = vector.load %arg6[%c0_93, %c0_94, %c8] : memref<1x8x32xf32, #tpu.memory_space<vmem>>, vector<1x8x8xf32>
      %114 = vector.shape_cast %113 : vector<1x8x8xf32> to vector<8x8xf32>
      %115 = vector.shape_cast %112 : vector<8x8xf32> to vector<1x8x8xf32>
      tpu.vector_store %arg6[%c0_93, %c0_94, %c8], %115 {strides = array<i32>} : memref<1x8x32xf32, #tpu.memory_space<vmem>>, vector<1x8x8xf32>,
      %c0_95 = arith.constant 0 : index
      %c0_96 = arith.constant 0 : index
      %c0_97 = arith.constant 0 : index
      %c2 = arith.constant 2 : index
      %c0_98 = arith.constant 0 : index
      %116 = vector.load %arg3[%c0_95, %c0_96, %c0_97, %c2, %c0_98] : memref<1x8x1x4x8xf32, #tpu.memory_space<vmem>>, vector<1x8x1x1x8xf32>
      %117 = vector.shape_cast %116 : vector<1x8x1x1x8xf32> to vector<8x8xf32>
      %c0_99 = arith.constant 0 : index
      %c0_100 = arith.constant 0 : index
      %c0_101 = arith.constant 0 : index
      %c2_102 = arith.constant 2 : index
      %c0_103 = arith.constant 0 : index
      %118 = vector.load %arg4[%c0_99, %c0_100, %c0_101, %c2_102, %c0_103] : memref<1x8x1x4x8xf32, #tpu.memory_space<vmem>>, vector<1x8x1x1x8xf32>
      %119 = vector.shape_cast %118 : vector<1x8x1x1x8xf32> to vector<8x8xf32>
      %cst_104 = arith.constant dense<0.000000e+00> : vector<8x8xf32>
      %120 = tpu.matmul %117, %119, %cst_104 {dimension_numbers = #tpu.dot_dimension_numbers<[1], [1], [0], [0], [0, 0, 1, 0], [], []>} : vector<8x8xf32>, vector<8x8xf32>, vector<8x8xf32> -> vector<8x8xf32>
      %cst_105 = arith.constant 0.353553385 : f32
      %121 = vector.broadcast %cst_105 : f32 to vector<8x8xf32>
      %122 = arith.mulf %120, %121 : vector<8x8xf32>
      %cst_106 = arith.constant 0xFF800000 : f32
      %123 = vector.broadcast %cst_106 : f32 to vector<8x8xf32>
      %124 = arith.select %11, %122, %123 : vector<8x8xi1>, vector<8x8xf32>
      %c2_107 = arith.constant 2 : index
      %c0_108 = arith.constant 0 : index
      %c0_109 = arith.constant 0 : index
      %125 = vector.load %arg7[%c2_107, %c0_108, %c0_109] : memref<4x8x1xf32, #tpu.memory_space<vmem>>, vector<1x8x1xf32>
      %126 = vector.shape_cast %125 : vector<1x8x1xf32> to vector<8x1xf32>
      %cst_110 = arith.constant dense<0xFF800000> : vector<8xf32>
      %127 = vector.multi_reduction <maximumf>, %124, %cst_110 [1] : vector<8x8xf32> to vector<8xf32>
      %128 = vector.shape_cast %127 : vector<8xf32> to vector<8x1xf32>
      %129 = arith.maximumf %126, %128 : vector<8x1xf32>
      %130 = arith.subf %126, %129 : vector<8x1xf32>
      %131 = math.exp %130 : vector<8x1xf32>
      %132 = vector.broadcast %129 : vector<8x1xf32> to vector<8x8xf32>
      %133 = arith.subf %124, %132 : vector<8x8xf32>
      %134 = math.exp %133 : vector<8x8xf32>
      %c2_111 = arith.constant 2 : index
      %c0_112 = arith.constant 0 : index
      %c0_113 = arith.constant 0 : index
      %135 = vector.load %arg8[%c2_111, %c0_112, %c0_113] : memref<4x8x1xf32, #tpu.memory_space<vmem>>, vector<1x8x1xf32>
      %136 = vector.shape_cast %135 : vector<1x8x1xf32> to vector<8x1xf32>
      %137 = arith.mulf %131, %136 : vector<8x1xf32>
      %cst_114 = arith.constant dense<0.000000e+00> : vector<8xf32>
      %138 = vector.multi_reduction <add>, %134, %cst_114 [1] : vector<8x8xf32> to vector<8xf32>
      %139 = vector.shape_cast %138 : vector<8xf32> to vector<8x1xf32>
      %140 = arith.addf %137, %139 : vector<8x1xf32>
      %c2_115 = arith.constant 2 : index
      %c0_116 = arith.constant 0 : index
      %c0_117 = arith.constant 0 : index
      %141 = vector.load %arg8[%c2_115, %c0_116, %c0_117] : memref<4x8x1xf32, #tpu.memory_space<vmem>>, vector<1x8x1xf32>
      %142 = vector.shape_cast %141 : vector<1x8x1xf32> to vector<8x1xf32>
      %143 = vector.shape_cast %140 : vector<8x1xf32> to vector<1x8x1xf32>
      tpu.vector_store %arg8[%c2_115, %c0_116, %c0_117], %143 {strides = array<i32>} : memref<4x8x1xf32, #tpu.memory_space<vmem>>, vector<1x8x1xf32>,
      %c2_118 = arith.constant 2 : index
      %c0_119 = arith.constant 0 : index
      %c0_120 = arith.constant 0 : index
      %144 = vector.load %arg9[%c2_118, %c0_119, %c0_120] : memref<4x8x8xf32, #tpu.memory_space<vmem>>, vector<1x8x8xf32>
      %145 = vector.shape_cast %144 : vector<1x8x8xf32> to vector<8x8xf32>
      %146 = vector.broadcast %131 : vector<8x1xf32> to vector<8x8xf32>
      %147 = arith.mulf %146, %145 : vector<8x8xf32>
      %c0_121 = arith.constant 0 : index
      %c0_122 = arith.constant 0 : index
      %c0_123 = arith.constant 0 : index
      %c2_124 = arith.constant 2 : index
      %c0_125 = arith.constant 0 : index
      %148 = vector.load %arg5[%c0_121, %c0_122, %c0_123, %c2_124, %c0_125] : memref<1x8x1x4x8xf32, #tpu.memory_space<vmem>>, vector<1x8x1x1x8xf32>
      %149 = vector.shape_cast %148 : vector<1x8x1x1x8xf32> to vector<8x8xf32>
      %cst_126 = arith.constant dense<0.000000e+00> : vector<8x8xf32>
      %150 = tpu.matmul %134, %149, %cst_126 {dimension_numbers = #tpu.dot_dimension_numbers<[1], [0], [0], [1], [0, 0, 1, 1], [], []>} : vector<8x8xf32>, vector<8x8xf32>, vector<8x8xf32> -> vector<8x8xf32>
      %151 = arith.addf %147, %150 : vector<8x8xf32>
      %c2_127 = arith.constant 2 : index
      %c0_128 = arith.constant 0 : index
      %c0_129 = arith.constant 0 : index
      %152 = vector.load %arg9[%c2_127, %c0_128, %c0_129] : memref<4x8x8xf32, #tpu.memory_space<vmem>>, vector<1x8x8xf32>
      %153 = vector.shape_cast %152 : vector<1x8x8xf32> to vector<8x8xf32>
      %154 = vector.shape_cast %151 : vector<8x8xf32> to vector<1x8x8xf32>
      tpu.vector_store %arg9[%c2_127, %c0_128, %c0_129], %154 {strides = array<i32>} : memref<4x8x8xf32, #tpu.memory_space<vmem>>, vector<1x8x8xf32>,
      %c2_130 = arith.constant 2 : index
      %c0_131 = arith.constant 0 : index
      %c0_132 = arith.constant 0 : index
      %155 = vector.load %arg7[%c2_130, %c0_131, %c0_132] : memref<4x8x1xf32, #tpu.memory_space<vmem>>, vector<1x8x1xf32>
      %156 = vector.shape_cast %155 : vector<1x8x1xf32> to vector<8x1xf32>
      %157 = vector.shape_cast %129 : vector<8x1xf32> to vector<1x8x1xf32>
      tpu.vector_store %arg7[%c2_130, %c0_131, %c0_132], %157 {strides = array<i32>} : memref<4x8x1xf32, #tpu.memory_space<vmem>>, vector<1x8x1xf32>,
      %c2_133 = arith.constant 2 : index
      %c0_134 = arith.constant 0 : index
      %c0_135 = arith.constant 0 : index
      %158 = vector.load %arg8[%c2_133, %c0_134, %c0_135] : memref<4x8x1xf32, #tpu.memory_space<vmem>>, vector<1x8x1xf32>
      %159 = vector.shape_cast %158 : vector<1x8x1xf32> to vector<8x1xf32>
      %160 = tpu.reciprocal %159 {approx = true} : vector<8x1xf32> -> vector<8x1xf32>
      %c2_136 = arith.constant 2 : index
      %c0_137 = arith.constant 0 : index
      %c0_138 = arith.constant 0 : index
      %161 = vector.load %arg9[%c2_136, %c0_137, %c0_138] : memref<4x8x8xf32, #tpu.memory_space<vmem>>, vector<1x8x8xf32>
      %162 = vector.shape_cast %161 : vector<1x8x8xf32> to vector<8x8xf32>
      %163 = vector.broadcast %160 : vector<8x1xf32> to vector<8x8xf32>
      %164 = arith.mulf %162, %163 : vector<8x8xf32>
      %c0_139 = arith.constant 0 : index
      %c0_140 = arith.constant 0 : index
      %c16 = arith.constant 16 : index
      %165 = vector.load %arg6[%c0_139, %c0_140, %c16] : memref<1x8x32xf32, #tpu.memory_space<vmem>>, vector<1x8x8xf32>
      %166 = vector.shape_cast %165 : vector<1x8x8xf32> to vector<8x8xf32>
      %167 = vector.shape_cast %164 : vector<8x8xf32> to vector<1x8x8xf32>
      tpu.vector_store %arg6[%c0_139, %c0_140, %c16], %167 {strides = array<i32>} : memref<1x8x32xf32, #tpu.memory_space<vmem>>, vector<1x8x8xf32>,
      %c0_141 = arith.constant 0 : index
      %c0_142 = arith.constant 0 : index
      %c0_143 = arith.constant 0 : index
      %c3 = arith.constant 3 : index
      %c0_144 = arith.constant 0 : index
      %168 = vector.load %arg3[%c0_141, %c0_142, %c0_143, %c3, %c0_144] : memref<1x8x1x4x8xf32, #tpu.memory_space<vmem>>, vector<1x8x1x1x8xf32>
      %169 = vector.shape_cast %168 : vector<1x8x1x1x8xf32> to vector<8x8xf32>
      %c0_145 = arith.constant 0 : index
      %c0_146 = arith.constant 0 : index
      %c0_147 = arith.constant 0 : index
      %c3_148 = arith.constant 3 : index
      %c0_149 = arith.constant 0 : index
      %170 = vector.load %arg4[%c0_145, %c0_146, %c0_147, %c3_148, %c0_149] : memref<1x8x1x4x8xf32, #tpu.memory_space<vmem>>, vector<1x8x1x1x8xf32>
      %171 = vector.shape_cast %170 : vector<1x8x1x1x8xf32> to vector<8x8xf32>
      %cst_150 = arith.constant dense<0.000000e+00> : vector<8x8xf32>
      %172 = tpu.matmul %169, %171, %cst_150 {dimension_numbers = #tpu.dot_dimension_numbers<[1], [1], [0], [0], [0, 0, 1, 0], [], []>} : vector<8x8xf32>, vector<8x8xf32>, vector<8x8xf32> -> vector<8x8xf32>
      %cst_151 = arith.constant 0.353553385 : f32
      %173 = vector.broadcast %cst_151 : f32 to vector<8x8xf32>
      %174 = arith.mulf %172, %173 : vector<8x8xf32>
      %cst_152 = arith.constant 0xFF800000 : f32
      %175 = vector.broadcast %cst_152 : f32 to vector<8x8xf32>
      %176 = arith.select %11, %174, %175 : vector<8x8xi1>, vector<8x8xf32>
      %c3_153 = arith.constant 3 : index
      %c0_154 = arith.constant 0 : index
      %c0_155 = arith.constant 0 : index
      %177 = vector.load %arg7[%c3_153, %c0_154, %c0_155] : memref<4x8x1xf32, #tpu.memory_space<vmem>>, vector<1x8x1xf32>
      %178 = vector.shape_cast %177 : vector<1x8x1xf32> to vector<8x1xf32>
      %cst_156 = arith.constant dense<0xFF800000> : vector<8xf32>
      %179 = vector.multi_reduction <maximumf>, %176, %cst_156 [1] : vector<8x8xf32> to vector<8xf32>
      %180 = vector.shape_cast %179 : vector<8xf32> to vector<8x1xf32>
      %181 = arith.maximumf %178, %180 : vector<8x1xf32>
      %182 = arith.subf %178, %181 : vector<8x1xf32>
      %183 = math.exp %182 : vector<8x1xf32>
      %184 = vector.broadcast %181 : vector<8x1xf32> to vector<8x8xf32>
      %185 = arith.subf %176, %184 : vector<8x8xf32>
      %186 = math.exp %185 : vector<8x8xf32>
      %c3_157 = arith.constant 3 : index
      %c0_158 = arith.constant 0 : index
      %c0_159 = arith.constant 0 : index
      %187 = vector.load %arg8[%c3_157, %c0_158, %c0_159] : memref<4x8x1xf32, #tpu.memory_space<vmem>>, vector<1x8x1xf32>
      %188 = vector.shape_cast %187 : vector<1x8x1xf32> to vector<8x1xf32>
      %189 = arith.mulf %183, %188 : vector<8x1xf32>
      %cst_160 = arith.constant dense<0.000000e+00> : vector<8xf32>
      %190 = vector.multi_reduction <add>, %186, %cst_160 [1] : vector<8x8xf32> to vector<8xf32>
      %191 = vector.shape_cast %190 : vector<8xf32> to vector<8x1xf32>
      %192 = arith.addf %189, %191 : vector<8x1xf32>
      %c3_161 = arith.constant 3 : index
      %c0_162 = arith.constant 0 : index
      %c0_163 = arith.constant 0 : index
      %193 = vector.load %arg8[%c3_161, %c0_162, %c0_163] : memref<4x8x1xf32, #tpu.memory_space<vmem>>, vector<1x8x1xf32>
      %194 = vector.shape_cast %193 : vector<1x8x1xf32> to vector<8x1xf32>
      %195 = vector.shape_cast %192 : vector<8x1xf32> to vector<1x8x1xf32>
      tpu.vector_store %arg8[%c3_161, %c0_162, %c0_163], %195 {strides = array<i32>} : memref<4x8x1xf32, #tpu.memory_space<vmem>>, vector<1x8x1xf32>,
      %c3_164 = arith.constant 3 : index
      %c0_165 = arith.constant 0 : index
      %c0_166 = arith.constant 0 : index
      %196 = vector.load %arg9[%c3_164, %c0_165, %c0_166] : memref<4x8x8xf32, #tpu.memory_space<vmem>>, vector<1x8x8xf32>
      %197 = vector.shape_cast %196 : vector<1x8x8xf32> to vector<8x8xf32>
      %198 = vector.broadcast %183 : vector<8x1xf32> to vector<8x8xf32>
      %199 = arith.mulf %198, %197 : vector<8x8xf32>
      %c0_167 = arith.constant 0 : index
      %c0_168 = arith.constant 0 : index
      %c0_169 = arith.constant 0 : index
      %c3_170 = arith.constant 3 : index
      %c0_171 = arith.constant 0 : index
      %200 = vector.load %arg5[%c0_167, %c0_168, %c0_169, %c3_170, %c0_171] : memref<1x8x1x4x8xf32, #tpu.memory_space<vmem>>, vector<1x8x1x1x8xf32>
      %201 = vector.shape_cast %200 : vector<1x8x1x1x8xf32> to vector<8x8xf32>
      %cst_172 = arith.constant dense<0.000000e+00> : vector<8x8xf32>
      %202 = tpu.matmul %186, %201, %cst_172 {dimension_numbers = #tpu.dot_dimension_numbers<[1], [0], [0], [1], [0, 0, 1, 1], [], []>} : vector<8x8xf32>, vector<8x8xf32>, vector<8x8xf32> -> vector<8x8xf32>
      %203 = arith.addf %199, %202 : vector<8x8xf32>
      %c3_173 = arith.constant 3 : index
      %c0_174 = arith.constant 0 : index
      %c0_175 = arith.constant 0 : index
      %204 = vector.load %arg9[%c3_173, %c0_174, %c0_175] : memref<4x8x8xf32, #tpu.memory_space<vmem>>, vector<1x8x8xf32>
      %205 = vector.shape_cast %204 : vector<1x8x8xf32> to vector<8x8xf32>
      %206 = vector.shape_cast %203 : vector<8x8xf32> to vector<1x8x8xf32>
      tpu.vector_store %arg9[%c3_173, %c0_174, %c0_175], %206 {strides = array<i32>} : memref<4x8x8xf32, #tpu.memory_space<vmem>>, vector<1x8x8xf32>,
      %c3_176 = arith.constant 3 : index
      %c0_177 = arith.constant 0 : index
      %c0_178 = arith.constant 0 : index
      %207 = vector.load %arg7[%c3_176, %c0_177, %c0_178] : memref<4x8x1xf32, #tpu.memory_space<vmem>>, vector<1x8x1xf32>
      %208 = vector.shape_cast %207 : vector<1x8x1xf32> to vector<8x1xf32>
      %209 = vector.shape_cast %181 : vector<8x1xf32> to vector<1x8x1xf32>
      tpu.vector_store %arg7[%c3_176, %c0_177, %c0_178], %209 {strides = array<i32>} : memref<4x8x1xf32, #tpu.memory_space<vmem>>, vector<1x8x1xf32>,
      %c3_179 = arith.constant 3 : index
      %c0_180 = arith.constant 0 : index
      %c0_181 = arith.constant 0 : index
      %210 = vector.load %arg8[%c3_179, %c0_180, %c0_181] : memref<4x8x1xf32, #tpu.memory_space<vmem>>, vector<1x8x1xf32>
      %211 = vector.shape_cast %210 : vector<1x8x1xf32> to vector<8x1xf32>
      %212 = tpu.reciprocal %211 {approx = true} : vector<8x1xf32> -> vector<8x1xf32>
      %c3_182 = arith.constant 3 : index
      %c0_183 = arith.constant 0 : index
      %c0_184 = arith.constant 0 : index
      %213 = vector.load %arg9[%c3_182, %c0_183, %c0_184] : memref<4x8x8xf32, #tpu.memory_space<vmem>>, vector<1x8x8xf32>
      %214 = vector.shape_cast %213 : vector<1x8x8xf32> to vector<8x8xf32>
      %215 = vector.broadcast %212 : vector<8x1xf32> to vector<8x8xf32>
      %216 = arith.mulf %214, %215 : vector<8x8xf32>
      %c0_185 = arith.constant 0 : index
      %c0_186 = arith.constant 0 : index
      %c24 = arith.constant 24 : index
      %217 = vector.load %arg6[%c0_185, %c0_186, %c24] : memref<1x8x32xf32, #tpu.memory_space<vmem>>, vector<1x8x8xf32>
      %218 = vector.shape_cast %217 : vector<1x8x8xf32> to vector<8x8xf32>
      %219 = vector.shape_cast %216 : vector<8x8xf32> to vector<1x8x8xf32>
      tpu.vector_store %arg6[%c0_185, %c0_186, %c24], %219 {strides = array<i32>} : memref<1x8x32xf32, #tpu.memory_space<vmem>>, vector<1x8x8xf32>,
    } else {
    }
    return
  }
  func.func @transform_0(%arg0: i32, %arg1: i32, %arg2: i32) -> (i32, i32, i32, i32, i32) {
    %c0_i32 = arith.constant 0 : i32
    %c0_i32_0 = arith.constant 0 : i32
    %c0_i32_1 = arith.constant 0 : i32
    %c0_i32_2 = arith.constant 0 : i32
    return %arg0, %arg1, %c0_i32, %c0_i32_0, %c0_i32_1 : i32, i32, i32, i32, i32
  }
  func.func @transform_1(%arg0: i32, %arg1: i32, %arg2: i32) -> (i32, i32, i32, i32, i32) {
    %0 = arith.minsi %arg1, %arg2 : i32
    %c1_i32 = arith.constant 1 : i32
    %c0_i32 = arith.constant 0 : i32
    %c0_i32_0 = arith.constant 0 : i32
    %c0_i32_1 = arith.constant 0 : i32
    return %arg0, %0, %c1_i32, %c0_i32, %c0_i32_0 : i32, i32, i32, i32, i32
  }
  func.func @transform_2(%arg0: i32, %arg1: i32, %arg2: i32) -> (i32, i32, i32, i32, i32) {
    %0 = arith.minsi %arg1, %arg2 : i32
    %c2_i32 = arith.constant 2 : i32
    %c0_i32 = arith.constant 0 : i32
    %c0_i32_0 = arith.constant 0 : i32
    %c0_i32_1 = arith.constant 0 : i32
    return %arg0, %0, %c2_i32, %c0_i32, %c0_i32_0 : i32, i32, i32, i32, i32
  }
  func.func @transform_3(%arg0: i32, %arg1: i32, %arg2: i32) -> (i32, i32, i32) {
    %c0_i32 = arith.constant 0 : i32
    %c0_i32_0 = arith.constant 0 : i32
    return %arg0, %arg1, %c0_i32 : i32, i32, i32
  }
}

module attributes {stable_mosaic.version = 11 : i64} {
  func.func @_mm_res_kernel(%arg0: i32, %arg1: i32, %arg2: i32, %arg3: memref<8x32xf32, #tpu.memory_space<vmem>>, %arg4: memref<32x32xf32, #tpu.memory_space<vmem>>, %arg5: memref<8x32xf32, #tpu.memory_space<vmem>>, %arg6: memref<8x32xf32, #tpu.memory_space<vmem>>, %arg7: memref<8x32xf32, #tpu.memory_space<vmem>>) attributes {dimension_semantics = [#tpu.dimension_semantics<parallel>, #tpu.dimension_semantics<parallel>, #tpu.dimension_semantics<arbitrary>], iteration_bounds = array<i64: 2, 1, 1>, scalar_prefetch = 0 : i64, scratch_operands = 1 : i64, tpu.core_type = #tpu.core_type<tc>, window_params = [{transform_indices = @transform_0, window_bounds = array<i64: 8, 32>}, {transform_indices = @transform_1, window_bounds = array<i64: 32, 32>}, {transform_indices = @transform_2, window_bounds = array<i64: 8, 32>}, {transform_indices = @transform_3, window_bounds = array<i64: 8, 32>}]} {
    %c0 = arith.constant 0 : index
    %c0_0 = arith.constant 0 : index
    %0 = vector.load %arg3[%c0, %c0_0] : memref<8x32xf32, #tpu.memory_space<vmem>>, vector<8x32xf32>
    %c0_1 = arith.constant 0 : index
    %c0_2 = arith.constant 0 : index
    %1 = vector.load %arg4[%c0_1, %c0_2] : memref<32x32xf32, #tpu.memory_space<vmem>>, vector<32x32xf32>
    %cst = arith.constant dense<0.000000e+00> : vector<8x32xf32>
    %2 = tpu.matmul %0, %1, %cst {dimension_numbers = #tpu.dot_dimension_numbers<[1], [0], [0], [1], [0, 0, 1, 1], [], []>} : vector<8x32xf32>, vector<32x32xf32>, vector<8x32xf32> -> vector<8x32xf32>
    %c0_i32 = arith.constant 0 : i32
    %3 = arith.cmpi eq, %arg2, %c0_i32 : i32
    %4 = arith.extui %3 : i1 to i32
    %c0_i32_3 = arith.constant 0 : i32
    %5 = arith.cmpi ne, %4, %c0_i32_3 : i32
    scf.if %5 {
      %c0_8 = arith.constant 0 : index
      %c0_9 = arith.constant 0 : index
      %12 = vector.load %arg7[%c0_8, %c0_9] : memref<8x32xf32, #tpu.memory_space<vmem>>, vector<8x32xf32>
      tpu.vector_store %arg7[%c0_8, %c0_9], %2 {strides = array<i32>} : memref<8x32xf32, #tpu.memory_space<vmem>>, vector<8x32xf32>,
    } else {
    }
    %c0_i32_4 = arith.constant 0 : i32
    %6 = arith.cmpi sgt, %arg2, %c0_i32_4 : i32
    %7 = arith.extui %6 : i1 to i32
    %c0_i32_5 = arith.constant 0 : i32
    %8 = arith.cmpi ne, %7, %c0_i32_5 : i32
    scf.if %8 {
      %c0_8 = arith.constant 0 : index
      %c0_9 = arith.constant 0 : index
      %12 = vector.load %arg7[%c0_8, %c0_9] : memref<8x32xf32, #tpu.memory_space<vmem>>, vector<8x32xf32>
      %13 = arith.addf %12, %2 : vector<8x32xf32>
      %c0_10 = arith.constant 0 : index
      %c0_11 = arith.constant 0 : index
      %14 = vector.load %arg7[%c0_10, %c0_11] : memref<8x32xf32, #tpu.memory_space<vmem>>, vector<8x32xf32>
      tpu.vector_store %arg7[%c0_10, %c0_11], %13 {strides = array<i32>} : memref<8x32xf32, #tpu.memory_space<vmem>>, vector<8x32xf32>,
    } else {
    }
    %c0_i32_6 = arith.constant 0 : i32
    %9 = arith.cmpi eq, %arg2, %c0_i32_6 : i32
    %10 = arith.extui %9 : i1 to i32
    %c0_i32_7 = arith.constant 0 : i32
    %11 = arith.cmpi ne, %10, %c0_i32_7 : i32
    scf.if %11 {
      %c0_8 = arith.constant 0 : index
      %c0_9 = arith.constant 0 : index
      %12 = vector.load %arg7[%c0_8, %c0_9] : memref<8x32xf32, #tpu.memory_space<vmem>>, vector<8x32xf32>
      %c0_10 = arith.constant 0 : index
      %c0_11 = arith.constant 0 : index
      %13 = vector.load %arg5[%c0_10, %c0_11] : memref<8x32xf32, #tpu.memory_space<vmem>>, vector<8x32xf32>
      %14 = arith.addf %12, %13 : vector<8x32xf32>
      %c0_12 = arith.constant 0 : index
      %c0_13 = arith.constant 0 : index
      %15 = vector.load %arg6[%c0_12, %c0_13] : memref<8x32xf32, #tpu.memory_space<vmem>>, vector<8x32xf32>
      tpu.vector_store %arg6[%c0_12, %c0_13], %14 {strides = array<i32>} : memref<8x32xf32, #tpu.memory_space<vmem>>, vector<8x32xf32>,
    } else {
    }
    return
  }
  func.func @transform_0(%arg0: i32, %arg1: i32, %arg2: i32) -> (i32, i32) {
    %c0_i32 = arith.constant 0 : i32
    return %arg0, %arg2 : i32, i32
  }
  func.func @transform_1(%arg0: i32, %arg1: i32, %arg2: i32) -> (i32, i32) {
    %c0_i32 = arith.constant 0 : i32
    return %arg2, %arg1 : i32, i32
  }
  func.func @transform_2(%arg0: i32, %arg1: i32, %arg2: i32) -> (i32, i32) {
    %c0_i32 = arith.constant 0 : i32
    return %arg0, %arg1 : i32, i32
  }
  func.func @transform_3(%arg0: i32, %arg1: i32, %arg2: i32) -> (i32, i32) {
    %c0_i32 = arith.constant 0 : i32
    return %arg0, %arg1 : i32, i32
  }
}

module attributes {stable_mosaic.version = 11 : i64} {
  func.func @_rms_scale_kernel(%arg0: i32, %arg1: memref<8x32xf32, #tpu.memory_space<vmem>>, %arg2: memref<8x1xf32, #tpu.memory_space<vmem>>) attributes {dimension_semantics = [#tpu.dimension_semantics<parallel>], iteration_bounds = array<i64: 2>, scalar_prefetch = 0 : i64, scratch_operands = 0 : i64, tpu.core_type = #tpu.core_type<tc>, window_params = [{transform_indices = @transform_0, window_bounds = array<i64: 8, 32>}, {transform_indices = @transform_1, window_bounds = array<i64: 8, 1>}]} {
    %c0 = arith.constant 0 : index
    %c0_0 = arith.constant 0 : index
    %0 = vector.load %arg1[%c0, %c0_0] : memref<8x32xf32, #tpu.memory_space<vmem>>, vector<8x32xf32>
    %1 = arith.mulf %0, %0 : vector<8x32xf32>
    %cst = arith.constant dense<0.000000e+00> : vector<8xf32>
    %2 = vector.multi_reduction <add>, %1, %cst [1] : vector<8x32xf32> to vector<8xf32>
    %3 = vector.shape_cast %2 : vector<8xf32> to vector<8x1xf32>
    %cst_1 = arith.constant 3.200000e+01 : f32
    %4 = vector.broadcast %cst_1 : f32 to vector<8x1xf32>
    %5 = arith.divf %3, %4 : vector<8x1xf32>
    %cst_2 = arith.constant 1.1920929E-7 : f32
    %6 = vector.broadcast %cst_2 : f32 to vector<8x1xf32>
    %7 = arith.addf %5, %6 : vector<8x1xf32>
    %8 = math.rsqrt %7 : vector<8x1xf32>
    %c0_3 = arith.constant 0 : index
    %c0_4 = arith.constant 0 : index
    %9 = vector.load %arg2[%c0_3, %c0_4] : memref<8x1xf32, #tpu.memory_space<vmem>>, vector<8x1xf32>
    tpu.vector_store %arg2[%c0_3, %c0_4], %8 {strides = array<i32>} : memref<8x1xf32, #tpu.memory_space<vmem>>, vector<8x1xf32>,
    return
  }
  func.func @transform_0(%arg0: i32) -> (i32, i32) {
    %c0_i32 = arith.constant 0 : i32
    %c0_i32_0 = arith.constant 0 : i32
    return %arg0, %c0_i32 : i32, i32
  }
  func.func @transform_1(%arg0: i32) -> (i32, i32) {
    %c0_i32 = arith.constant 0 : i32
    %c0_i32_0 = arith.constant 0 : i32
    return %arg0, %c0_i32 : i32, i32
  }
}

module attributes {stable_mosaic.version = 11 : i64} {
  func.func @_swiglu_norm_kernel(%arg0: i32, %arg1: i32, %arg2: i32, %arg3: memref<8x32xf32, #tpu.memory_space<vmem>>, %arg4: memref<8x1xf32, #tpu.memory_space<vmem>>, %arg5: memref<1x32xf32, #tpu.memory_space<vmem>>, %arg6: memref<32x85xf32, #tpu.memory_space<vmem>>, %arg7: memref<32x85xf32, #tpu.memory_space<vmem>>, %arg8: memref<8x85xf32, #tpu.memory_space<vmem>>, %arg9: memref<8x85xf32, #tpu.memory_space<vmem>>, %arg10: memref<8x85xf32, #tpu.memory_space<vmem>>) attributes {dimension_semantics = [#tpu.dimension_semantics<parallel>, #tpu.dimension_semantics<parallel>, #tpu.dimension_semantics<arbitrary>], iteration_bounds = array<i64: 2, 1, 1>, scalar_prefetch = 0 : i64, scratch_operands = 2 : i64, tpu.core_type = #tpu.core_type<tc>, window_params = [{transform_indices = @transform_0, window_bounds = array<i64: 8, 32>}, {transform_indices = @transform_1, window_bounds = array<i64: 8, 1>}, {transform_indices = @transform_2, window_bounds = array<i64: 1, 32>}, {transform_indices = @transform_3, window_bounds = array<i64: 32, 85>}, {transform_indices = @transform_4, window_bounds = array<i64: 32, 85>}, {transform_indices = @transform_5, window_bounds = array<i64: 8, 85>}]} {
    %c0 = arith.constant 0 : index
    %c0_0 = arith.constant 0 : index
    %0 = vector.load %arg3[%c0, %c0_0] : memref<8x32xf32, #tpu.memory_space<vmem>>, vector<8x32xf32>
    %c0_1 = arith.constant 0 : index
    %c0_2 = arith.constant 0 : index
    %1 = vector.load %arg4[%c0_1, %c0_2] : memref<8x1xf32, #tpu.memory_space<vmem>>, vector<8x1xf32>
    %2 = vector.broadcast %1 : vector<8x1xf32> to vector<8x32xf32>
    %3 = arith.mulf %0, %2 : vector<8x32xf32>
    %c0_3 = arith.constant 0 : index
    %c0_4 = arith.constant 0 : index
    %4 = vector.load %arg5[%c0_3, %c0_4] : memref<1x32xf32, #tpu.memory_space<vmem>>, vector<1x32xf32>
    %5 = vector.broadcast %4 : vector<1x32xf32> to vector<8x32xf32>
    %6 = arith.mulf %3, %5 : vector<8x32xf32>
    %c0_5 = arith.constant 0 : index
    %c0_6 = arith.constant 0 : index
    %7 = vector.load %arg6[%c0_5, %c0_6] : memref<32x85xf32, #tpu.memory_space<vmem>>, vector<32x85xf32>
    %cst = arith.constant dense<0.000000e+00> : vector<8x85xf32>
    %8 = tpu.matmul %6, %7, %cst {dimension_numbers = #tpu.dot_dimension_numbers<[1], [0], [0], [1], [0, 0, 1, 1], [], []>} : vector<8x32xf32>, vector<32x85xf32>, vector<8x85xf32> -> vector<8x85xf32>
    %c0_7 = arith.constant 0 : index
    %c0_8 = arith.constant 0 : index
    %9 = vector.load %arg7[%c0_7, %c0_8] : memref<32x85xf32, #tpu.memory_space<vmem>>, vector<32x85xf32>
    %cst_9 = arith.constant dense<0.000000e+00> : vector<8x85xf32>
    %10 = tpu.matmul %6, %9, %cst_9 {dimension_numbers = #tpu.dot_dimension_numbers<[1], [0], [0], [1], [0, 0, 1, 1], [], []>} : vector<8x32xf32>, vector<32x85xf32>, vector<8x85xf32> -> vector<8x85xf32>
    %c0_i32 = arith.constant 0 : i32
    %11 = arith.cmpi eq, %arg2, %c0_i32 : i32
    %12 = arith.extui %11 : i1 to i32
    %c0_i32_10 = arith.constant 0 : i32
    %13 = arith.cmpi ne, %12, %c0_i32_10 : i32
    scf.if %13 {
      %c0_15 = arith.constant 0 : index
      %c0_16 = arith.constant 0 : index
      %20 = vector.load %arg9[%c0_15, %c0_16] : memref<8x85xf32, #tpu.memory_space<vmem>>, vector<8x85xf32>
      tpu.vector_store %arg9[%c0_15, %c0_16], %8 {strides = array<i32>} : memref<8x85xf32, #tpu.memory_space<vmem>>, vector<8x85xf32>,
      %c0_17 = arith.constant 0 : index
      %c0_18 = arith.constant 0 : index
      %21 = vector.load %arg10[%c0_17, %c0_18] : memref<8x85xf32, #tpu.memory_space<vmem>>, vector<8x85xf32>
      tpu.vector_store %arg10[%c0_17, %c0_18], %10 {strides = array<i32>} : memref<8x85xf32, #tpu.memory_space<vmem>>, vector<8x85xf32>,
    } else {
    }
    %c0_i32_11 = arith.constant 0 : i32
    %14 = arith.cmpi sgt, %arg2, %c0_i32_11 : i32
    %15 = arith.extui %14 : i1 to i32
    %c0_i32_12 = arith.constant 0 : i32
    %16 = arith.cmpi ne, %15, %c0_i32_12 : i32
    scf.if %16 {
      %c0_15 = arith.constant 0 : index
      %c0_16 = arith.constant 0 : index
      %20 = vector.load %arg9[%c0_15, %c0_16] : memref<8x85xf32, #tpu.memory_space<vmem>>, vector<8x85xf32>
      %21 = arith.addf %20, %8 : vector<8x85xf32>
      %c0_17 = arith.constant 0 : index
      %c0_18 = arith.constant 0 : index
      %22 = vector.load %arg9[%c0_17, %c0_18] : memref<8x85xf32, #tpu.memory_space<vmem>>, vector<8x85xf32>
      tpu.vector_store %arg9[%c0_17, %c0_18], %21 {strides = array<i32>} : memref<8x85xf32, #tpu.memory_space<vmem>>, vector<8x85xf32>,
      %c0_19 = arith.constant 0 : index
      %c0_20 = arith.constant 0 : index
      %23 = vector.load %arg10[%c0_19, %c0_20] : memref<8x85xf32, #tpu.memory_space<vmem>>, vector<8x85xf32>
      %24 = arith.addf %23, %10 : vector<8x85xf32>
      %c0_21 = arith.constant 0 : index
      %c0_22 = arith.constant 0 : index
      %25 = vector.load %arg10[%c0_21, %c0_22] : memref<8x85xf32, #tpu.memory_space<vmem>>, vector<8x85xf32>
      tpu.vector_store %arg10[%c0_21, %c0_22], %24 {strides = array<i32>} : memref<8x85xf32, #tpu.memory_space<vmem>>, vector<8x85xf32>,
    } else {
    }
    %c0_i32_13 = arith.constant 0 : i32
    %17 = arith.cmpi eq, %arg2, %c0_i32_13 : i32
    %18 = arith.extui %17 : i1 to i32
    %c0_i32_14 = arith.constant 0 : i32
    %19 = arith.cmpi ne, %18, %c0_i32_14 : i32
    scf.if %19 {
      %c0_15 = arith.constant 0 : index
      %c0_16 = arith.constant 0 : index
      %20 = vector.load %arg9[%c0_15, %c0_16] : memref<8x85xf32, #tpu.memory_space<vmem>>, vector<8x85xf32>
      %cst_17 = arith.constant 0.000000e+00 : f32
      %21 = vector.broadcast %cst_17 : f32 to vector<8x85xf32>
      %22 = arith.subf %21, %20 : vector<8x85xf32>
      %23 = math.exp %22 : vector<8x85xf32>
      %cst_18 = arith.constant 1.000000e+00 : f32
      %24 = vector.broadcast %cst_18 : f32 to vector<8x85xf32>
      %25 = arith.addf %24, %23 : vector<8x85xf32>
      %26 = tpu.reciprocal %25 {approx = true} : vector<8x85xf32> -> vector<8x85xf32>
      %27 = arith.mulf %20, %26 : vector<8x85xf32>
      %c0_19 = arith.constant 0 : index
      %c0_20 = arith.constant 0 : index
      %28 = vector.load %arg10[%c0_19, %c0_20] : memref<8x85xf32, #tpu.memory_space<vmem>>, vector<8x85xf32>
      %29 = arith.mulf %27, %28 : vector<8x85xf32>
      %c0_21 = arith.constant 0 : index
      %c0_22 = arith.constant 0 : index
      %30 = vector.load %arg8[%c0_21, %c0_22] : memref<8x85xf32, #tpu.memory_space<vmem>>, vector<8x85xf32>
      tpu.vector_store %arg8[%c0_21, %c0_22], %29 {strides = array<i32>} : memref<8x85xf32, #tpu.memory_space<vmem>>, vector<8x85xf32>,
    } else {
    }
    return
  }
  func.func @transform_0(%arg0: i32, %arg1: i32, %arg2: i32) -> (i32, i32) {
    %c0_i32 = arith.constant 0 : i32
    return %arg0, %arg2 : i32, i32
  }
  func.func @transform_1(%arg0: i32, %arg1: i32, %arg2: i32) -> (i32, i32) {
    %c0_i32 = arith.constant 0 : i32
    %c0_i32_0 = arith.constant 0 : i32
    return %arg0, %c0_i32 : i32, i32
  }
  func.func @transform_2(%arg0: i32, %arg1: i32, %arg2: i32) -> (i32, i32) {
    %c0_i32 = arith.constant 0 : i32
    %c0_i32_0 = arith.constant 0 : i32
    return %c0_i32, %arg2 : i32, i32
  }
  func.func @transform_3(%arg0: i32, %arg1: i32, %arg2: i32) -> (i32, i32) {
    %c0_i32 = arith.constant 0 : i32
    return %arg2, %arg1 : i32, i32
  }
  func.func @transform_4(%arg0: i32, %arg1: i32, %arg2: i32) -> (i32, i32) {
    %c0_i32 = arith.constant 0 : i32
    return %arg2, %arg1 : i32, i32
  }
  func.func @transform_5(%arg0: i32, %arg1: i32, %arg2: i32) -> (i32, i32) {
    %c0_i32 = arith.constant 0 : i32
    return %arg0, %arg1 : i32, i32
  }
}

module attributes {stable_mosaic.version = 11 : i64} {
  func.func @_mm_res_kernel(%arg0: i32, %arg1: i32, %arg2: i32, %arg3: memref<8x85xf32, #tpu.memory_space<vmem>>, %arg4: memref<85x32xf32, #tpu.memory_space<vmem>>, %arg5: memref<8x32xf32, #tpu.memory_space<vmem>>, %arg6: memref<8x32xf32, #tpu.memory_space<vmem>>, %arg7: memref<8x32xf32, #tpu.memory_space<vmem>>) attributes {dimension_semantics = [#tpu.dimension_semantics<parallel>, #tpu.dimension_semantics<parallel>, #tpu.dimension_semantics<arbitrary>], iteration_bounds = array<i64: 2, 1, 1>, scalar_prefetch = 0 : i64, scratch_operands = 1 : i64, tpu.core_type = #tpu.core_type<tc>, window_params = [{transform_indices = @transform_0, window_bounds = array<i64: 8, 85>}, {transform_indices = @transform_1, window_bounds = array<i64: 85, 32>}, {transform_indices = @transform_2, window_bounds = array<i64: 8, 32>}, {transform_indices = @transform_3, window_bounds = array<i64: 8, 32>}]} {
    %c0 = arith.constant 0 : index
    %c0_0 = arith.constant 0 : index
    %0 = vector.load %arg3[%c0, %c0_0] : memref<8x85xf32, #tpu.memory_space<vmem>>, vector<8x85xf32>
    %c0_1 = arith.constant 0 : index
    %c0_2 = arith.constant 0 : index
    %1 = vector.load %arg4[%c0_1, %c0_2] : memref<85x32xf32, #tpu.memory_space<vmem>>, vector<85x32xf32>
    %cst = arith.constant dense<0.000000e+00> : vector<8x32xf32>
    %2 = tpu.matmul %0, %1, %cst {dimension_numbers = #tpu.dot_dimension_numbers<[1], [0], [0], [1], [0, 0, 1, 1], [], []>} : vector<8x85xf32>, vector<85x32xf32>, vector<8x32xf32> -> vector<8x32xf32>
    %c0_i32 = arith.constant 0 : i32
    %3 = arith.cmpi eq, %arg2, %c0_i32 : i32
    %4 = arith.extui %3 : i1 to i32
    %c0_i32_3 = arith.constant 0 : i32
    %5 = arith.cmpi ne, %4, %c0_i32_3 : i32
    scf.if %5 {
      %c0_8 = arith.constant 0 : index
      %c0_9 = arith.constant 0 : index
      %12 = vector.load %arg7[%c0_8, %c0_9] : memref<8x32xf32, #tpu.memory_space<vmem>>, vector<8x32xf32>
      tpu.vector_store %arg7[%c0_8, %c0_9], %2 {strides = array<i32>} : memref<8x32xf32, #tpu.memory_space<vmem>>, vector<8x32xf32>,
    } else {
    }
    %c0_i32_4 = arith.constant 0 : i32
    %6 = arith.cmpi sgt, %arg2, %c0_i32_4 : i32
    %7 = arith.extui %6 : i1 to i32
    %c0_i32_5 = arith.constant 0 : i32
    %8 = arith.cmpi ne, %7, %c0_i32_5 : i32
    scf.if %8 {
      %c0_8 = arith.constant 0 : index
      %c0_9 = arith.constant 0 : index
      %12 = vector.load %arg7[%c0_8, %c0_9] : memref<8x32xf32, #tpu.memory_space<vmem>>, vector<8x32xf32>
      %13 = arith.addf %12, %2 : vector<8x32xf32>
      %c0_10 = arith.constant 0 : index
      %c0_11 = arith.constant 0 : index
      %14 = vector.load %arg7[%c0_10, %c0_11] : memref<8x32xf32, #tpu.memory_space<vmem>>, vector<8x32xf32>
      tpu.vector_store %arg7[%c0_10, %c0_11], %13 {strides = array<i32>} : memref<8x32xf32, #tpu.memory_space<vmem>>, vector<8x32xf32>,
    } else {
    }
    %c0_i32_6 = arith.constant 0 : i32
    %9 = arith.cmpi eq, %arg2, %c0_i32_6 : i32
    %10 = arith.extui %9 : i1 to i32
    %c0_i32_7 = arith.constant 0 : i32
    %11 = arith.cmpi ne, %10, %c0_i32_7 : i32
    scf.if %11 {
      %c0_8 = arith.constant 0 : index
      %c0_9 = arith.constant 0 : index
      %12 = vector.load %arg7[%c0_8, %c0_9] : memref<8x32xf32, #tpu.memory_space<vmem>>, vector<8x32xf32>
      %c0_10 = arith.constant 0 : index
      %c0_11 = arith.constant 0 : index
      %13 = vector.load %arg5[%c0_10, %c0_11] : memref<8x32xf32, #tpu.memory_space<vmem>>, vector<8x32xf32>
      %14 = arith.addf %12, %13 : vector<8x32xf32>
      %c0_12 = arith.constant 0 : index
      %c0_13 = arith.constant 0 : index
      %15 = vector.load %arg6[%c0_12, %c0_13] : memref<8x32xf32, #tpu.memory_space<vmem>>, vector<8x32xf32>
      tpu.vector_store %arg6[%c0_12, %c0_13], %14 {strides = array<i32>} : memref<8x32xf32, #tpu.memory_space<vmem>>, vector<8x32xf32>,
    } else {
    }
    return
  }
  func.func @transform_0(%arg0: i32, %arg1: i32, %arg2: i32) -> (i32, i32) {
    %c0_i32 = arith.constant 0 : i32
    return %arg0, %arg2 : i32, i32
  }
  func.func @transform_1(%arg0: i32, %arg1: i32, %arg2: i32) -> (i32, i32) {
    %c0_i32 = arith.constant 0 : i32
    return %arg2, %arg1 : i32, i32
  }
  func.func @transform_2(%arg0: i32, %arg1: i32, %arg2: i32) -> (i32, i32) {
    %c0_i32 = arith.constant 0 : i32
    return %arg0, %arg1 : i32, i32
  }
  func.func @transform_3(%arg0: i32, %arg1: i32, %arg2: i32) -> (i32, i32) {
    %c0_i32 = arith.constant 0 : i32
    return %arg0, %arg1 : i32, i32
  }
}

</mosaic_0001>

<bundles_post_ra>
// kernel: block_forward.7
= control target key start
LH: loop header
LB: loop body
LE: loop exit
PB: predicated region body
PF: predicated region fallthrough
CT: control target
= control target key end

     0   :  { %6 = vsyncpa [#allocation3], 0  ;;  %s435_s0 = inlined_call_operand.hbm [shape: f32[16,32], index: 0, kind: input, shape index: {}]   ;;  %s436_s1 = inlined_call_operand.vmem [shape: f32[16,1], index: 1, kind: output, shape index: {}]  }
   0x1   :  { %8 = vsyncpa [#allocation3 + $0x1], 0  ;;  %s335_s6 = smov 0   ;;  %s337_s7 = smov 0  }
   0x2   :  { %s339_s8 = smov 0   ;;  %s341_s9 = smov 0  }
   0x3 LB: > { %s354_s10 = sadd.s32 4294967295, %s322_s9   ;;  %s357_s11 = sadd.s32 1, %s322_s9   ;;  %s322_s9 = sphi %s341_s9, %s446_s9   ;;  %s318_s8 = sphi %s339_s8, %s445_s8   ;;  %s314_s7 = sphi %s337_s7, %s444_s7   ;;  %s310_s6 = sphi %s335_s6, %s443_s6  }
   0x4   : > { %s18_s12 = ssub.s32 %s322_s9, %s357_s11  ;;  %s21_s13 = sadd.s32 1, %s318_s8 }
   0x5   : > { %p19_p0 = scmp.eq.s32.totalorder %s18_s12, 0  ;;  %p28_p1 = scmp.ne.s32.totalorder %s318_s8, %s314_s7 }
   0x6   : > { %p29_p2 = scmp.eq.s32.totalorder %s322_s9, 0  ;;  %p34_p3 = scmp.ne.s32.totalorder %s314_s7, %s310_s6 }
   0x7   : > { %s367_s14 = scalar_select %p19_p0, %s318_s8, %s21_s13  }
   0x8   : > { %p30_p4 = por %p29_p2, %p28_p1  ;;  %p35_p5 = scmp.eq.s32.totalorder %s354_s10, 0 }
   0x9   : > { %p225_p6 = scmp.lt.s32.totalorder %s322_s9, 2  ;;  %s84_s16 = sand.u32 1, %s318_s8  }
   0xa   : > { %p371_p7 = por %p35_p5, %p34_p3  ;;  %s212_s17 = sshll.u32 %s84_s16, 3 }
   0xb   : > { %s213_s18 = sshll.u32 %s322_s9, 7  ;;  %s88_s22 = scalar_lea.vmem [#allocation2], %s212_s17 }
   0xc   : > { %s438_s15 = scalar_select %p371_p7, 1, 0 }
   0xd   : > { %s380_s21 = scalar_lea.hbm %s435_s0, %s213_s18  ;;  %s95_s23 = sshll.u32 %s88_s22, 4  ;;  %s382_s23 = int_to_ptr.vmem [resolvable:$true] %s95_s23 }
   0xe   : > { %p384_p8 = pnand %p225_p6, %p30_p4  ;;  %s85_s25 = scalar_lea.sflag [#allocation3], %s84_s16 }
   0xf   : > { %s260_s26 = scalar_lea.hbm %s380_s21, 128  ;;  %s265_s29 = scalar_lea.hbm %s435_s0, 256 }
  0x10   : > { %p261_p11 = scmp.ne.s32.totalorder %s380_s21, %s260_s26  ;;  %p262_p12 = pneg %p384_p8 }
  0x11   : > { %p266_p1 = scmp.lt.s32.totalorder %s380_s21, %s435_s0  ;;  %p267_p2 = scmp.lt.s32.totalorder %s265_s29, %s260_s26 }
  0x12   : > { %p263_p13 = pnand %p262_p12, %p261_p11 }
  0x13   : > { %p268_p3 = por %p267_p2, %p266_p1 }
  0x14   : > { %p264_p0 = pneg %p263_p13 }
  0x16   : > { %p269_p4 = pnand %p268_p3, %p264_p0 }
  0x18   : > { %272 = shalt.err (!%p269_p4)
}
  0x19   : > { %s273_s3 = scalar_lea.vmem %s382_s23, 128  ;;  %s324_s4 = smov [#allocation2]  }
  0x1a   : > { %p274_p5 = scmp.ne.s32.totalorder %s382_s23, %s273_s3  ;;  %s278_s5 = sshll.u32 %s324_s4, 4  ;;  %s279_s5 = int_to_ptr.vmem [resolvable:$false] %s278_s5 }
  0x1b   : > { %s280_s6 = scalar_lea.vmem %s279_s5, 256  ;;  %p281_p13 = scmp.lt.s32.totalorder %s382_s23, %s279_s5 }
  0x1c   : > { %p276_p6 = pnand %p274_p5, %p262_p12  ;;  %p282_p9 = scmp.lt.s32.totalorder %s280_s6, %s273_s3 }
  0x1e   : > { %p277_p11 = pneg %p276_p6  ;;  %p283_p10 = por %p282_p9, %p281_p13 }
  0x20   : > { %p284_p7 = pnand %p283_p10, %p277_p11 }
  0x22   : > { %287 = shalt.err (!%p284_p7)
}
  0x23   : > { %224 = dma.hbm_to_vmem [thread:$0]  (!%p384_p8), %s380_s21, 128, %s382_s23, %s85_s25  }
  0x24   : > { %p440_p0 = scmp.lt.s32.totalorder %s322_s9, 3  ;;  %p441_p1 = scmp.ge.s32.totalorder %s322_s9, 1 }
  0x26   : > { %p101_p12 = pnand %p441_p1, %p440_p0 }
  0x27   : > { %s106_s12 = sand.u32 (!%p101_p12), 1, %s314_s7   ;;  %p442_p9 = scmp.ne.s32.totalorder (!%p101_p12), %s438_s15, 0 }
  0x28   : > { %104 = sbr.rel (%p101_p12) target bundleno = 207 (0xcf), region = 24  ;;  %s215_s13 = sshll.u32 (!%p101_p12), %s106_s12, 3 }
  0x29   : > { %s107_s16 = scalar_lea.sflag (!%p101_p12), [#allocation3], %s106_s12  ;;  %s110_s17 = scalar_lea.vmem (!%p101_p12), [#allocation2], %s215_s13 }
  0x2d   : > { %305 = dma.done.wait (%p442_p9), %s107_s16, 128  }
  0x2e   : > { %307 = vsyncadd (%p442_p9), %s107_s16, 4294967168  ;;  %v132_v0 = vld [vmem:[%s110_s17] sm:$0xff]  ;;  %vm134_vm0 = vcmask 261120   ;;  %p128_p7 = scmp.lt.s32.totalorder %s354_s10, 1  ;;  %vm142_vm1 = vcmask 7168  }
  0x2f   : > { %v133_v1 = vmul.f32 %v132_v0, %v132_v0 }
  0x30   : > { %s448_s10 = smov (!%p128_p7, %s354_s10), 1 }
  0x31   : > { %v135_v2 = vsel %vm134_vm0, %v133_v1, 0.0  ;;  %s216_s9 = sshll.u32 %s448_s10, 3 }
  0x32   : > { %136 = vadd.xlane.f32.xlu0 %v135_v2  ;;  %s131_s20 = scalar_lea.vmem %s436_s1, %s216_s9 }
  0xbb   : > { %v137_v3 = vpop.xlane.xlu0 %136 }
  0xbc   : > { %v139_v4 = vmul.f32 0.03125, %v137_v3 }
  0xbe   : > { %v140_v5 = vadd.f32 1.1920929e-07, %v139_v4 }
  0xc0   : > { %258 = vrsqrt.f32 %v140_v5 }
  0xcd   : > { %v259_v6 = vpop.eup %258 }
  0xce   : > { %143 = vst.msk [vmem:[%s131_s20] sm:$0xff] %vm142_vm1, %v259_v6 }
  0xcf PF: > { %p11_p8 = scmp.ge.s32.totalorder %s357_s11, 4   ;;  %s443_s6 = smov %s314_s7 }
  0xd0   : > { %s444_s7 = smov %s318_s8  ;;  %s445_s8 = smov %s367_s14 }
  0xd1   : > { %s446_s9 = smov %s357_s11  ;;  %13 = sbr.rel (!%p11_p8) target bundleno = 3 (0x3), region = 64 }
  0xd6   :  { %163 = vsyncpa [#allocation3], 1 }
  0xd7   :  { %165 = vsyncpa [#allocation3 + $0x1], 1 }

// kernel: block_forward.8
= control target key start
LH: loop header
LB: loop body
LE: loop exit
PB: predicated region body
PF: predicated region fallthrough
CT: control target
= control target key end

     0   :  { %9 = vsyncpa [#allocation4], 0  ;;  %s678_s15 = smov 0   ;;  %s680_s16 = smov 0   ;;  %s748_s0 = inlined_call_operand.vmem [shape: f32[16,32], index: 0, kind: input, shape index: {}]   ;;  %s749_s1 = inlined_call_operand.vmem [shape: f32[16,1], index: 1, kind: input, shape index: {}]   ;;  %s750_s2 = inlined_call_operand.vmem [shape: f32[1,32], index: 2, kind: input, shape index: {}]   ;;  %s751_s3 = inlined_call_operand.hbm [shape: f32[32,96], index: 3, kind: input, shape index: {}]   ;;  %s752_s4 = inlined_call_operand.vmem [shape: f32[16,96], index: 4, kind: output, shape index: {}]  }
   0x1   :  { %s682_s17 = smov 0  }
   0x2 LB: > { %s521_s18 = sadd.s32 4294967295, %s645_s17   ;;  %s34_s19 = sadd.s32 1, %s641_s16  ;;  %s645_s17 = sphi %s682_s17, %s15_s17   ;;  %s641_s16 = sphi %s680_s16, %s756_s16   ;;  %s637_s15 = sphi %s678_s15, %s755_s15  }
   0x3   : > { %p36_p0 = scmp.ge.s32.totalorder %s34_s19, 2  ;;  %p523_p1 = scmp.ge.s32.totalorder %s645_s17, 1 }
   0x4   : > { %p175_p2 = scmp.lt.s32.totalorder %s645_s17, 3  ;;  %p703_p4 = scmp.eq.s32.totalorder %s521_s18, 0 }
   0x5   : > { %s758_s19 = smov (%p36_p0, %s34_s19), 0  ;;  %s647_s22 = smov [#allocation3]  }
   0x6   : > { %p699_p3 = pnand %p523_p1, %p175_p2  ;;  %s197_s23 = sshll.u32 %s647_s22, 4  ;;  %s198_s23 = int_to_ptr.vmem [resolvable:$true] %s197_s23 }
   0x7   : > { %s604_s24 = scalar_lea.vmem %s198_s23, 512  ;;  %p612_p11 = scmp.lt.s32.totalorder %s198_s23, %s198_s23 }
   0x8   : > { %p556_p5 = pneg %p699_p3  ;;  %p605_p8 = scmp.ne.s32.totalorder %s198_s23, %s604_s24 }
   0x9   : > { %p613_p12 = scmp.lt.s32.totalorder %s604_s24, %s604_s24 }
   0xa   : > { %p557_p6 = pnand %p703_p4, %p556_p5 }
   0xb   : > { %p614_p13 = por %p613_p12, %p612_p11 }
   0xc   : > { %p595_p7 = pneg %p557_p6 }
   0xe   : > { %p607_p9 = pnand %p605_p8, %p595_p7 }
  0x10   : > { %p608_p10 = pneg %p607_p9 }
  0x12   : > { %p615_p0 = pnand %p614_p13, %p608_p10 }
  0x14   : > { %618 = shalt.err (!%p615_p0)
}
  0x15   : > { %s648_s25 = smov 128   ;;  %s649_s26 = smov 8  }
  0x16   : > { %559 = dma.hbm_to_vmem [thread:$0]  (!%p557_p6), %s751_s3, 512, %s198_s23, [#allocation4], %s648_s25, %s648_s25, %s649_s26  }
  0x17   : > { %230 = sbr.rel (%p699_p3) target bundleno = 365 (0x16d), region = 36 }
  0x1c   : > { %632 = dma.done.wait (%p703_p4), [#allocation4], 512  }
  0x1d   : > { %634 = vsyncadd (%p703_p4), [#allocation4], 4294966784  ;;  %p267_p1 = scmp.lt.s32.totalorder %s637_s15, 1  ;;  %v650_v0 = vmov 0   ;;  %v651_v1 = vmov 0.0   ;;  %v308_v3 = vld [vmem:[#allocation3 + $0x18] sm:$0xff] }
  0x1e   : > { %592 = vset.pattern.permute.xlu0 %v650_v0  ;;  %541 = vmatprep.subr.mxu0 %v651_v1  ;;  %v307_v4 = vld [vmem:[#allocation3 + $0x10] sm:$0xff]  ;;  %vm652_vm0 = vmmov 0   ;;  %v306_v5 = vld [vmem:[#allocation3 + $0x8] sm:$0xff]  ;;  %v305_v6 = vld [vmem:[#allocation3] sm:$0xff]  ;;  %vm309_vm1 = vcmask 261120   ;;  %vm387_vm2 = vcmask 785408  }
  0x1f   : > { %s760_s15 = smov (!%p267_p1, %s637_s15), 1  ;;  %549 = vmatprep.mubr.msk.f32.mxu0 %vm652_vm0, %v651_v1  ;;  %542 = vmatpush3.msra.mxu0 %v308_v3  ;;  %v532_v8 = vld [vmem:[%s750_s2] ss:$0 sm:$0xff] }
  0x20   : > { %s722_s29 = sshll.u32 %s760_s15, 3  ;;  %543 = vmatprep.subr.mxu0 %v651_v1 }
  0x21   : > { %s277_s6 = scalar_lea.vmem %s749_s1, %s722_s29  ;;  %544 = vmatpush3.msra.mxu0 %v307_v4  ;;  %s273_s9 = scalar_lea.vmem %s748_s0, %s722_s29 }
  0x22   : > { %v290_v2 = vld [vmem:[%s277_s6] sm:$0xff]  ;;  %545 = vmatprep.subr.mxu0 %v651_v1  ;;  %s288_s14 = scalar_lea.vmem %s752_s4, %s722_s29 }
  0x23   : > { %293 = vperm.xlu0 %592, %v290_v2   ;;  %546 = vmatpush3.msra.mxu0 %v306_v5  ;;  %v289_v7 = vld [vmem:[%s273_s9] sm:$0xff] }
  0x24   : > { %547 = vmatprep.subr.mxu0 %v651_v1 }
  0x25   : > { %548 = vmatpush3.msra.mxu0 %v305_v6 }
  0x9e   : > { %v294_v9 = vpop.permute.xlu0 %293 }
  0x9f   : > { %v296_v10 = vmul.f32 %v294_v9, %v289_v7 }
  0xa1   : > { %v304_v11 = vmul.f32 %v532_v8, %v296_v10 }
  0xa3   : > { %550 = vmatmul.mubr.msk.f32.vlgmr.msra.gmra.mxu0 %vm309_vm1, %v304_v11 }
 0x163   : > { %v379_v12 = vpop.f32.mrf.mxu0 }
 0x164   : > { %388 = vst.msk [vmem:[#allocation2] sm:$0xff] %vm387_vm2, %v379_v12 }
 0x165   : > { %v551_v13 = vpop.f32.mrf.mxu0 }
 0x16b   : > { %v400_v14 = vld [vmem:[#allocation2] sm:$0xff] }
 0x16c   : > { %402 = vst.msk [vmem:[%s288_s14] sm:$0xff] %vm387_vm2, %v400_v14 }
 0x16d PF: > { %s15_s17 = sadd.s32 1, %s645_s17   ;;  %s755_s15 = smov %s641_s16 }
 0x16e   : > { %p12_p2 = scmp.ge.s32.totalorder %s15_s17, 4   ;;  %s756_s16 = smov %s758_s19 }
 0x170   :  { %14 = sbr.rel (!%p12_p2) target bundleno = 2 (0x2), region = 90 }
 0x175   :  { %428 = vsyncpa [#allocation4], 1 }
 0x176   :  { %430 = vsyncpa [#allocation4 + $0x1], 1 }

// kernel: block_forward.10
= control target key start
LH: loop header
LB: loop body
LE: loop exit
PB: predicated region body
PF: predicated region fallthrough
CT: control target
= control target key end

     0   :  { %s574_s12 = smov 0   ;;  %s576_s13 = smov 0   ;;  %s622_s0 = inlined_call_operand.vmem [shape: f32[16,32], index: 0, kind: input, shape index: {}]   ;;  %s623_s1 = inlined_call_operand.vmem [shape: f32[32,32], index: 1, kind: input, shape index: {}]   ;;  %s624_s2 = inlined_call_operand.vmem [shape: f32[16,32], index: 2, kind: input, shape index: {}]   ;;  %s625_s3 = inlined_call_operand.vmem [shape: f32[16,32], index: 3, kind: output, shape index: {}]  }
   0x1   :  { %s578_s14 = smov 0  }
   0x2 LB: > { %s32_s15 = sadd.s32 1, %s546_s13  ;;  %p479_p0 = scmp.ge.s32.totalorder %s550_s14, 1  ;;  %s550_s14 = sphi %s578_s14, %s13_s14   ;;  %s546_s13 = sphi %s576_s13, %s627_s13   ;;  %s542_s12 = sphi %s574_s12, %s626_s12  }
   0x3   : > { %p34_p1 = scmp.ge.s32.totalorder %s32_s15, 2  ;;  %p192_p2 = scmp.lt.s32.totalorder %s550_s14, 3 }
   0x5   : > { %s629_s15 = smov (%p34_p1, %s32_s15), 0  ;;  %p193_p3 = pnand %p479_p0, %p192_p2 }
   0x6   : > { %p235_p4 = scmp.lt.s32.totalorder (!%p193_p3), %s542_s12, 1 }
   0x7   : > { %196 = sbr.rel (%p193_p3) target bundleno = 225 (0xe1), region = 32 }
   0xc   : > { %v269_v0 = vld [vmem:[%s623_s1 + $0x18] sm:$0xff]  ;;  %v552_v1 = vmov 0.0   ;;  %v268_v2 = vld [vmem:[%s623_s1 + $0x10] sm:$0xff]  ;;  %vm553_vm0 = vmmov 0   ;;  %s631_s12 = smov (!%p235_p4, %s542_s12), 1  ;;  %v267_v3 = vld [vmem:[%s623_s1 + $0x8] sm:$0xff] }
   0xd   : > { %491 = vmatprep.subr.mxu0 %v552_v1  ;;  %499 = vmatprep.mubr.msk.f32.mxu0 %vm553_vm0, %v552_v1  ;;  %s480_s22 = sshll.u32 %s631_s12, 3  ;;  %v266_v4 = vld [vmem:[%s623_s1] sm:$0xff]  ;;  %vm270_vm1 = vcmask 261120  }
   0xe   : > { %492 = vmatpush3.msra.mxu0 %v269_v0  ;;  %s241_s27 = scalar_lea.vmem %s622_s0, %s480_s22  ;;  %s257_s30 = scalar_lea.vmem %s624_s2, %s480_s22 }
   0xf   : > { %493 = vmatprep.subr.mxu0 %v552_v1  ;;  %v265_v5 = vld [vmem:[%s241_s27] sm:$0xff]  ;;  %s264_s6 = scalar_lea.vmem %s625_s3, %s480_s22 }
  0x10   : > { %494 = vmatpush3.msra.mxu0 %v268_v2  ;;  %v360_v8 = vld [vmem:[%s257_s30] sm:$0xff] }
  0x11   : > { %495 = vmatprep.subr.mxu0 %v552_v1 }
  0x12   : > { %496 = vmatpush3.msra.mxu0 %v267_v3 }
  0x13   : > { %497 = vmatprep.subr.mxu0 %v552_v1 }
  0x14   : > { %498 = vmatpush3.msra.mxu0 %v266_v4 }
  0x15   : > { %500 = vmatmul.mubr.msk.f32.vlgmr.msra.gmra.mxu0 %vm270_vm1, %v265_v5 }
  0xd5   : > { %v340_v6 = vpop.f32.mrf.mxu0 }
  0xd6   : > { %348 = vst.msk [vmem:[#allocation2] sm:$0xff] %vm270_vm1, %v340_v6 }
  0xd7   : > { %v501_v7 = vpop.f32.mrf.mxu0 }
  0xdd   : > { %v359_v9 = vld [vmem:[#allocation2] sm:$0xff] }
  0xde   : > { %v361_v10 = vadd.f32 %v360_v8, %v359_v9 }
  0xe0   : > { %362 = vst.msk [vmem:[%s264_s6] sm:$0xff] %vm270_vm1, %v361_v10 }
  0xe1 PF: > { %s13_s14 = sadd.s32 1, %s550_s14   ;;  %s626_s12 = smov %s546_s13 }
  0xe2   : > { %p10_p5 = scmp.ge.s32.totalorder %s13_s14, 4   ;;  %s627_s13 = smov %s629_s15 }
  0xe4   :  { %12 = sbr.rel (!%p10_p5) target bundleno = 2 (0x2), region = 80 }

// kernel: block_forward.11
= control target key start
LH: loop header
LB: loop body
LE: loop exit
PB: predicated region body
PF: predicated region fallthrough
CT: control target
= control target key end

     0   :  { %s214_s6 = smov 0   ;;  %s225_s0 = inlined_call_operand.vmem [shape: f32[16,32], index: 0, kind: input, shape index: {}]   ;;  %s226_s1 = inlined_call_operand.vmem [shape: f32[16,1], index: 1, kind: output, shape index: {}]  }
   0x1 LB: > { %s177_s7 = sadd.s32 4294967295, %s202_s6   ;;  %p181_p0 = scmp.ge.s32.totalorder %s202_s6, 1  ;;  %s202_s6 = sphi %s214_s6, %s11_s6  }
   0x2   : > { %p86_p1 = scmp.lt.s32.totalorder %s202_s6, 3 }
   0x4   : > { %p87_p2 = pnand %p181_p0, %p86_p1 }
   0x5   : > { %p104_p3 = scmp.lt.s32.totalorder (!%p87_p2), %s177_s7, 1 }
   0x6   : > { %90 = sbr.rel (%p87_p2) target bundleno = 175 (0xaf), region = 24 }
   0xb   : > { %s228_s7 = smov (!%p104_p3, %s177_s7), 1  ;;  %vm114_vm0 = vcmask 261120   ;;  %vm122_vm1 = vcmask 7168  }
   0xc   : > { %s182_s8 = sshll.u32 %s228_s7, 3 }
   0xd   : > { %s107_s11 = scalar_lea.vmem %s225_s0, %s182_s8  ;;  %s111_s14 = scalar_lea.vmem %s226_s1, %s182_s8 }
   0xe   : > { %v112_v0 = vld [vmem:[%s107_s11] sm:$0xff] }
   0xf   : > { %v113_v1 = vmul.f32 %v112_v0, %v112_v0 }
  0x11   : > { %v115_v2 = vsel %vm114_vm0, %v113_v1, 0.0 }
  0x12   : > { %116 = vadd.xlane.f32.xlu0 %v115_v2 }
  0x9b   : > { %v117_v3 = vpop.xlane.xlu0 %116 }
  0x9c   : > { %v119_v4 = vmul.f32 0.03125, %v117_v3 }
  0x9e   : > { %v120_v5 = vadd.f32 1.1920929e-07, %v119_v4 }
  0xa0   : > { %194 = vrsqrt.f32 %v120_v5 }
  0xad   : > { %v195_v6 = vpop.eup %194 }
  0xae   : > { %123 = vst.msk [vmem:[%s111_s14] sm:$0xff] %vm122_vm1, %v195_v6 }
  0xaf PF: > { %s11_s6 = sadd.s32 1, %s202_s6  }
  0xb0   : > { %p8_p4 = scmp.ge.s32.totalorder %s11_s6, 4  }
  0xb2   :  { %10 = sbr.rel (!%p8_p4) target bundleno = 1 (0x1), region = 54 }

// kernel: block_forward.12
= control target key start
LH: loop header
LB: loop body
LE: loop exit
PB: predicated region body
PF: predicated region fallthrough
CT: control target
= control target key end

     0   :  { %s830_s18 = smov 0   ;;  %s832_s19 = smov 0   ;;  %s901_s0 = inlined_call_operand.vmem [shape: f32[16,32], index: 0, kind: input, shape index: {}]   ;;  %s902_s1 = inlined_call_operand.vmem [shape: f32[16,1], index: 1, kind: input, shape index: {}]   ;;  %s903_s2 = inlined_call_operand.vmem [shape: f32[1,32], index: 2, kind: input, shape index: {}]   ;;  %s904_s3 = inlined_call_operand.vmem [shape: f32[32,85], index: 3, kind: input, shape index: {}]   ;;  %s905_s4 = inlined_call_operand.vmem [shape: f32[32,85], index: 4, kind: input, shape index: {}]   ;;  %s906_s5 = inlined_call_operand.vmem [shape: f32[16,85], index: 5, kind: output, shape index: {}]  }
   0x1   :  { %s834_s20 = smov 0  }
   0x2 LB: > { %s34_s21 = sadd.s32 1, %s791_s19  ;;  %p700_p0 = scmp.ge.s32.totalorder %s795_s20, 1  ;;  %s795_s20 = sphi %s834_s20, %s15_s20   ;;  %s791_s19 = sphi %s832_s19, %s908_s19   ;;  %s787_s18 = sphi %s830_s18, %s907_s18  }
   0x3   : > { %p36_p1 = scmp.ge.s32.totalorder %s34_s21, 2  ;;  %p261_p2 = scmp.lt.s32.totalorder %s795_s20, 3 }
   0x5   : > { %s910_s21 = smov (%p36_p1, %s34_s21), 0  ;;  %p262_p3 = pnand %p700_p0, %p261_p2 }
   0x6   : > { %p316_p4 = scmp.lt.s32.totalorder (!%p262_p3), %s787_s18, 1 }
   0x7   : > { %265 = sbr.rel (%p262_p3) target bundleno = 387 (0x183), region = 40 }
   0xc   : > { %v374_v0 = vld [vmem:[%s904_s3 + $0x18] sm:$0xff]  ;;  %v797_v2 = vmov 0   ;;  %v798_v3 = vmov 0.0   ;;  %v373_v4 = vld [vmem:[%s904_s3 + $0x10] sm:$0xff]  ;;  %s912_s18 = smov (!%p316_p4, %s787_s18), 1  ;;  %v372_v6 = vld [vmem:[%s904_s3 + $0x8] sm:$0xff] }
   0xd   : > { %v452_v1 = vld [vmem:[%s905_s4 + $0x18] sm:$0xff]  ;;  %768 = vset.pattern.permute.xlu0 %v797_v2  ;;  %719 = vmatprep.subr.mxu0 %v798_v3  ;;  %v451_v5 = vld [vmem:[%s905_s4 + $0x10] sm:$0xff]  ;;  %s863_s7 = sshll.u32 %s912_s18, 3  ;;  %v450_v7 = vld [vmem:[%s905_s4 + $0x8] sm:$0xff]  ;;  %vm799_vm0 = vmmov 0   ;;  %vm375_vm1 = vcmask 261120  }
   0xe   : > { %730 = vmatprep.subr.mxu1 %v798_v3  ;;  %720 = vmatpush3.msra.mxu0 %v374_v0  ;;  %s326_s12 = scalar_lea.vmem %s902_s1, %s863_s7  ;;  %v371_v9 = vld [vmem:[%s904_s3] sm:$0xff]  ;;  %s322_s22 = scalar_lea.vmem %s901_s0, %s863_s7  ;;  %vm527_vm2 = vcmask 695296  }
   0xf   : > { %731 = vmatpush3.msra.mxu1 %v452_v1  ;;  %721 = vmatprep.subr.mxu0 %v798_v3  ;;  %v356_v8 = vld [vmem:[%s326_s12] sm:$0xff]  ;;  %s354_s27 = scalar_lea.vmem %s906_s5, %s863_s7 }
  0x10   : > { %732 = vmatprep.subr.mxu1 %v798_v3  ;;  %722 = vmatpush3.msra.mxu0 %v373_v4  ;;  %v449_v10 = vld [vmem:[%s905_s4] sm:$0xff] }
  0x11   : > { %733 = vmatpush3.msra.mxu1 %v451_v5  ;;  %723 = vmatprep.subr.mxu0 %v798_v3  ;;  %v355_v11 = vld [vmem:[%s322_s22] sm:$0xff] }
  0x12   : > { %734 = vmatprep.subr.mxu1 %v798_v3  ;;  %724 = vmatpush3.msra.mxu0 %v372_v6  ;;  %v704_v12 = vld [vmem:[%s903_s2] ss:$0 sm:$0xff] }
  0x13   : > { %359 = vperm.xlu0 %768, %v356_v8   ;;  %735 = vmatpush3.msra.mxu1 %v450_v7 }
  0x14   : > { %725 = vmatprep.subr.mxu0 %v798_v3  ;;  %736 = vmatprep.subr.mxu1 %v798_v3 }
  0x15   : > { %726 = vmatpush3.msra.mxu0 %v371_v9  ;;  %727 = vmatprep.mubr.msk.f32.mxu0 %vm799_vm0, %v798_v3 }
  0x16   : > { %737 = vmatpush3.msra.mxu1 %v449_v10  ;;  %738 = vmatprep.mubr.msk.f32.mxu1 %vm799_vm0, %v798_v3 }
  0x8e   : > { %v360_v13 = vpop.permute.xlu0 %359 }
  0x8f   : > { %v362_v14 = vmul.f32 %v360_v13, %v355_v11 }
  0x91   : > { %v370_v15 = vmul.f32 %v704_v12, %v362_v14 }
  0x93   : > { %728 = vmatmul.mubr.msk.f32.vlgmr.msra.gmra.mxu0 %vm375_vm1, %v370_v15  ;;  %739 = vmatmul.mubr.msk.f32.vlgmr.msra.gmra.mxu1 %vm375_vm1, %v370_v15 }
 0x153   : > { %v445_v16 = vpop.f32.mrf.mxu0  ;;  %v519_v17 = vpop.f32.mrf.mxu1 }
 0x154   : > { %528 = vst.msk [vmem:[#allocation2] sm:$0xff] %vm527_vm2, %v445_v16  ;;  %529 = vst.msk [vmem:[#allocation3] sm:$0xff] %vm527_vm2, %v519_v17 }
 0x155   : > { %v729_v18 = vpop.f32.mrf.mxu0  ;;  %v740_v19 = vpop.f32.mrf.mxu1 }
 0x15b   : > { %v544_v20 = vld [vmem:[#allocation2] sm:$0xff]  ;;  %v551_v27 = vld [vmem:[#allocation3] sm:$0xff] }
 0x15c   : > { %v545_v21 = vsub.f32 0.0, %v544_v20 }
 0x15e   : > { %v546_v22 = vmul.f32 1.442695, %v545_v21 }
 0x160   : > { %769 = vpow2.f32 %v546_v22 }
 0x16d   : > { %v770_v23 = vpop.eup %769 }
 0x16e   : > { %v548_v24 = vadd.f32 1.0, %v770_v23 }
 0x170   : > { %771 = vrcp.f32 %v548_v24 }
 0x17d   : > { %v772_v25 = vpop.eup %771 }
 0x17e   : > { %v550_v26 = vmul.f32 %v772_v25, %v544_v20 }
 0x180   : > { %v552_v28 = vmul.f32 %v551_v27, %v550_v26 }
 0x182   : > { %554 = vst.msk [vmem:[%s354_s27] sm:$0xff] %vm527_vm2, %v552_v28 }
 0x183 PF: > { %s15_s20 = sadd.s32 1, %s795_s20   ;;  %s907_s18 = smov %s791_s19 }
 0x184   : > { %p12_p5 = scmp.ge.s32.totalorder %s15_s20, 4   ;;  %s908_s19 = smov %s910_s21 }
 0x186   :  { %14 = sbr.rel (!%p12_p5) target bundleno = 2 (0x2), region = 94 }

// kernel: block_forward.13
= control target key start
LH: loop header
LB: loop body
LE: loop exit
PB: predicated region body
PF: predicated region fallthrough
CT: control target
= control target key end

     0   :  { %8 = vsyncpa [#allocation4], 0  ;;  %s841_s0 = inlined_call_operand.vmem [shape: f32[16,85], index: 0, kind: input, shape index: {}]   ;;  %s842_s1 = inlined_call_operand.vmem [shape: f32[85,32], index: 1, kind: input, shape index: {}]   ;;  %s843_s2 = inlined_call_operand.vmem [shape: f32[16,32], index: 2, kind: input, shape index: {}]   ;;  %s844_s3 = inlined_call_operand.hbm [shape: f32[16,32], index: 3, kind: output, shape index: {}]  }
   0x1   :  { %10 = vsyncpa [#allocation4 + $0x1], 0  ;;  %s703_s12 = smov 0   ;;  %s705_s13 = smov 0  }
   0x2   :  { %s707_s14 = smov 0   ;;  %s709_s15 = smov 0  }
   0x3   :  { %s711_s16 = smov 0   ;;  %s713_s17 = smov 0  }
   0x4 LB: > { %s493_s18 = sadd.s32 4294967295, %s678_s17   ;;  %s494_s19 = sadd.s32 4294967294, %s678_s17   ;;  %s678_s17 = sphi %s713_s17, %s16_s17   ;;  %s674_s16 = sphi %s711_s16, %s851_s16   ;;  %s670_s15 = sphi %s709_s15, %s850_s15   ;;  %s666_s14 = sphi %s707_s14, %s849_s14   ;;  %s662_s13 = sphi %s705_s13, %s848_s13   ;;  %s658_s12 = sphi %s703_s12, %s847_s12  }
   0x5   : > { %s35_s20 = sadd.s32 1, %s674_s16  ;;  %s128_s21 = sadd.s32 1, %s666_s14 }
   0x6   : > { %p37_p0 = scmp.ge.s32.totalorder %s35_s20, 2  ;;  %p138_p1 = scmp.ne.s32.totalorder %s666_s14, %s662_s13 }
   0x7   : > { %p139_p2 = scmp.eq.s32.totalorder %s493_s18, 1  ;;  %p144_p3 = scmp.ne.s32.totalorder %s662_s13, %s658_s12 }
   0x8   : > { %s853_s20 = smov (%p37_p0, %s35_s20), 0  ;;  %p145_p5 = scmp.eq.s32.totalorder %s494_s19, 1 }
   0x9   : > { %p743_p4 = por %p139_p2, %p138_p1  ;;  %s123_s23 = ssub.s32 %s674_s16, %s853_s20 }
   0xa   : > { %p498_p6 = scmp.ge.s32.totalorder %s678_s17, 1  ;;  %p126_p7 = scmp.eq.s32.totalorder %s123_s23, 0 }
   0xb   : > { %p750_p8 = por %p145_p5, %p144_p3  ;;  %p195_p9 = scmp.lt.s32.totalorder %s678_s17, 3 }
   0xc   : > { %s756_s25 = scalar_select %p126_p7, %s666_s14, %s128_s21  }
   0xd   : > { %p196_p10 = pnand %p498_p6, %p195_p9 }
   0xe   : > { %p236_p11 = scmp.lt.s32.totalorder (!%p196_p10), %s670_s15, 1  ;;  %s233_s9 = sand.u32 (!%p196_p10), 1, %s662_s13  }
   0xf   : > { %199 = sbr.rel (%p196_p10) target bundleno = 259 (0x103), region = 32  ;;  %s499_s10 = sshll.u32 (!%p196_p10), %s233_s9, 3 }
  0x10   : > { %s505_s21 = sshll.u32 (!%p196_p10), %s670_s15, 7  ;;  %s235_s23 = scalar_lea.vmem (!%p196_p10), [#allocation3], %s499_s10 }
  0x11   : > { %s386_s27 = sshll.u32 (!%p196_p10), %s235_s23, 4  ;;  %s384_s30 = scalar_lea.hbm (!%p196_p10), %s844_s3, %s505_s21  ;;  %s387_s27 = int_to_ptr.vmem [resolvable:$true] %s386_s27 }
  0x12   : > { %s372_s4 = scalar_lea.sflag (!%p196_p10), [#allocation4], %s233_s9  ;;  %s602_s5 = scalar_lea.vmem (!%p196_p10), %s387_s27, 128 }
  0x13   : > { %p603_p12 = scmp.ne.s32.totalorder (!%p196_p10), %s387_s27, %s602_s5 }
  0x14   : > { %v270_v0 = vld [vmem:[%s842_s1 + $0x50] sm:$0x1f]  ;;  %vm275_vm0 = vcmask 1044480   ;;  %v680_v1 = vmov 0.0   ;;  %v269_v2 = vld [vmem:[%s842_s1 + $0x48] sm:$0xff]  ;;  %vm681_vm1 = vmmov 0  }
  0x15   : > { %520 = vmatprep.subr.mxu0 %v680_v1  ;;  %542 = vmatprep.mubr.msk.f32.mxu0 %vm681_vm1, %v680_v1  ;;  %v268_v3 = vld [vmem:[%s842_s1 + $0x40] sm:$0xff]  ;;  %v267_v4 = vld [vmem:[%s842_s1 + $0x38] sm:$0xff]  ;;  %v266_v5 = vld [vmem:[%s842_s1 + $0x30] sm:$0xff]  ;;  %s778_s11 = scalar_select %p236_p11, %s670_s15, 1  ;;  %vm271_vm2 = vcmask 695296   ;;  %vm353_vm3 = vcmask 261120  }
  0x16   : > { %521 = vmatpush3.msk.msra.mxu0 %vm275_vm0, %v270_v0  ;;  %v265_v6 = vld [vmem:[%s842_s1 + $0x28] sm:$0xff]  ;;  %v264_v7 = vld [vmem:[%s842_s1 + $0x20] sm:$0xff]  ;;  %v263_v8 = vld [vmem:[%s842_s1 + $0x18] sm:$0xff]  ;;  %p604_p13 = pnand %p603_p12, %p743_p4 }
  0x17   : > { %522 = vmatprep.subr.mxu0 %v680_v1  ;;  %s500_s26 = sshll.u32 %s778_s11, 3  ;;  %v262_v9 = vld [vmem:[%s842_s1 + $0x10] sm:$0xff]  ;;  %v261_v10 = vld [vmem:[%s842_s1 + $0x8] sm:$0xff]  ;;  %v260_v11 = vld [vmem:[%s842_s1] sm:$0xff] }
  0x18   : > { %523 = vmatpush3.msra.mxu0 %v269_v2  ;;  %s242_s6 = scalar_lea.vmem %s841_s0, %s500_s26  ;;  %s258_s19 = scalar_lea.vmem %s843_s2, %s500_s26 }
  0x19   : > { %524 = vmatprep.subr.mxu0 %v680_v1  ;;  %v259_v12 = vld [vmem:[%s242_s6] sm:$0xff]  ;;  %p605_p0 = pneg %p604_p13  ;;  %s682_s6 = smov [#allocation3]  }
  0x1a   : > { %525 = vmatpush3.msra.mxu0 %v268_v3  ;;  %v367_v15 = vld [vmem:[%s258_s19] sm:$0xff]  ;;  %s606_s26 = sshll.u32 %s682_s6, 4  ;;  %s607_s26 = int_to_ptr.vmem [resolvable:$false] %s606_s26 }
  0x1b   : > { %526 = vmatprep.subr.mxu0 %v680_v1  ;;  %s608_s15 = scalar_lea.vmem %s607_s26, 256  ;;  %p609_p1 = scmp.lt.s32.totalorder %s387_s27, %s607_s26 }
  0x1c   : > { %527 = vmatpush3.msra.mxu0 %v267_v4  ;;  %p610_p2 = scmp.lt.s32.totalorder %s608_s15, %s602_s5 }
  0x1d   : > { %528 = vmatprep.subr.mxu0 %v680_v1 }
  0x1e   : > { %529 = vmatpush3.msra.mxu0 %v266_v5  ;;  %p611_p3 = por %p610_p2, %p609_p1 }
  0x1f   : > { %530 = vmatprep.subr.mxu0 %v680_v1 }
  0x20   : > { %531 = vmatpush3.msra.mxu0 %v265_v6  ;;  %p612_p5 = pnand %p611_p3, %p605_p0 }
  0x21   : > { %532 = vmatprep.subr.mxu0 %v680_v1 }
  0x22   : > { %533 = vmatpush3.msra.mxu0 %v264_v7 }
  0x23   : > { %534 = vmatprep.subr.mxu0 %v680_v1 }
  0x24   : > { %535 = vmatpush3.msra.mxu0 %v263_v8 }
  0x25   : > { %536 = vmatprep.subr.mxu0 %v680_v1 }
  0x26   : > { %537 = vmatpush3.msra.mxu0 %v262_v9 }
  0x27   : > { %538 = vmatprep.subr.mxu0 %v680_v1 }
  0x28   : > { %539 = vmatpush3.msra.mxu0 %v261_v10 }
  0x29   : > { %540 = vmatprep.subr.mxu0 %v680_v1 }
  0x2a   : > { %541 = vmatpush3.msra.mxu0 %v260_v11 }
  0x2b   : > { %543 = vmatmul.mubr.msk.f32.vlgmr.msra.gmra.mxu0 %vm271_vm2, %v259_v12 }
  0xeb   : > { %v345_v13 = vpop.f32.mrf.mxu0 }
  0xec   : > { %354 = vst.msk [vmem:[#allocation2] sm:$0xff] %vm353_vm3, %v345_v13 }
  0xed   : > { %v544_v14 = vpop.f32.mrf.mxu0 }
  0xf3   : > { %v366_v16 = vld [vmem:[#allocation2] sm:$0xff] }
  0xf4   : > { %v368_v17 = vadd.f32 %v367_v15, %v366_v16 }
  0xf6   : > { %370 = vst.msk [vmem:[%s235_s23] sm:$0xff] %vm353_vm3, %v368_v17 }
  0xf7   : > { %615 = shalt.err (!%p612_p5)
}
  0xf8   : > { %s616_s7 = scalar_lea.hbm %s384_s30, 128  ;;  %s620_s10 = scalar_lea.hbm %s844_s3, 256 }
  0xf9   : > { %p617_p6 = scmp.ne.s32.totalorder %s384_s30, %s616_s7  ;;  %p621_p10 = scmp.lt.s32.totalorder %s384_s30, %s844_s3 }
  0xfa   : > { %p622_p11 = scmp.lt.s32.totalorder %s620_s10, %s616_s7 }
  0xfb   : > { %p618_p7 = pnand %p617_p6, %p743_p4 }
  0xfc   : > { %p623_p12 = por %p622_p11, %p621_p10 }
  0xfd   : > { %p619_p9 = pneg %p618_p7 }
  0xff   : > { %p624_p13 = pnand %p623_p12, %p619_p9 }
 0x101   : > { %627 = shalt.err (!%p624_p13)
}
 0x102   : > { %545 = dma.vmem_to_hbm [thread:$0]  (%p743_p4), %s387_s27, 128, %s384_s30, %s372_s4  }
 0x103 PF: > { %p551_p0 = scmp.ge.s32.totalorder %s678_s17, 2  ;;  %s398_s19 = sand.u32 1, %s658_s12  }
 0x104   : > { %s399_s21 = scalar_lea.sflag [#allocation4], %s398_s19 }
 0x105   : > { %p548_p1 = pnand %p551_p0, %p750_p8 }
 0x107   : > { %p549_p2 = pneg %p548_p1 }
 0x109   : > { %653 = dma.done.wait (%p549_p2), %s399_s21, 128  }
 0x10a   : > { %655 = vsyncadd (%p549_p2), %s399_s21, 4294967168  ;;  %s16_s17 = sadd.s32 1, %s678_s17   ;;  %s847_s12 = smov %s662_s13 }
 0x10b   : > { %p13_p3 = scmp.ge.s32.totalorder %s16_s17, 4   ;;  %s848_s13 = smov %s666_s14 }
 0x10c   : > { %s849_s14 = smov %s756_s25  ;;  %s850_s15 = smov %s674_s16 }
 0x10d   : > { %s851_s16 = smov %s853_s20  ;;  %15 = sbr.rel (!%p13_p3) target bundleno = 4 (0x4), region = 85 }
 0x112   :  { %404 = vsyncpa [#allocation4], 1 }
 0x113   :  { %406 = vsyncpa [#allocation4 + $0x1], 1 }

// kernel: block_forward.9
= control target key start
LH: loop header
LB: loop body
LE: loop exit
PB: predicated region body
PF: predicated region fallthrough
CT: control target
= control target key end

     0   :  { %s3171_s12 = smov 0   ;;  %s3173_s13 = smov 0   ;;  %s3620_s0 = inlined_call_operand.vmem [shape: f32[2,8,3,4,8], index: 0, kind: input, shape index: {}, may-alias: {0,1,2}]   ;;  %s3621_s1 = inlined_call_operand.vmem [shape: f32[2,8,3,4,8], index: 1, kind: input, shape index: {}, may-alias: {0,1,2}]   ;;  %s3622_s2 = inlined_call_operand.vmem [shape: f32[2,8,3,4,8], index: 2, kind: input, shape index: {}, may-alias: {0,1,2}]   ;;  %s3623_s3 = inlined_call_operand.vmem [shape: f32[2,8,32], index: 3, kind: output, shape index: {}]  }
   0x1   :  { %s3175_s14 = smov 0   ;;  %s3177_s15 = smov 0  }
   0x2   :  { %s3179_s16 = smov 0  }
   0x3 LB: > { %s32_s17 = sadd.s32 1, %s3138_s15  ;;  %p48_p1 = scmp.ne.s32.totalorder %s3130_s13, %s3126_s12  ;;  %s3142_s16 = sphi %s3179_s16, %s13_s16   ;;  %s3138_s15 = sphi %s3177_s15, %s3628_s15   ;;  %s3134_s14 = sphi %s3175_s14, %s3627_s14   ;;  %s3130_s13 = sphi %s3173_s13, %s3626_s13   ;;  %s3126_s12 = sphi %s3171_s12, %s3625_s12  }
   0x4   : > { %p34_p0 = scmp.ge.s32.totalorder %s32_s17, 2  ;;  %p49_p2 = scmp.eq.s32.totalorder %s3142_s16, 0 }
   0x5   : > { %s41_s20 = sadd.s32 1, %s3130_s13  ;;  %p2920_p5 = scmp.ge.s32.totalorder %s3142_s16, 2 }
   0x6   : > { %s3630_s17 = smov (%p34_p0, %s32_s17), 0  ;;  %p3202_p3 = por %p49_p2, %p48_p1 }
   0x7   : > { %s36_s19 = ssub.s32 %s3138_s15, %s3630_s17  ;;  %166 = sbr.rel (%p2920_p5) target bundleno = 42 (0x2a), region = 16 }
   0x8   : > { %p39_p4 = scmp.eq.s32.totalorder %s36_s19, 0 }
   0xa   : > { %s3210_s21 = scalar_select %p39_p4, %s3130_s13, %s41_s20  }
   0xc   : > { %169 = sbr.rel (!%p3202_p3) target bundleno = 22 (0x16), region = 20  ;;  %s171_s22 = sand.u32 (%p3202_p3), 1, %s3130_s13  }
   0xd   : > { %s3030_s23 = smul.u32 (%p3202_p3), 96, %s3138_s15  ;;  %s2921_s24 = sshll.u32 (%p3202_p3), %s171_s22, 5 }
   0xe   : > { %s173_s28 = scalar_lea.vmem (%p3202_p3), [#allocation5], %s2921_s24 }
   0xf   : > { %s179_s27 = scalar_lea.vmem (%p3202_p3), %s3620_s0, %s3030_s23 }
  0x10   : > { %v196_v0 = vld [vmem:[%s179_s27] sm:$0xf] (%p3202_p3)  ;;  %v198_v1 = vld [vmem:[%s179_s27 + $0xc] sm:$0xf] (%p3202_p3)  ;;  %v200_v2 = vld [vmem:[%s179_s27 + $0x18] sm:$0xf] (%p3202_p3) }
  0x11   : > { %197 = vst [vmem:[%s173_s28] sm:$0xf] %v196_v0  ;;  %199 = vst [vmem:[%s173_s28 + $0x4] sm:$0xf] %v198_v1  ;;  %v202_v3 = vld [vmem:[%s179_s27 + $0x24] sm:$0xf] }
  0x12   : > { %201 = vst [vmem:[%s173_s28 + $0x8] sm:$0xf] %v200_v2  ;;  %v204_v4 = vld [vmem:[%s179_s27 + $0x30] sm:$0xf]  ;;  %v206_v5 = vld [vmem:[%s179_s27 + $0x3c] sm:$0xf] }
  0x13   : > { %203 = vst [vmem:[%s173_s28 + $0xc] sm:$0xf] %v202_v3  ;;  %205 = vst [vmem:[%s173_s28 + $0x10] sm:$0xf] %v204_v4  ;;  %v208_v6 = vld [vmem:[%s179_s27 + $0x48] sm:$0xf] }
  0x14   : > { %207 = vst [vmem:[%s173_s28 + $0x14] sm:$0xf] %v206_v5  ;;  %v210_v7 = vld [vmem:[%s179_s27 + $0x54] sm:$0xf]  ;;  %209 = vst [vmem:[%s173_s28 + $0x18] sm:$0xf] %v208_v6 }
  0x15   : > { %211 = vst [vmem:[%s173_s28 + $0x1c] sm:$0xf] %v210_v7 }
  0x16 PF: > { %251 = sbr.rel (!%p3202_p3) target bundleno = 32 (0x20), region = 61  ;;  %s253_s29 = sand.u32 (%p3202_p3), 1, %s3130_s13  }
  0x17   : > { %s2924_s30 = smul.u32 (%p3202_p3), 96, %s3138_s15  ;;  %s2923_s4 = sshll.u32 (%p3202_p3), %s253_s29, 5 }
  0x18   : > { %s255_s8 = scalar_lea.vmem (%p3202_p3), [#allocation6], %s2923_s4 }
  0x19   : > { %s2828_s7 = scalar_lea.vmem (%p3202_p3), %s3621_s1, %s2924_s30 }
  0x1a   : > { %v2925_v8 = vld [vmem:[%s2828_s7 + $0x4] sm:$0xf] (%p3202_p3)  ;;  %v2926_v9 = vld [vmem:[%s2828_s7 + $0x10] sm:$0xf] (%p3202_p3)  ;;  %v2927_v10 = vld [vmem:[%s2828_s7 + $0x1c] sm:$0xf] (%p3202_p3) }
  0x1b   : > { %282 = vst [vmem:[%s255_s8] sm:$0xf] %v2925_v8  ;;  %284 = vst [vmem:[%s255_s8 + $0x4] sm:$0xf] %v2926_v9  ;;  %v2928_v11 = vld [vmem:[%s2828_s7 + $0x28] sm:$0xf] }
  0x1c   : > { %286 = vst [vmem:[%s255_s8 + $0x8] sm:$0xf] %v2927_v10  ;;  %v2929_v12 = vld [vmem:[%s2828_s7 + $0x34] sm:$0xf]  ;;  %v2930_v13 = vld [vmem:[%s2828_s7 + $0x40] sm:$0xf] }
  0x1d   : > { %288 = vst [vmem:[%s255_s8 + $0xc] sm:$0xf] %v2928_v11  ;;  %290 = vst [vmem:[%s255_s8 + $0x10] sm:$0xf] %v2929_v12  ;;  %v2931_v14 = vld [vmem:[%s2828_s7 + $0x4c] sm:$0xf] }
  0x1e   : > { %292 = vst [vmem:[%s255_s8 + $0x14] sm:$0xf] %v2930_v13  ;;  %v2932_v15 = vld [vmem:[%s2828_s7 + $0x58] sm:$0xf]  ;;  %294 = vst [vmem:[%s255_s8 + $0x18] sm:$0xf] %v2931_v14 }
  0x1f   : > { %296 = vst [vmem:[%s255_s8 + $0x1c] sm:$0xf] %v2932_v15 }
  0x20 PF: > { %336 = sbr.rel (!%p3202_p3) target bundleno = 42 (0x2a), region = 102  ;;  %s338_s9 = sand.u32 (%p3202_p3), 1, %s3130_s13  }
  0x21   : > { %s2934_s10 = smul.u32 (%p3202_p3), 96, %s3138_s15  ;;  %s2933_s11 = sshll.u32 (%p3202_p3), %s338_s9, 5 }
  0x22   : > { %s340_s23 = scalar_lea.vmem (%p3202_p3), [#allocation7], %s2933_s11 }
  0x23   : > { %s2836_s22 = scalar_lea.vmem (%p3202_p3), %s3622_s2, %s2934_s10 }
  0x24   : > { %v2935_v16 = vld [vmem:[%s2836_s22 + $0x8] sm:$0xf] (%p3202_p3)  ;;  %v2936_v17 = vld [vmem:[%s2836_s22 + $0x14] sm:$0xf] (%p3202_p3)  ;;  %v2937_v18 = vld [vmem:[%s2836_s22 + $0x20] sm:$0xf] (%p3202_p3) }
  0x25   : > { %367 = vst [vmem:[%s340_s23] sm:$0xf] %v2935_v16  ;;  %369 = vst [vmem:[%s340_s23 + $0x4] sm:$0xf] %v2936_v17  ;;  %v2938_v19 = vld [vmem:[%s2836_s22 + $0x2c] sm:$0xf] }
  0x26   : > { %371 = vst [vmem:[%s340_s23 + $0x8] sm:$0xf] %v2937_v18  ;;  %v2939_v20 = vld [vmem:[%s2836_s22 + $0x38] sm:$0xf]  ;;  %v2940_v21 = vld [vmem:[%s2836_s22 + $0x44] sm:$0xf] }
  0x27   : > { %373 = vst [vmem:[%s340_s23 + $0xc] sm:$0xf] %v2938_v19  ;;  %375 = vst [vmem:[%s340_s23 + $0x10] sm:$0xf] %v2939_v20  ;;  %v2941_v22 = vld [vmem:[%s2836_s22 + $0x50] sm:$0xf] }
  0x28   : > { %377 = vst [vmem:[%s340_s23 + $0x14] sm:$0xf] %v2940_v21  ;;  %v2942_v23 = vld [vmem:[%s2836_s22 + $0x5c] sm:$0xf]  ;;  %379 = vst [vmem:[%s340_s23 + $0x18] sm:$0xf] %v2941_v22 }
  0x29   : > { %381 = vst [vmem:[%s340_s23 + $0x1c] sm:$0xf] %v2942_v23 }
  0x2a PF: > { %p2943_p6 = scmp.ge.s32.totalorder %s3142_s16, 1  ;;  %p420_p7 = scmp.lt.s32.totalorder %s3142_s16, 3 }
  0x2c   : > { %p421_p8 = pnand %p2943_p6, %p420_p7 }
  0x2d   : > { %s427_s18 = sand.u32 (!%p421_p8), 1, %s3126_s12   ;;  %p481_p9 = scmp.lt.s32.totalorder (!%p421_p8), %s3134_s14, 1 }
  0x2e   : > { %424 = sbr.rel (%p421_p8) target bundleno = 1569 (0x621), region = 143  ;;  %s3238_s24 = sshll.u32 (!%p421_p8), %s427_s18, 5 }
  0x2f   : > { %s3250_s12 = scalar_lea.vmem (!%p421_p8), [#allocation6], %s3238_s24  ;;  %s3266_s25 = scalar_lea.vmem (!%p421_p8), [#allocation5], %s3238_s24 }
  0x30   : > { %s3330_s26 = scalar_lea.vmem (!%p421_p8), [#allocation7], %s3238_s24  ;;  %s3149_s4 = smov (!%p421_p8), 16  }
  0x31   : > { %s3150_s5 = smov (!%p421_p8), 24  }
  0x33   : > { %vm501_vm0 = vcmask 64512   ;;  %v3144_v24 = vmov 0.0   ;;  %vm1650_vm1 = vcmask 1041409   ;;  %vm1653_vm2 = vcmask 1042434   ;;  %v1633_v25 = vld [vmem:[%s3250_s12] sm:$0x1] }
  0x34   : > { %2990 = vmatprep.subr.mxu0 %v3144_v24  ;;  %502 = vst.msk [vmem:[#allocation4] sm:$0xff] %vm501_vm0, %v3144_v24  ;;  %503 = vst.msk [vmem:[#allocation4 + $0x8] sm:$0xff] %vm501_vm0, %v3144_v24  ;;  %2995 = vmatprep.subr.mxu1 %v3144_v24  ;;  %vm1656_vm3 = vcmask 1043459   ;;  %vm1659_vm4 = vcmask 1044484   ;;  %v1634_v26 = vld [vmem:[%s3250_s12 + $0x4] sm:$0x1]  ;;  %v1620_v6 = vlaneseq }
  0x35   : > { %504 = vst.msk [vmem:[#allocation4 + $0x10] sm:$0xff] %vm501_vm0, %v3144_v24  ;;  %505 = vst.msk [vmem:[#allocation4 + $0x18] sm:$0xff] %vm501_vm0, %v3144_v24  ;;  %v1635_v27 = vld [vmem:[%s3250_s12 + $0x8] sm:$0x1]  ;;  %vm3145_vm5 = vmmov 0   ;;  %vm1662_vm6 = vcmask 1045509  }
  0x36   : > { %2992 = vmatprep.mubr.msk.f32.mxu0 %vm3145_vm5, %v3144_v24  ;;  %2997 = vmatprep.mubr.msk.f32.mxu1 %vm3145_vm5, %v3144_v24  ;;  %v1636_v28 = vld [vmem:[%s3250_s12 + $0xc] sm:$0x1]  ;;  %v1637_v29 = vld [vmem:[%s3250_s12 + $0x10] sm:$0x1]  ;;  %v1638_v30 = vld [vmem:[%s3250_s12 + $0x14] sm:$0x1] }
  0x37   : > { %v1639_v31 = vld [vmem:[%s3250_s12 + $0x18] sm:$0x1]  ;;  %vm1665_vm7 = vcmask 1046534   ;;  %v1678_v32 = vrot.slane %v1634_v26, 7  ;;  %v1680_v33 = vrot.slane %v1635_v27, 6  ;;  %v1682_v35 = vrot.slane %v1636_v28, 5 }
  0x38   : > { %v1640_v34 = vld [vmem:[%s3250_s12 + $0x1c] sm:$0x1]  ;;  %v1684_v36 = vrot.slane %v1637_v29, 4  ;;  %v1686_v37 = vrot.slane %v1638_v30, 3  ;;  %v1688_v38 = vrot.slane %v1639_v31, 2  ;;  %vm1668_vm8 = vcmask 1047559  }
  0x39   : > { %v1679_v39 = vsel %vm1650_vm1, %v1678_v32, %v1633_v25  ;;  %v1625_v40 = vld [vmem:[%s3266_s25] sm:$0x1]  ;;  %v1626_v41 = vld [vmem:[%s3266_s25 + $0x4] sm:$0x1]  ;;  %v1627_v42 = vld [vmem:[%s3266_s25 + $0x8] sm:$0x1] }
  0x3a   : > { %v1681_v43 = vsel %vm1653_vm2, %v1680_v33, %v1679_v39  ;;  %v1628_v44 = vld [vmem:[%s3266_s25 + $0xc] sm:$0x1]  ;;  %v1629_v45 = vld [vmem:[%s3266_s25 + $0x10] sm:$0x1]  ;;  %v1630_v46 = vld [vmem:[%s3266_s25 + $0x14] sm:$0x1] }
  0x3b   : > { %v1683_v47 = vsel %vm1656_vm3, %v1682_v35, %v1681_v43  ;;  %v1690_v48 = vrot.slane %v1640_v34, 1  ;;  %v1631_v49 = vld [vmem:[%s3266_s25 + $0x18] sm:$0x1]  ;;  %v1649_v50 = vrot.slane %v1626_v41, 7  ;;  %v1652_v51 = vrot.slane %v1627_v42, 6  ;;  %s3632_s14 = smov (!%p481_p9, %s3134_s14), 1 }
  0x3c   : > { %v1685_v52 = vsel %vm1659_vm4, %v1684_v36, %v1683_v47  ;;  %v1632_v53 = vld [vmem:[%s3266_s25 + $0x1c] sm:$0x1]  ;;  %v1655_v54 = vrot.slane %v1628_v44, 5  ;;  %v1658_v55 = vrot.slane %v1629_v45, 4  ;;  %v1661_v58 = vrot.slane %v1630_v46, 3  ;;  %s2947_s27 = sshll.u32 %s3632_s14, 3 }
  0x3d   : > { %v1687_v56 = vsel %vm1662_vm6, %v1686_v37, %v1685_v52  ;;  %v1651_v57 = vsel %vm1650_vm1, %v1649_v50, %v1625_v40  ;;  %v1664_v61 = vrot.slane %v1631_v49, 2  ;;  %v1667_v0 = vrot.slane %v1632_v53, 1  ;;  %v1801_v19 = vld [vmem:[%s3330_s26 + $0x4] sm:$0x1]  ;;  %v1802_v20 = vld [vmem:[%s3330_s26 + $0x8] sm:$0x1]  ;;  %s3595_s30 = scalar_lea.vmem %s3623_s3, %s2947_s27 }
  0x3e   : > { %v1689_v59 = vsel %vm1665_vm7, %v1688_v38, %v1687_v56  ;;  %v1654_v60 = vsel %vm1653_vm2, %v1652_v51, %v1651_v57  ;;  %vm492_vm9 = vcmask 7168   ;;  %v3146_v5 = vmov -inf   ;;  %v1803_v21 = vld [vmem:[%s3330_s26 + $0xc] sm:$0x1]  ;;  %v1804_v22 = vld [vmem:[%s3330_s26 + $0x10] sm:$0x1] }
  0x3f   : > { %v1691_v62 = vsel %vm1668_vm8, %v1690_v48, %v1689_v59  ;;  %v1657_v63 = vsel %vm1656_vm3, %v1655_v54, %v1654_v60  ;;  %493 = vst.msk [vmem:[#allocation2] sm:$0xff] %vm492_vm9, %v3146_v5  ;;  %494 = vst.msk [vmem:[#allocation2 + $0x8] sm:$0xff] %vm492_vm9, %v3146_v5  ;;  %v3306_v7 = vshrl.u32 %v1620_v6, 7  ;;  %v3308_v8 = vand.u32 127, %v1620_v6  ;;  %v1800_v23 = vld [vmem:[%s3330_s26] sm:$0x1] }
  0x40   : > { %2991 = vmatpush3.xpose.msk.msra.mxu0 %vm501_vm0, %v1691_v62  ;;  %v1660_v1 = vsel %vm1659_vm4, %v1658_v55, %v1657_v63  ;;  %495 = vst.msk [vmem:[#allocation2 + $0x10] sm:$0xff] %vm492_vm9, %v3146_v5  ;;  %496 = vst.msk [vmem:[#allocation2 + $0x18] sm:$0xff] %vm492_vm9, %v3146_v5  ;;  %v3147_v14 = vmov 0   ;;  %v1805_v25 = vld [vmem:[%s3330_s26 + $0x14] sm:$0x1]  ;;  %v1816_v27 = vrot.slane %v1801_v19, 7 }
  0x41   : > { %v1663_v2 = vsel %vm1662_vm6, %v1661_v58, %v1660_v1  ;;  %3005 = vmatprep.subr.mxu0 %v3144_v24  ;;  %497 = vst.msk [vmem:[#allocation3] sm:$0xff] %vm492_vm9, %v3144_v24  ;;  %498 = vst.msk [vmem:[#allocation3 + $0x8] sm:$0xff] %vm492_vm9, %v3144_v24  ;;  %vm1624_vm10 = vcmp.le.s32.totalorder %v3308_v8, %v3306_v7  ;;  %3078 = vset.pattern.permute.xlu0 %v3147_v14  ;;  %v1806_v26 = vld [vmem:[%s3330_s26 + $0x18] sm:$0x1]  ;;  %v1818_v28 = vrot.slane %v1802_v20, 6  ;;  %s3148_s14 = smov 8  }
  0x42   : > { %v1666_v3 = vsel %vm1665_vm7, %v1664_v61, %v1663_v2  ;;  %499 = vst.msk [vmem:[#allocation3 + $0x10] sm:$0xff] %vm492_vm9, %v3144_v24  ;;  %500 = vst.msk [vmem:[#allocation3 + $0x18] sm:$0xff] %vm492_vm9, %v3144_v24  ;;  %3079 = vset.pattern.permute.xlu1 %v3147_v14  ;;  %v1820_v29 = vrot.slane %v1803_v21, 5  ;;  %v1807_v30 = vld [vmem:[%s3330_s26 + $0x1c] sm:$0x1]  ;;  %v1822_v31 = vrot.slane %v1804_v22, 4  ;;  %v1817_v32 = vsel %vm1650_vm1, %v1816_v27, %v1800_v23 }
  0x43   : > { %v1669_v4 = vsel %vm1668_vm8, %v1667_v0, %v1666_v3  ;;  %v1824_v33 = vrot.slane %v1805_v25, 3  ;;  %v1819_v34 = vsel %vm1653_vm2, %v1818_v28, %v1817_v32  ;;  %v1826_v35 = vrot.slane %v1806_v26, 2  ;;  %v1926_v42 = vld [vmem:[%s3250_s12 + $0x5] sm:$0x1]  ;;  %v1927_v43 = vld [vmem:[%s3250_s12 + $0x9] sm:$0x1] }
  0x44   : > { %2993 = vmatmul.mubr.msk.f32.vlgmr.msra.gmra.mxu0 %vm501_vm0, %v1669_v4  ;;  %v1821_v36 = vsel %vm1656_vm3, %v1820_v29, %v1819_v34  ;;  %v1828_v37 = vrot.slane %v1807_v30, 1  ;;  %v1963_v44 = vrot.slane %v1926_v42, 7  ;;  %v1925_v45 = vld [vmem:[%s3250_s12 + $0x1] sm:$0x1]  ;;  %v1918_v46 = vld [vmem:[%s3266_s25 + $0x5] sm:$0x1] }
  0x45   : > { %3007 = vmatprep.mubr.msk.f32.mxu0 %vm3145_vm5, %v3144_v24  ;;  %v1823_v38 = vsel %vm1659_vm4, %v1822_v31, %v1821_v36  ;;  %v2217_v47 = vld [vmem:[%s3250_s12 + $0x6] sm:$0x1]  ;;  %v1928_v48 = vld [vmem:[%s3250_s12 + $0xd] sm:$0x1]  ;;  %v1965_v49 = vrot.slane %v1927_v43, 6  ;;  %v1941_v53 = vrot.slane %v1918_v46, 7 }
  0x46   : > { %v3319_v15 = vld [vmem:[#allocation2] sm:$0xff]  ;;  %v1825_v39 = vsel %vm1662_vm6, %v1824_v33, %v1823_v38  ;;  %v1919_v50 = vld [vmem:[%s3266_s25 + $0x9] sm:$0x1]  ;;  %v1964_v51 = vsel %vm1650_vm1, %v1963_v44, %v1925_v45  ;;  %v1929_v54 = vld [vmem:[%s3250_s12 + $0x11] sm:$0x1]  ;;  %v2254_v56 = vrot.slane %v2217_v47, 7 }
  0x47   : > { %v1827_v40 = vsel %vm1665_vm7, %v1826_v35, %v1825_v39  ;;  %v1917_v52 = vld [vmem:[%s3266_s25 + $0x1] sm:$0x1]  ;;  %v2218_v55 = vld [vmem:[%s3250_s12 + $0xa] sm:$0x1]  ;;  %v2209_v57 = vld [vmem:[%s3266_s25 + $0x6] sm:$0x1]  ;;  %v1966_v0 = vsel %vm1653_vm2, %v1965_v49, %v1964_v51 }
  0x48   : > { %v1829_v41 = vsel %vm1668_vm8, %v1828_v37, %v1827_v40  ;;  %v1967_v59 = vrot.slane %v1928_v48, 5  ;;  %v1943_v60 = vrot.slane %v1919_v50, 6  ;;  %v2216_v61 = vld [vmem:[%s3250_s12 + $0x2] sm:$0x1]  ;;  %v2508_v62 = vld [vmem:[%s3250_s12 + $0x7] sm:$0x1]  ;;  %v1942_v5 = vsel %vm1650_vm1, %v1941_v53, %v1917_v52 }
  0x49   : > { %2996 = vmatpush3.msra.mxu1 %v1829_v41  ;;  %v1920_v1 = vld [vmem:[%s3266_s25 + $0xd] sm:$0x1]  ;;  %v2219_v2 = vld [vmem:[%s3250_s12 + $0xe] sm:$0x1]  ;;  %v2208_v3 = vld [vmem:[%s3266_s25 + $0x2] sm:$0x1] }
  0x4a   : > { %3000 = vmatprep.subr.mxu1 %v3144_v24  ;;  %v1930_v4 = vld [vmem:[%s3250_s12 + $0x15] sm:$0x1]  ;;  %v2256_v6 = vrot.slane %v2218_v55, 6  ;;  %v2545_v14 = vrot.slane %v2508_v62, 7  ;;  %v1968_v19 = vsel %vm1656_vm3, %v1967_v59, %v1966_v0  ;;  %v1969_v20 = vrot.slane %v1929_v54, 4 }
  0x4b   : > { %v1921_v21 = vld [vmem:[%s3266_s25 + $0x11] sm:$0x1]  ;;  %v1945_v22 = vrot.slane %v1920_v1, 5  ;;  %v2507_v23 = vld [vmem:[%s3250_s12 + $0x3] sm:$0x1]  ;;  %v1944_v26 = vsel %vm1653_vm2, %v1943_v60, %v1942_v5  ;;  %v2258_v28 = vrot.slane %v2219_v2, 5 }
  0x4c   : > { %v1931_v25 = vld [vmem:[%s3250_s12 + $0x19] sm:$0x1]  ;;  %v2220_v27 = vld [vmem:[%s3250_s12 + $0x12] sm:$0x1]  ;;  %v2211_v29 = vld [vmem:[%s3266_s25 + $0xe] sm:$0x1]  ;;  %v2546_v40 = vsel %vm1650_vm1, %v2545_v14, %v2507_v23  ;;  %v1970_v42 = vsel %vm1659_vm4, %v1969_v20, %v1968_v19 }
  0x4d   : > { %v2510_v33 = vld [vmem:[%s3250_s12 + $0xf] sm:$0x1]  ;;  %v2501_v35 = vld [vmem:[%s3266_s25 + $0xb] sm:$0x1]  ;;  %v1971_v37 = vrot.slane %v1930_v4, 3  ;;  %v1947_v39 = vrot.slane %v1921_v21, 4  ;;  %v1946_v43 = vsel %vm1656_vm3, %v1945_v22, %v1944_v26 }
  0x4e   : > { %v1922_v38 = vld [vmem:[%s3266_s25 + $0x15] sm:$0x1]  ;;  %v2499_v41 = vld [vmem:[%s3266_s25 + $0x3] sm:$0x1]  ;;  %v2221_v44 = vld [vmem:[%s3250_s12 + $0x16] sm:$0x1] }
  0x4f   : > { %v2260_v45 = vrot.slane %v2220_v27, 4  ;;  %v2212_v46 = vld [vmem:[%s3266_s25 + $0x12] sm:$0x1]  ;;  %v2236_v47 = vrot.slane %v2211_v29, 5  ;;  %v2511_v50 = vld [vmem:[%s3250_s12 + $0x13] sm:$0x1]  ;;  %v1972_v60 = vsel %vm1662_vm6, %v1971_v37, %v1970_v42 }
  0x50   : > { %v2549_v51 = vrot.slane %v2510_v33, 5  ;;  %v2502_v52 = vld [vmem:[%s3266_s25 + $0xf] sm:$0x1]  ;;  %v2525_v53 = vrot.slane %v2501_v35, 6  ;;  %v1932_v54 = vld [vmem:[%s3250_s12 + $0x1d] sm:$0x1] }
  0x51   : > { %v1973_v55 = vrot.slane %v1931_v25, 2  ;;  %v2222_v62 = vld [vmem:[%s3250_s12 + $0x1a] sm:$0x1]  ;;  %v2213_v0 = vld [vmem:[%s3266_s25 + $0x16] sm:$0x1]  ;;  %v2238_v1 = vrot.slane %v2212_v46, 4 }
  0x52   : > { %v2512_v4 = vld [vmem:[%s3250_s12 + $0x17] sm:$0x1]  ;;  %v2551_v5 = vrot.slane %v2511_v50, 4  ;;  %v2223_v20 = vld [vmem:[%s3250_s12 + $0x1e] sm:$0x1]  ;;  %v2264_v21 = vrot.slane %v2222_v62, 2 }
  0x53   : > { %v2214_v22 = vld [vmem:[%s3266_s25 + $0x1a] sm:$0x1]  ;;  %v2240_v23 = vrot.slane %v2213_v0, 3  ;;  %v2513_v27 = vld [vmem:[%s3250_s12 + $0x1b] sm:$0x1]  ;;  %vm2206_vm11 = vcmask 130112  }
  0x54   : > { %v2504_v29 = vld [vmem:[%s3266_s25 + $0x17] sm:$0x1]  ;;  %v2215_v37 = vld [vmem:[%s3266_s25 + $0x1e] sm:$0x1]  ;;  %v2514_v42 = vld [vmem:[%s3250_s12 + $0x1f] sm:$0x1] }
  0x55   : > { %vm2497_vm12 = vcmask 195712   ;;  %vm2788_vm13 = vcmask 261312  }
 0x104   : > { %v1763_v9 = vpop.f32.mrf.mxu0 }
 0x105   : > { %v1767_v10 = vmul.f32 0.35355338, %v1763_v9  ;;  %v2210_v9 = vld [vmem:[%s3266_s25 + $0xa] sm:$0x1] }
 0x106   : > { %v2994_v11 = vpop.f32.mrf.mxu0  ;;  %v2234_v30 = vrot.slane %v2210_v9, 6  ;;  %v2527_v9 = vrot.slane %v2502_v52, 5  ;;  %v2557_v52 = vrot.slane %v2514_v42, 1 }
 0x107   : > { %v3315_v12 = vsel %vm1624_vm10, %v1767_v10, -inf  ;;  %v2232_v10 = vrot.slane %v2209_v57, 7  ;;  %v2509_v11 = vld [vmem:[%s3250_s12 + $0xb] sm:$0x1]  ;;  %v1949_v57 = vrot.slane %v1922_v38, 3  ;;  %v2242_v38 = vrot.slane %v2214_v22, 2 }
 0x108   : > { %v1770_v13 = vsel %vm501_vm0, %v3315_v12, -inf  ;;  %v2547_v34 = vrot.slane %v2509_v11, 6  ;;  %v1924_v11 = vld [vmem:[%s3266_s25 + $0x1d] sm:$0x1] }
 0x109   : > { %1771 = vmax.xlane.f32.xlu0 %v1770_v13  ;;  %v2233_v32 = vsel %vm1650_vm1, %v2232_v10, %v2208_v3  ;;  %v1975_v10 = vrot.slane %v1932_v54, 1 }
 0x10a   : > { %v2235_v49 = vsel %vm1653_vm2, %v2234_v30, %v2233_v32 }
 0x10b   : > { %v2237_v3 = vsel %vm1656_vm3, %v2236_v47, %v2235_v49  ;;  %v2244_v49 = vrot.slane %v2215_v37, 1 }
 0x10c   : > { %v2239_v26 = vsel %vm1659_vm4, %v2238_v1, %v2237_v3 }
 0x192   : > { %v1772_v16 = vpop.xlane.xlu0 %1771 }
 0x193   : > { %v3322_v17 = vmax.f32 %v3319_v15, %v1772_v16  ;;  %v2500_v16 = vld [vmem:[%s3266_s25 + $0x7] sm:$0x1] }
 0x194   : > { %v2523_v36 = vrot.slane %v2500_v16, 7  ;;  %v1974_v16 = vsel %vm1665_vm7, %v1973_v55, %v1972_v60 }
 0x195   : > { %v1774_v18 = vsub.f32 %v3319_v15, %v3322_v17  ;;  %1906 = vst.msk [vmem:[#allocation2] sm:$0xff] %vm492_vm9, %v3322_v17  ;;  %1779 = vperm.xlu0 %3078, %v3322_v17  }
 0x196   : > { %v2524_v59 = vsel %vm1650_vm1, %v2523_v36, %v2499_v41  ;;  %v2266_v36 = vrot.slane %v2223_v20, 1  ;;  %v2241_v41 = vsel %vm1662_vm6, %v2240_v23, %v2239_v26  ;;  %v3480_v20 = vld [vmem:[#allocation2 + $0x8] sm:$0xff]  ;;  %v3485_v23 = vld [vmem:[#allocation2 + $0x10] sm:$0xff]  ;;  %v3495_v26 = vld [vmem:[#allocation2 + $0x18] sm:$0xff] }
 0x197   : > { %v2526_v14 = vsel %vm1653_vm2, %v2525_v53, %v2524_v59  ;;  %v2506_v53 = vld [vmem:[%s3266_s25 + $0x1f] sm:$0x1] }
 0x198   : > { %v2528_v33 = vsel %vm1656_vm3, %v2527_v9, %v2526_v14 }
 0x210   : > { %v1780_v58 = vpop.permute.xlu0 %1779 }
 0x211   : > { %v1782_v63 = vsub.f32 %v3315_v12, %v1780_v58  ;;  %v2255_v12 = vsel %vm1650_vm1, %v2254_v56, %v2216_v61  ;;  %v1923_v56 = vld [vmem:[%s3266_s25 + $0x19] sm:$0x1]  ;;  %v2548_v58 = vsel %vm1653_vm2, %v2547_v34, %v2546_v40  ;;  %v1948_v61 = vsel %vm1659_vm4, %v1947_v39, %v1946_v43 }
 0x212   : > { %v2257_v31 = vsel %vm1653_vm2, %v2256_v6, %v2255_v12  ;;  %v2503_v6 = vld [vmem:[%s3266_s25 + $0x13] sm:$0x1]  ;;  %v2550_v12 = vsel %vm1656_vm3, %v2549_v51, %v2548_v58  ;;  %v1950_v19 = vsel %vm1662_vm6, %v1949_v57, %v1948_v61  ;;  %v1976_v34 = vsel %vm1668_vm8, %v1975_v10, %v1974_v16 }
 0x213   : > { %v1783_v13 = vmul.f32 1.442695, %v1782_v63  ;;  %v2259_v48 = vsel %vm1656_vm3, %v2258_v28, %v2257_v31  ;;  %v2262_v63 = vrot.slane %v2221_v44, 3  ;;  %v2553_v28 = vrot.slane %v2512_v4, 3  ;;  %v2505_v44 = vld [vmem:[%s3266_s25 + $0x1b] sm:$0x1] }
 0x214   : > { %v2261_v2 = vsel %vm1659_vm4, %v2260_v45, %v2259_v48  ;;  %v2529_v30 = vrot.slane %v2503_v6, 4  ;;  %v1953_v31 = vrot.slane %v1924_v11, 1  ;;  %v2552_v32 = vsel %vm1659_vm4, %v2551_v5, %v2550_v12 }
 0x215   : > { %3080 = vpow2.f32 %v1783_v13  ;;  %v1951_v13 = vrot.slane %v1923_v56, 2  ;;  %v2263_v25 = vsel %vm1662_vm6, %v2262_v63, %v2261_v2  ;;  %v2555_v43 = vrot.slane %v2513_v27, 2  ;;  %v2087_v27 = vld [vmem:[%s3330_s26 + $0x5] sm:$0x1] }
 0x216   : > { %v2265_v40 = vsel %vm1665_vm7, %v2264_v21, %v2263_v25  ;;  %v2531_v45 = vrot.slane %v2504_v29, 3  ;;  %v2554_v46 = vsel %vm1662_vm6, %v2553_v28, %v2552_v32  ;;  %v2530_v47 = vsel %vm1659_vm4, %v2529_v30, %v2528_v33  ;;  %v2088_v29 = vld [vmem:[%s3330_s26 + $0x9] sm:$0x1]  ;;  %v2086_v32 = vld [vmem:[%s3330_s26 + $0x1] sm:$0x1] }
 0x217   : > { %v1952_v35 = vsel %vm1665_vm7, %v1951_v13, %v1950_v19  ;;  %v2267_v50 = vsel %vm1668_vm8, %v2266_v36, %v2265_v40  ;;  %v2243_v51 = vsel %vm1665_vm7, %v2242_v38, %v2241_v41  ;;  %v2533_v54 = vrot.slane %v2505_v44, 2  ;;  %v2089_v33 = vld [vmem:[%s3330_s26 + $0xd] sm:$0x1]  ;;  %v2090_v36 = vld [vmem:[%s3330_s26 + $0x11] sm:$0x1] }
 0x218   : > { %v1954_v48 = vsel %vm1668_vm8, %v1953_v31, %v1952_v35  ;;  %v2556_v55 = vsel %vm1665_vm7, %v2555_v43, %v2554_v46  ;;  %v2532_v56 = vsel %vm1662_vm6, %v2531_v45, %v2530_v47  ;;  %v2245_v57 = vsel %vm1668_vm8, %v2244_v49, %v2243_v51  ;;  %v2091_v40 = vld [vmem:[%s3330_s26 + $0x15] sm:$0x1]  ;;  %v2092_v44 = vld [vmem:[%s3330_s26 + $0x19] sm:$0x1]  ;;  %v2093_v45 = vld [vmem:[%s3330_s26 + $0x1d] sm:$0x1] }
 0x219   : > { %v2535_v58 = vrot.slane %v2506_v53, 1  ;;  %v2558_v59 = vsel %vm1668_vm8, %v2557_v52, %v2556_v55  ;;  %v2534_v60 = vsel %vm1665_vm7, %v2533_v54, %v2532_v56  ;;  %v2102_v30 = vrot.slane %v2087_v27, 7  ;;  %v2378_v55 = vld [vmem:[%s3330_s26 + $0x6] sm:$0x1]  ;;  %v2379_v56 = vld [vmem:[%s3330_s26 + $0xa] sm:$0x1] }
 0x21a   : > { %v2106_v38 = vrot.slane %v2089_v33, 5  ;;  %v2108_v42 = vrot.slane %v2090_v36, 4  ;;  %v2110_v47 = vrot.slane %v2091_v40, 3  ;;  %v2112_v49 = vrot.slane %v2092_v44, 2  ;;  %v2383_v33 = vld [vmem:[%s3330_s26 + $0x1a] sm:$0x1] }
 0x21b   : > { %v2536_v61 = vsel %vm1668_vm8, %v2535_v58, %v2534_v60  ;;  %v2103_v37 = vsel %vm1650_vm1, %v2102_v30, %v2086_v32  ;;  %v2377_v58 = vld [vmem:[%s3330_s26 + $0x2] sm:$0x1]  ;;  %v2380_v60 = vld [vmem:[%s3330_s26 + $0xe] sm:$0x1]  ;;  %v2403_v44 = vrot.slane %v2383_v33, 2 }
 0x222   : > { %v3423_v39 = vpop.eup %3080 }
 0x223   : > { %2998 = vmatmul.mubr.msk.f32.vlgmr.msra.gmra.mxu1 %vm501_vm0, %v3423_v39  ;;  %v1787_v54 = vsel %vm501_vm0, %v3423_v39, 0.0  ;;  %v2381_v39 = vld [vmem:[%s3330_s26 + $0x12] sm:$0x1] }
 0x224   : > { %3001 = vmatpush3.xpose.msk.msra.mxu1 %vm501_vm0, %v1976_v34  ;;  %3002 = vmatprep.mubr.msk.f32.mxu1 %vm3145_vm5, %v3144_v24  ;;  %v2104_v34 = vrot.slane %v2088_v29, 6  ;;  %v2672_v29 = vld [vmem:[%s3330_s26 + $0x13] sm:$0x1] }
 0x225   : > { %3010 = vmatprep.subr.mxu1 %v3144_v24  ;;  %v2690_v40 = vrot.slane %v2672_v29, 4 }
 0x226   : > { %v2105_v41 = vsel %vm1653_vm2, %v2104_v34, %v2103_v37 }
 0x227   : > { %3003 = vmatmul.mubr.msk.f32.vlgmr.msra.gmra.mxu1 %vm501_vm0, %v1954_v48  ;;  %v2107_v46 = vsel %vm1656_vm3, %v2106_v38, %v2105_v41  ;;  %v2673_v38 = vld [vmem:[%s3330_s26 + $0x17] sm:$0x1] }
 0x228   : > { %3011 = vmatpush3.xpose.msk.msra.mxu1 %vm501_vm0, %v2267_v50  ;;  %3012 = vmatprep.mubr.msk.f32.mxu1 %vm3145_vm5, %v3144_v24  ;;  %v2109_v48 = vsel %vm1659_vm4, %v2108_v42, %v2107_v46  ;;  %v2114_v50 = vrot.slane %v2093_v45, 1  ;;  %v2384_v42 = vld [vmem:[%s3330_s26 + $0x1e] sm:$0x1] }
 0x229   : > { %3020 = vmatprep.subr.mxu1 %v3144_v24  ;;  %v2111_v51 = vsel %vm1662_vm6, %v2110_v47, %v2109_v48  ;;  %v2674_v47 = vld [vmem:[%s3330_s26 + $0x1b] sm:$0x1]  ;;  %v2692_v48 = vrot.slane %v2673_v38, 3 }
 0x22a   : > { %v2113_v52 = vsel %vm1665_vm7, %v2112_v49, %v2111_v51 }
 0x22b   : > { %3013 = vmatmul.mubr.msk.f32.vlgmr.msra.gmra.mxu1 %vm501_vm0, %v2245_v57  ;;  %v2115_v53 = vsel %vm1668_vm8, %v2114_v50, %v2113_v52  ;;  %v2393_v57 = vrot.slane %v2378_v55, 7  ;;  %v2405_v50 = vrot.slane %v2384_v42, 1  ;;  %v2675_v52 = vld [vmem:[%s3330_s26 + $0x1f] sm:$0x1] }
 0x22c   : > { %3021 = vmatpush3.xpose.msk.msra.mxu1 %vm501_vm0, %v2558_v59  ;;  %3022 = vmatprep.mubr.msk.f32.mxu1 %vm3145_vm5, %v3144_v24  ;;  %v2669_v59 = vld [vmem:[%s3330_s26 + $0x7] sm:$0x1]  ;;  %v2696_v55 = vrot.slane %v2675_v52, 1 }
 0x22d   : > { %3006 = vmatpush3.msra.mxu0 %v2115_v53  ;;  %v2694_v53 = vrot.slane %v2674_v47, 2 }
 0x22e   : > { %3015 = vmatprep.subr.mxu0 %v3144_v24 }
 0x22f   : > { %3023 = vmatmul.mubr.msk.f32.vlgmr.msra.gmra.mxu1 %vm501_vm0, %v2536_v61  ;;  %v2395_v61 = vrot.slane %v2379_v56, 6 }
 0x2e3   : > { %v3457_v62 = vpop.f32.mrf.mxu1 }
 0x2e5   : > { %v2999_v63 = vpop.f32.mrf.mxu1 }
 0x2e6   : > { %v2394_v63 = vsel %vm1650_vm1, %v2393_v57, %v2377_v58 }
 0x2e7   : > { %v2047_v0 = vpop.f32.mrf.mxu1 }
 0x2e8   : > { %v2051_v1 = vmul.f32 0.35355338, %v2047_v0  ;;  %v2670_v0 = vld [vmem:[%s3330_s26 + $0xb] sm:$0x1] }
 0x2e9   : > { %v3004_v2 = vpop.f32.mrf.mxu1 }
 0x2ea   : > { %v3462_v3 = vsel %vm1624_vm10, %v2051_v1, -inf  ;;  %v2684_v1 = vrot.slane %v2669_v59, 7 }
 0x2eb   : > { %v2338_v4 = vpop.f32.mrf.mxu1  ;;  %v2055_v5 = vsel %vm501_vm0, %v3462_v3, -inf }
 0x2ec   : > { %v2342_v6 = vmul.f32 0.35355338, %v2338_v4  ;;  %2056 = vmax.xlane.f32.xlu1 %v2055_v5  ;;  %v2668_v4 = vld [vmem:[%s3330_s26 + $0x3] sm:$0x1] }
 0x2ed   : > { %v3014_v9 = vpop.f32.mrf.mxu1 }
 0x2ee   : > { %v3469_v10 = vsel %vm1624_vm10, %v2342_v6, -inf  ;;  %v2397_v6 = vrot.slane %v2380_v60, 5  ;;  %v2396_v9 = vsel %vm1653_vm2, %v2395_v61, %v2394_v63  ;;  %v1775_v63 = vmul.f32 1.442695, %v1774_v18 }
 0x2ef   : > { %v2629_v11 = vpop.f32.mrf.mxu1  ;;  %v2346_v13 = vsel %vm501_vm0, %v3469_v10, -inf }
 0x2f0   : > { %v2633_v12 = vmul.f32 0.35355338, %v2629_v11  ;;  %2347 = vmax.xlane.f32.xlu1 %v2346_v13  ;;  %v2671_v11 = vld [vmem:[%s3330_s26 + $0xf] sm:$0x1]  ;;  %v2686_v13 = vrot.slane %v2670_v0, 6 }
 0x2f1   : > { %v3024_v14 = vpop.f32.mrf.mxu1  ;;  %v2688_v30 = vrot.slane %v2671_v11, 5 }
 0x2f2   : > { %v3476_v16 = vsel %vm1624_vm10, %v2633_v12, -inf  ;;  %v2685_v14 = vsel %vm1650_vm1, %v2684_v1, %v2668_v4  ;;  %v1785_v4 = vld [vmem:[#allocation3] sm:$0xff] }
 0x2f3   : > { %v2637_v19 = vsel %vm501_vm0, %v3476_v16, -inf }
 0x2f4   : > { %2638 = vmax.xlane.f32.xlu1 %v2637_v19 }
 0x375   : > { %v2057_v21 = vpop.xlane.xlu1 %2056 }
 0x376   : > { %v3483_v22 = vmax.f32 %v3480_v20, %v2057_v21  ;;  %v2382_v21 = vld [vmem:[%s3330_s26 + $0x16] sm:$0x1] }
 0x377   : > { %v2401_v34 = vrot.slane %v2382_v21, 3 }
 0x378   : > { %v2059_v7 = vsub.f32 %v3480_v20, %v3483_v22  ;;  %2192 = vst.msk [vmem:[#allocation2 + $0x8] sm:$0xff] %vm492_vm9, %v3483_v22  ;;  %2064 = vperm.xlu1 %3079, %v3483_v22  }
 0x379   : > { %v2348_v8 = vpop.xlane.xlu1 %2347 }
 0x37a   : > { %v3493_v25 = vmax.f32 %v3485_v23, %v2348_v8  ;;  %v2399_v8 = vrot.slane %v2381_v39, 4 }
 0x37c   : > { %v2350_v28 = vsub.f32 %v3485_v23, %v3493_v25  ;;  %2483 = vst.msk [vmem:[#allocation2 + $0x10] sm:$0xff] %vm492_vm9, %v3493_v25  ;;  %2355 = vperm.xlu1 %3079, %v3493_v25  }
 0x37d   : > { %v2639_v31 = vpop.xlane.xlu1 %2638 }
 0x37e   : > { %v3507_v35 = vmax.f32 %v3495_v26, %v2639_v31  ;;  %v2687_v31 = vsel %vm1653_vm2, %v2686_v13, %v2685_v14  ;;  %v2351_v15 = vmul.f32 1.442695, %v2350_v28 }
 0x380   : > { %v2641_v43 = vsub.f32 %v3495_v26, %v3507_v35  ;;  %2774 = vst.msk [vmem:[#allocation2 + $0x18] sm:$0xff] %vm492_vm9, %v3507_v35  ;;  %2646 = vperm.xlu1 %3079, %v3507_v35  }
 0x382   : > { %v2642_v23 = vmul.f32 1.442695, %v2641_v43 }
 0x3a4   : > { %1788 = vadd.xlane.f32.xlu1 %v1787_v54 }
 0x3f3   : > { %v2065_v2 = vpop.permute.xlu1 %2064 }
 0x3f4   : > { %v2067_v5 = vsub.f32 %v3462_v3, %v2065_v2  ;;  %v2398_v3 = vsel %vm1656_vm3, %v2397_v6, %v2396_v9  ;;  %v2060_v2 = vmul.f32 1.442695, %v2059_v7  ;;  %v2071_v7 = vld [vmem:[#allocation3 + $0x8] sm:$0xff]  ;;  %v2362_v9 = vld [vmem:[#allocation3 + $0x10] sm:$0xff] }
 0x3f5   : > { %v2400_v37 = vsel %vm1659_vm4, %v2399_v8, %v2398_v3  ;;  %v1793_v8 = vld [vmem:[#allocation4] sm:$0xff] }
 0x3f6   : > { %v2068_v12 = vmul.f32 1.442695, %v2067_v5  ;;  %v2402_v46 = vsel %vm1662_vm6, %v2401_v34, %v2400_v37  ;;  %v2079_v37 = vld [vmem:[#allocation4 + $0x8] sm:$0xff] }
 0x3f7   : > { %v2356_v19 = vpop.permute.xlu1 %2355  ;;  %v2404_v51 = vsel %vm1665_vm7, %v2403_v44, %v2402_v46 }
 0x3f8   : > { %3082 = vpow2.f32 %v2068_v12  ;;  %v2358_v27 = vsub.f32 %v3469_v10, %v2356_v19  ;;  %v2689_v10 = vsel %vm1656_vm3, %v2688_v30, %v2687_v31  ;;  %v2653_v19 = vld [vmem:[#allocation3 + $0x18] sm:$0xff] }
 0x3f9   : > { %v2691_v49 = vsel %vm1659_vm4, %v2690_v40, %v2689_v10 }
 0x3fa   : > { %v2359_v32 = vmul.f32 1.442695, %v2358_v27  ;;  %v2693_v54 = vsel %vm1662_vm6, %v2692_v48, %v2691_v49 }
 0x3fb   : > { %v2647_v36 = vpop.permute.xlu1 %2646  ;;  %v2695_v57 = vsel %vm1665_vm7, %v2694_v53, %v2693_v54 }
 0x3fc   : > { %3084 = vpow2.f32 %v2359_v32  ;;  %v2649_v41 = vsub.f32 %v3476_v16, %v2647_v36  ;;  %v2406_v16 = vsel %vm1668_vm8, %v2405_v50, %v2404_v51  ;;  %v2697_v59 = vsel %vm1668_vm8, %v2696_v55, %v2695_v57 }
 0x3fe   : > { %v2650_v45 = vmul.f32 1.442695, %v2649_v41  ;;  %v2370_v41 = vld [vmem:[#allocation4 + $0x10] sm:$0xff] }
 0x400   : > { %3086 = vpow2.f32 %v2650_v45 }
 0x401   : > { %3088 = vpow2.f32 %v1775_v63 }
 0x402   : > { %3090 = vpow2.f32 %v2060_v2 }
 0x403   : > { %3092 = vpow2.f32 %v2351_v15 }
 0x405   : > { %v3083_v56 = vpop.eup %3082 }
 0x406   : > { %3008 = vmatmul.mubr.msk.f32.vlgmr.msra.gmra.mxu0 %vm501_vm0, %v3083_v56  ;;  %v2073_v58 = vsel %vm501_vm0, %v3083_v56, 0.0 }
 0x407   : > { %2074 = vadd.xlane.f32.xlu0 %v2073_v58  ;;  %3016 = vmatpush3.msra.mxu0 %v2406_v16  ;;  %v2661_v58 = vld [vmem:[#allocation4 + $0x18] sm:$0xff] }
 0x408   : > { %3017 = vmatprep.mubr.msk.f32.mxu0 %vm3145_vm5, %v3144_v24  ;;  %3025 = vmatprep.subr.mxu0 %v3144_v24 }
 0x409   : > { %v3085_v60 = vpop.eup %3084 }
 0x40a   : > { %3018 = vmatmul.mubr.msk.f32.vlgmr.msra.gmra.mxu0 %vm501_vm0, %v3085_v60  ;;  %v2364_v61 = vsel %vm501_vm0, %v3085_v60, 0.0 }
 0x40b   : > { %2365 = vadd.xlane.f32.xlu1 %v2364_v61  ;;  %3026 = vmatpush3.msra.mxu0 %v2697_v59 }
 0x40c   : > { %3027 = vmatprep.mubr.msk.f32.mxu0 %vm3145_vm5, %v3144_v24 }
 0x40d   : > { %v3087_v0 = vpop.eup %3086 }
 0x40e   : > { %3028 = vmatmul.mubr.msk.f32.vlgmr.msra.gmra.mxu0 %vm501_vm0, %v3087_v0  ;;  %v2655_v1 = vsel %vm501_vm0, %v3087_v0, 0.0  ;;  %v3089_v17 = vpop.eup %3088 }
 0x40f   : > { %2656 = vadd.xlane.f32.xlu1 %v2655_v1  ;;  %v3091_v24 = vpop.eup %3090  ;;  %v1786_v5 = vmul.f32 %v3089_v17, %v1785_v4 }
 0x410   : > { %v3093_v18 = vpop.eup %3092  ;;  %v2072_v25 = vmul.f32 %v3091_v24, %v2071_v7 }
 0x411   : > { %v2363_v13 = vmul.f32 %v3093_v18, %v2362_v9 }
 0x41d   : > { %1796 = vperm.xlu0 %3078, %v3089_v17  }
 0x421   : > { %2082 = vperm.xlu0 %3078, %v3091_v24  }
 0x425   : > { %2373 = vperm.xlu0 %3078, %v3093_v18  }
 0x42d   : > { %v1789_v39 = vpop.xlane.xlu1 %1788 }
 0x42e   : > { %v1790_v6 = vadd.f32 %v1789_v39, %v1786_v5 }
 0x430   : > { %1792 = vst.msk [vmem:[#allocation3] sm:$0xff] %vm492_vm9, %v1790_v6 }
 0x437   : > { %v1907_v20 = vld [vmem:[#allocation3] sm:$0xff] }
 0x438   : > { %3094 = vrcp.f32 %v1907_v20 }
 0x439   : > { %3096 = vpow2.f32 %v2642_v23 }
 0x445   : > { %v3095_v22 = vpop.eup %3094 }
 0x446   : > { %1912 = vperm.xlu1 %3079, %v3095_v22   ;;  %v3097_v12 = vpop.eup %3096 }
 0x447   : > { %v2654_v27 = vmul.f32 %v3097_v12, %v2653_v19 }
 0x490   : > { %v2075_v28 = vpop.xlane.xlu0 %2074 }
 0x491   : > { %v2076_v11 = vadd.f32 %v2075_v28, %v2072_v25 }
 0x493   : > { %2077 = vst.msk [vmem:[#allocation3 + $0x8] sm:$0xff] %vm492_vm9, %v2076_v11 }
 0x494   : > { %v2366_v14 = vpop.xlane.xlu1 %2365 }
 0x495   : > { %v2367_v21 = vadd.f32 %v2366_v14, %v2363_v13 }
 0x497   : > { %2368 = vst.msk [vmem:[#allocation3 + $0x10] sm:$0xff] %vm492_vm9, %v2367_v21 }
 0x498   : > { %v2657_v3 = vpop.xlane.xlu1 %2656  ;;  %v1797_v26 = vpop.permute.xlu0 %1796 }
 0x499   : > { %v2658_v35 = vadd.f32 %v2657_v3, %v2654_v27  ;;  %v1799_v43 = vmul.f32 %v1797_v26, %v1793_v8 }
 0x49a   : > { %v2193_v29 = vld [vmem:[#allocation3 + $0x8] sm:$0xff] }
 0x49b   : > { %2659 = vst.msk [vmem:[#allocation3 + $0x18] sm:$0xff] %vm492_vm9, %v2658_v35  ;;  %v1904_v30 = vadd.f32 %v3457_v62, %v1799_v43  ;;  %3098 = vrcp.f32 %v2193_v29 }
 0x49c   : > { %v2083_v34 = vpop.permute.xlu0 %2082 }
 0x49d   : > { %1905 = vst.msk [vmem:[#allocation4] sm:$0xff] %vm501_vm0, %v1904_v30  ;;  %v2085_v40 = vmul.f32 %v2083_v34, %v2079_v37 }
 0x49e   : > { %v2484_v31 = vld [vmem:[#allocation3 + $0x10] sm:$0xff] }
 0x49f   : > { %3100 = vrcp.f32 %v2484_v31 }
 0x4a0   : > { %v2374_v10 = vpop.permute.xlu0 %2373 }
 0x4a1   : > { %v2376_v46 = vmul.f32 %v2374_v10, %v2370_v41 }
 0x4a2   : > { %v2775_v52 = vld [vmem:[#allocation3 + $0x18] sm:$0xff] }
 0x4a3   : > { %3102 = vrcp.f32 %v2775_v52 }
 0x4a4   : > { %v1909_v62 = vld [vmem:[#allocation4] sm:$0xff] }
 0x4a8   : > { %v3099_v32 = vpop.eup %3098 }
 0x4a9   : > { %2198 = vperm.xlu1 %3079, %v3099_v32  }
 0x4ac   : > { %v3101_v33 = vpop.eup %3100 }
 0x4ad   : > { %2489 = vperm.xlu1 %3079, %v3101_v33  }
 0x4b0   : > { %v3103_v61 = vpop.eup %3102 }
 0x4b1   : > { %2664 = vperm.xlu1 %3079, %v3097_v12  }
 0x4c1   : > { %v1913_v36 = vpop.permute.xlu1 %1912 }
 0x4c2   : > { %v1915_v38 = vmul.f32 %v1913_v36, %v1909_v62 }
 0x4c4   : > { %1916 = vst.msk [vmem:[%s3595_s30] sm:$0xff] %vm501_vm0, %v1915_v38 }
 0x4c6   : > { %v2186_v42 = vpop.f32.mrf.mxu0 }
 0x4c7   : > { %v2190_v44 = vadd.f32 %v2186_v42, %v2085_v40 }
 0x4c8   : > { %v3009_v45 = vpop.f32.mrf.mxu0 }
 0x4c9   : > { %2191 = vst.msk [vmem:[#allocation4 + $0x8] sm:$0xff] %vm501_vm0, %v2190_v44 }
 0x4ca   : > { %v2477_v47 = vpop.f32.mrf.mxu0 }
 0x4cb   : > { %v2481_v48 = vadd.f32 %v2477_v47, %v2376_v46 }
 0x4cc   : > { %v3019_v49 = vpop.f32.mrf.mxu0 }
 0x4cd   : > { %2482 = vst.msk [vmem:[#allocation4 + $0x10] sm:$0xff] %vm501_vm0, %v2481_v48 }
 0x4ce   : > { %v2768_v50 = vpop.f32.mrf.mxu0 }
 0x4d0   : > { %v3029_v51 = vpop.f32.mrf.mxu0  ;;  %v2195_v54 = vld [vmem:[#allocation4 + $0x8] sm:$0xff] }
 0x4d4   : > { %v2486_v56 = vld [vmem:[#allocation4 + $0x10] sm:$0xff] }
 0x524   : > { %v2199_v53 = vpop.permute.xlu1 %2198 }
 0x525   : > { %v2201_v16 = vmul.f32 %v2199_v53, %v2195_v54 }
 0x527   : > { %2203 = vrot.lane.b32.xlu1 %v2201_v16, %s3148_s14 }
 0x528   : > { %v2490_v55 = vpop.permute.xlu1 %2489 }
 0x529   : > { %v2492_v57 = vmul.f32 %v2490_v55, %v2486_v56 }
 0x52b   : > { %2494 = vrot.lane.b32.xlu0 %v2492_v57, %s3149_s4 }
 0x52c   : > { %v2665_v59 = vpop.permute.xlu1 %2664 }
 0x52d   : > { %v2667_v60 = vmul.f32 %v2665_v59, %v2661_v58 }
 0x52f   : > { %v2772_v63 = vadd.f32 %v2768_v50, %v2667_v60  ;;  %2780 = vperm.xlu0 %3078, %v3103_v61  }
 0x531   : > { %2773 = vst.msk [vmem:[#allocation4 + $0x18] sm:$0xff] %vm501_vm0, %v2772_v63 }
 0x538   : > { %v2777_v15 = vld [vmem:[#allocation4 + $0x18] sm:$0xff] }
 0x599   : > { %v2204_v0 = vpop.permute.xlu1 %2203 }
 0x59a   : > { %2207 = vst.msk [vmem:[%s3595_s30] sm:$0xff] %vm2206_vm11, %v2204_v0 }
 0x59d   : > { %v2495_v1 = vpop.permute.xlu0 %2494 }
 0x59e   : > { %2498 = vst.msk [vmem:[%s3595_s30] sm:$0xff] %vm2497_vm12, %v2495_v1 }
 0x5aa   : > { %v2781_v2 = vpop.permute.xlu0 %2780 }
 0x5ab   : > { %v2783_v17 = vmul.f32 %v2781_v2, %v2777_v15 }
 0x5ad   : > { %2785 = vrot.lane.b32.xlu1 %v2783_v17, %s3150_s5 }
 0x61f   : > { %v2786_v24 = vpop.permute.xlu1 %2785 }
 0x620   : > { %2789 = vst.msk [vmem:[%s3595_s30] sm:$0xff] %vm2788_vm13, %v2786_v24 }
 0x621 PF: > { %s13_s16 = sadd.s32 1, %s3142_s16   ;;  %s3625_s12 = smov %s3130_s13 }
 0x622   : > { %p10_p10 = scmp.ge.s32.totalorder %s13_s16, 4   ;;  %s3626_s13 = smov %s3210_s21 }
 0x623   : > { %s3627_s14 = smov %s3138_s15  ;;  %s3628_s15 = smov %s3630_s17 }
 0x624   :  { %12 = sbr.rel (!%p10_p10) target bundleno = 3 (0x3), region = 236 }

</bundles_post_ra>
